<compile_context>
chip_gen: v7x
topology: tpu7x:2x2x1
jax: 0.10.0
libtpu: 0.0.40
codegen_flags: <defaults>
</compile_context>

<pallas_src>
import jax
import jax.numpy as jnp
from jax import lax
from jax.experimental import pallas as pl
from jax.experimental.pallas import tpu as pltpu

LANE = 128
SUBLANE = 8


def _round_up(x, m):
    return (x + m - 1) // m * m


def _pick_time_chunk(T, target=16):
    """Largest divisor of T that is <= target (so no time padding is needed)."""
    tc = 1
    for c in range(1, min(T, target) + 1):
        if T % c == 0:
            tc = c
    return tc


# ----------------------------------------------------------------------------
# Kernel
# ----------------------------------------------------------------------------
def _gru_seq_kernel(x_ref, h0_ref, w_x_ref, w_h_ref, b_big_ref,
                    w_hn_ref, b_hn_ref, out_ref, h_scr):
    """One (batch_tile, time_chunk) grid point of the fused GRU sequence.

    x_ref    : (Tc, Bt, Ip)  bf16  Tc timesteps of inputs (lane-padded)
    h0_ref   : (Bt, Hp)      f32   initial hidden state for this batch tile
    w_x_ref  : (Ip, 3Hp)     bf16  x -> (r_pre | z_pre | x-part of n)
    w_h_ref  : (Hp, 3Hp)     bf16  h -> (r_pre | z_pre | 0)
    b_big_ref: (1, 3Hp)      f32   fused biases (b_ih_r+b_hh_r, ..., b_ih_n)
    w_hn_ref : (Hp, Hp)      bf16  h -> h_n projection (kept separate: * r)
    b_hn_ref : (1, Hp)       f32
    out_ref  : (Tc, Bt, H)   out_dtype  per-step hidden states (H lanes only)
    h_scr    : (Bt, Hp)      f32   VMEM-resident hidden-state carry
    """
    Tc = x_ref.shape[0]
    Hp = h_scr.shape[-1]
    H = out_ref.shape[-1]

    # Initialize the carried hidden state once per batch tile (time chunk 0).
    @pl.when(pl.program_id(1) == 0)
    def _():
        h_scr[...] = h0_ref[...]

    def step(t, h_prev):
        h_bf = h_prev.astype(jnp.bfloat16)
        x = x_ref[t]                                   # (Bt, Ip) bf16

        # Gate blocks are 128-lane aligned -> pure vreg placement, no shuffles.
        big = (jnp.dot(x, w_x_ref[...], preferred_element_type=jnp.float32)
               + jnp.dot(h_bf, w_h_ref[...], preferred_element_type=jnp.float32)
               + b_big_ref[...])                       # (Bt, 3Hp) f32

        # h -> n projection stays separate because it is scaled by r.
        h_n = jnp.dot(h_bf, w_hn_ref[...],
                      preferred_element_type=jnp.float32) + b_hn_ref[...]

        r = jax.nn.sigmoid(big[:, 0 * Hp:1 * Hp])
        z = jax.nn.sigmoid(big[:, 1 * Hp:2 * Hp])
        n = jnp.tanh(big[:, 2 * Hp:3 * Hp] + r * h_n)

        h_new = (1.0 - z) * n + z * h_prev             # f32 carry
        out_ref[t] = h_new[:, :H].astype(out_ref.dtype)
        return h_new

    h_scr[...] = lax.fori_loop(0, Tc, step, h_scr[...], unroll=True)


# ----------------------------------------------------------------------------
# Wrapper: param packing + pallas_call
# ----------------------------------------------------------------------------
def pack_gru_params(w_ih, w_hh, b_ih, b_hh):
    """PyTorch GRUCell params (gate order [r, z, n]) -> lane-padded bf16 weights."""
    three_h, I = w_ih.shape
    H = three_h // 3
    Hp = _round_up(H, LANE)
    Ip = _round_up(I, LANE)

    wir, wiz, win = w_ih[:H], w_ih[H:2 * H], w_ih[2 * H:]
    whr, whz, whn = w_hh[:H], w_hh[H:2 * H], w_hh[2 * H:]
    bir, biz, bin_ = b_ih[:H], b_ih[H:2 * H], b_ih[2 * H:]
    bhr, bhz, bhn = b_hh[:H], b_hh[H:2 * H], b_hh[2 * H:]

    w_x = jnp.zeros((Ip, 3 * Hp), jnp.float32)
    w_x = w_x.at[:I, 0 * Hp:0 * Hp + H].set(wir.T)
    w_x = w_x.at[:I, 1 * Hp:1 * Hp + H].set(wiz.T)
    w_x = w_x.at[:I, 2 * Hp:2 * Hp + H].set(win.T)

    w_h = jnp.zeros((Hp, 3 * Hp), jnp.float32)
    w_h = w_h.at[:H, 0 * Hp:0 * Hp + H].set(whr.T)
    w_h = w_h.at[:H, 1 * Hp:1 * Hp + H].set(whz.T)
    # n's h-projection is the separate w_hn dot (scaled by r).

    b_big = jnp.zeros((1, 3 * Hp), jnp.float32)
    b_big = b_big.at[0, 0 * Hp:0 * Hp + H].set(bir + bhr)
    b_big = b_big.at[0, 1 * Hp:1 * Hp + H].set(biz + bhz)
    b_big = b_big.at[0, 2 * Hp:2 * Hp + H].set(bin_)

    w_hn = jnp.zeros((Hp, Hp), jnp.float32).at[:H, :H].set(whn.T)
    b_hn = jnp.zeros((1, Hp), jnp.float32).at[0, :H].set(bhn)

    return (w_x.astype(jnp.bfloat16), w_h.astype(jnp.bfloat16), b_big,
            w_hn.astype(jnp.bfloat16), b_hn)


def gru_sequence_pallas(x_seq, h0, packed, hidden_size, *,
                        batch_tile=None, time_chunk=None,
                        out_dtype=jnp.float32):
    """x_seq: (T, B, I), h0: (B, H) -> per-step hidden states (T, B, H)."""
    w_x, w_h, b_big, w_hn, b_hn = packed
    T, B, I = x_seq.shape
    H = hidden_size
    Hp = w_hn.shape[0]
    Ip = w_x.shape[0]
    assert I <= Ip and H <= Hp

    # Batch tile: multiple of 8 sublanes; default targets the MXU row count on
    # v6e/v7x (256) while never exceeding (padded) B.  nb >= 2 lets the
    # "parallel" grid axis shard across v7x's two TensorCores.
    if batch_tile is None:
        Bt = min(256, _round_up(B, SUBLANE))
    else:
        Bt = batch_tile
    assert Bt % SUBLANE == 0
    Bp = _round_up(B, Bt)
    nb = Bp // Bt

    Tc = _pick_time_chunk(T) if time_chunk is None else time_chunk
    assert T % Tc == 0
    nt = T // Tc

    # Pad activations once outside the kernel: x to Ip lanes as bf16 (halves
    # the streamed bytes), h0 to Hp lanes in f32 (used for the gate blend).
    x_p = jnp.zeros((T, Bp, Ip), jnp.bfloat16).at[:, :B, :I].set(
        x_seq.astype(jnp.bfloat16))
    h0_p = jnp.zeros((Bp, Hp), jnp.float32).at[:B, :H].set(
        h0.astype(jnp.float32))

    out_itemsize = jnp.dtype(out_dtype).itemsize
    weight_bytes = ((w_x.size + w_h.size + w_hn.size) * 2
                    + (b_big.size + b_hn.size) * 4)
    vmem_need = (2 * Tc * Bt * Ip * 2             # x block (double-buffered)
                 + 2 * Tc * Bt * H * out_itemsize  # out block (double-buffered)
                 + 2 * Bt * Hp * 4                 # h0 block
                 + 2 * weight_bytes                # resident weights/biases
                 + Bt * Hp * 4)                    # h carry scratch
    # Clamp to 48 MiB so tile choices stay safe on v7x (64 MiB physical VMEM).
    vmem_limit = max(8 * 1024 * 1024,
                     min(48 * 1024 * 1024, int(vmem_need * 3 // 2) + 2 * 1024 * 1024))

    flops = 2 * T * Bp * ((Ip + Hp) * 3 * Hp + Hp * Hp)
    transcendentals = 3 * T * Bp * Hp
    bytes_accessed = (x_p.size * 2 + h0_p.size * 4 + weight_bytes
                      + T * Bp * H * out_itemsize)

    out = pl.pallas_call(
        _gru_seq_kernel,
        out_shape=jax.ShapeDtypeStruct((T, Bp, H), out_dtype),
        grid_spec=pltpu.PrefetchScalarGridSpec(
            num_scalar_prefetch=0,
            grid=(nb, nt),
            in_specs=[
                pl.BlockSpec((Tc, Bt, Ip), lambda b, t: (t, b, 0)),   # x: stream Tc steps
                pl.BlockSpec((Bt, Hp), lambda b, t: (b, 0)),          # h0: per batch tile
                pl.BlockSpec((Ip, 3 * Hp), lambda b, t: (0, 0)),      # weights: resident
                pl.BlockSpec((Hp, 3 * Hp), lambda b, t: (0, 0)),
                pl.BlockSpec((1, 3 * Hp), lambda b, t: (0, 0)),
                pl.BlockSpec((Hp, Hp), lambda b, t: (0, 0)),
                pl.BlockSpec((1, Hp), lambda b, t: (0, 0)),
            ],
            out_specs=pl.BlockSpec((Tc, Bt, H), lambda b, t: (t, b, 0)),
            scratch_shapes=[pltpu.VMEM((Bt, Hp), jnp.float32)],
        ),
        compiler_params=pltpu.CompilerParams(
            dimension_semantics=("parallel", "arbitrary"),
            vmem_limit_bytes=vmem_limit,
        ),
        cost_estimate=pl.CostEstimate(
            flops=flops,
            transcendentals=transcendentals,
            bytes_accessed=bytes_accessed,
        ),
    )(x_p, h0_p, w_x, w_h, b_big, w_hn, b_hn)

    if Bp != B:
        out = out[:, :B, :]     # drop batch padding (only if B % Bt != 0)
    return out


def make_gru(input_size, hidden_size, key, dtype=jnp.float32):
    """GRU with PyTorch GRUCell per-step semantics, init U(-1/sqrt(H), 1/sqrt(H))."""
    k = 1.0 / jnp.sqrt(jnp.asarray(hidden_size, jnp.float32))
    ks = jax.random.split(key, 4)
    w_ih = jax.random.uniform(ks[0], (3 * hidden_size, input_size), dtype, -k, k)
    w_hh = jax.random.uniform(ks[1], (3 * hidden_size, hidden_size), dtype, -k, k)
    b_ih = jax.random.uniform(ks[2], (3 * hidden_size,), dtype, -k, k)
    b_hh = jax.random.uniform(ks[3], (3 * hidden_size,), dtype, -k, k)

    packed = pack_gru_params(w_ih, w_hh, b_ih, b_hh)

    def gru(x, h0):
        # (B, I) -> single GRUCell step; (T, B, I) -> full sequence of hiddens.
        single_step = x.ndim == 2
        x_seq = x[None] if single_step else x
        out = gru_sequence_pallas(x_seq, h0, packed, hidden_size)
        return out[0] if single_step else out

    return gru, (w_ih, w_hh, b_ih, b_hh)


# ----------------------------------------------------------------------------
# TensorDictModule: dict plumbing (forward semantics of the PyTorch class)
# ----------------------------------------------------------------------------
class TensorDictModule:
    """Reads `in_keys` from the dict (in order), calls `module`, writes the
    outputs under `out_keys` (skipping "_"), returns the dict."""
    # TODO(synk): functorch functional/vmap call path (params/buffers kwargs)
    # is framework machinery with no kernel equivalent; only the stateful path
    # is implemented.

    def __init__(self, module, in_keys, out_keys):
        if not out_keys:
            raise RuntimeError("out_keys were not passed to TensorDictModule")
        if not in_keys:
            raise RuntimeError("in_keys were not passed to TensorDictModule")
        if isinstance(in_keys, str) or isinstance(out_keys, str):
            raise RuntimeError("Expected a list of strings but got a string")
        if any(not isinstance(s, str) for s in in_keys) or any(
                not isinstance(s, str) for s in out_keys):
            raise TypeError("Expected a list of strings")
        self.module = module
        self.in_keys = list(in_keys)
        self.out_keys = list(out_keys)

    def __call__(self, tensordict):
        tensors = tuple(tensordict.get(k, None) for k in self.in_keys)
        out = self.module(*tensors)
        if not isinstance(out, tuple):
            out = (out,)
        for key, tensor in zip(self.out_keys, out):
            if key != "_":
                tensordict[key] = tensor
        return tensordict


# ----------------------------------------------------------------------------
# Reference + test
# ----------------------------------------------------------------------------
def _gru_cell_ref(x, h, w_ih, w_hh, b_ih, b_hh, matmul_dtype=jnp.float32):
    """PyTorch GRUCell semantics; matmul_dtype mirrors the kernel's MXU dtype."""
    H = h.shape[-1]
    xm = x.astype(matmul_dtype)
    hm = h.astype(matmul_dtype)
    gi = jnp.dot(xm, w_ih.T.astype(matmul_dtype),
                 preferred_element_type=jnp.float32) + b_ih
    gh = jnp.dot(hm, w_hh.T.astype(matmul_dtype),
                 preferred_element_type=jnp.float32) + b_hh
    r = jax.nn.sigmoid(gi[:, :H] + gh[:, :H])
    z = jax.nn.sigmoid(gi[:, H:2 * H] + gh[:, H:2 * H])
    n = jnp.tanh(gi[:, 2 * H:] + r * gh[:, 2 * H:])
    return (1.0 - z) * n + z * h


if __name__ == "__main__":
    SEQ, BATCH, INPUT, HIDDEN = 8, 8, 16, 32

    root = jax.random.PRNGKey(0)
    k_x, k_h, k_p = jax.random.split(root, 3)

    td = {
        "input": jax.random.normal(k_x, (SEQ, BATCH, INPUT), jnp.float32),
        "hidden": jax.random.normal(k_h, (BATCH, HIDDEN), jnp.float32),
    }

    gru, (w_ih, w_hh, b_ih, b_hh) = make_gru(INPUT, HIDDEN, k_p)
    td_module = TensorDictModule(
        module=gru, in_keys=["input", "hidden"], out_keys=["output"])

    td_out = td_module(td)
    out = jax.block_until_ready(td_out["output"])
    assert out.shape == (SEQ, BATCH, HIDDEN) and out.dtype == jnp.float32

    # Reference: GRUCell applied per timestep (carrying the hidden state).
    def ref_seq(x_seq, h0, dt):
        h, outs = h0, []
        for t in range(x_seq.shape[0]):
            h = _gru_cell_ref(x_seq[t], h, w_ih, w_hh, b_ih, b_hh, dt)
            outs.append(h)
        return jnp.stack(outs)

    ref_bf16 = ref_seq(td["input"], td["hidden"], jnp.bfloat16)
    ref_f32 = ref_seq(td["input"], td["hidden"], jnp.float32)
    assert jnp.allclose(out, ref_bf16, atol=2e-3, rtol=2e-3), \
        "mismatch vs bf16-matmul reference"
    assert jnp.allclose(out, ref_f32, atol=5e-2, rtol=5e-2), \
        "mismatch vs f32 reference"

    # Single-step path == the TensorDictModule/GRUCell docstring example.
    td1 = {"input": td["input"][0], "hidden": td["hidden"]}
    out1 = TensorDictModule(gru, ["input", "hidden"], ["output"])(td1)["output"]
    out1 = jax.block_until_ready(out1)
    assert out1.shape == (BATCH, HIDDEN)
    assert jnp.allclose(out1, out[0], atol=1e-6)

    print("KERNEL_OK")
</pallas_src>

<mosaic_0001>
module attributes {stable_mosaic.version = 11 : i64} {
  func.func @_gru_seq_kernel(%arg0: i32, %arg1: i32, %arg2: memref<8x8x128xbf16, #tpu.memory_space<vmem>>, %arg3: memref<8x128xf32, #tpu.memory_space<vmem>>, %arg4: memref<128x384xbf16, #tpu.memory_space<vmem>>, %arg5: memref<128x384xbf16, #tpu.memory_space<vmem>>, %arg6: memref<1x384xf32, #tpu.memory_space<vmem>>, %arg7: memref<128x128xbf16, #tpu.memory_space<vmem>>, %arg8: memref<1x128xf32, #tpu.memory_space<vmem>>, %arg9: memref<8x8x32xf32, #tpu.memory_space<vmem>>, %arg10: memref<8x128xf32, #tpu.memory_space<vmem>>) attributes {dimension_semantics = [#tpu.dimension_semantics<parallel>, #tpu.dimension_semantics<arbitrary>], iteration_bounds = array<i64: 1, 1>, scalar_prefetch = 0 : i64, scratch_operands = 1 : i64, tpu.core_type = #tpu.core_type<tc>, window_params = [{transform_indices = @transform_0, window_bounds = array<i64: 8, 8, 128>}, {transform_indices = @transform_1, window_bounds = array<i64: 8, 128>}, {pipeline_mode = #tpu.pipeline_mode<synchronous>, transform_indices = @transform_2, window_bounds = array<i64: 128, 384>}, {pipeline_mode = #tpu.pipeline_mode<synchronous>, transform_indices = @transform_3, window_bounds = array<i64: 128, 384>}, {pipeline_mode = #tpu.pipeline_mode<synchronous>, transform_indices = @transform_4, window_bounds = array<i64: 1, 384>}, {pipeline_mode = #tpu.pipeline_mode<synchronous>, transform_indices = @transform_5, window_bounds = array<i64: 128, 128>}, {pipeline_mode = #tpu.pipeline_mode<synchronous>, transform_indices = @transform_6, window_bounds = array<i64: 1, 128>}, {transform_indices = @transform_7, window_bounds = array<i64: 8, 8, 32>}]} {
    %c0_i32 = arith.constant 0 : i32
    %0 = arith.cmpi eq, %arg1, %c0_i32 : i32
    %1 = arith.extui %0 : i1 to i32
    %c0_i32_0 = arith.constant 0 : i32
    %2 = arith.cmpi ne, %1, %c0_i32_0 : i32
    scf.if %2 {
      %c0_164 = arith.constant 0 : index
      %c0_165 = arith.constant 0 : index
      %349 = vector.load %arg3[%c0_164, %c0_165] : memref<8x128xf32, #tpu.memory_space<vmem>>, vector<8x128xf32>
      %c0_166 = arith.constant 0 : index
      %c0_167 = arith.constant 0 : index
      %350 = vector.load %arg10[%c0_166, %c0_167] : memref<8x128xf32, #tpu.memory_space<vmem>>, vector<8x128xf32>
      tpu.vector_store %arg10[%c0_166, %c0_167], %349 {strides = array<i32>} : memref<8x128xf32, #tpu.memory_space<vmem>>, vector<8x128xf32>,
    } else {
    }
    %c0 = arith.constant 0 : index
    %c0_1 = arith.constant 0 : index
    %3 = vector.load %arg10[%c0, %c0_1] : memref<8x128xf32, #tpu.memory_space<vmem>>, vector<8x128xf32>
    %c0_i32_2 = arith.constant 0 : i32
    %4 = arith.truncf %3 : vector<8x128xf32> to vector<8x128xbf16>
    %5 = arith.index_cast %c0_i32_2 : i32 to index
    %c0_3 = arith.constant 0 : index
    %c0_4 = arith.constant 0 : index
    %6 = vector.load %arg2[%5, %c0_3, %c0_4] : memref<8x8x128xbf16, #tpu.memory_space<vmem>>, vector<1x8x128xbf16>
    %7 = vector.shape_cast %6 : vector<1x8x128xbf16> to vector<8x128xbf16>
    %c0_5 = arith.constant 0 : index
    %c0_6 = arith.constant 0 : index
    %8 = vector.load %arg4[%c0_5, %c0_6] : memref<128x384xbf16, #tpu.memory_space<vmem>>, vector<128x384xbf16>
    %cst = arith.constant dense<0.000000e+00> : vector<8x384xf32>
    %9 = tpu.matmul %7, %8, %cst {dimension_numbers = #tpu.dot_dimension_numbers<[1], [0], [0], [1], [0, 0, 1, 1], [], []>} : vector<8x128xbf16>, vector<128x384xbf16>, vector<8x384xf32> -> vector<8x384xf32>
    %c0_7 = arith.constant 0 : index
    %c0_8 = arith.constant 0 : index
    %10 = vector.load %arg5[%c0_7, %c0_8] : memref<128x384xbf16, #tpu.memory_space<vmem>>, vector<128x384xbf16>
    %cst_9 = arith.constant dense<0.000000e+00> : vector<8x384xf32>
    %11 = tpu.matmul %4, %10, %cst_9 {dimension_numbers = #tpu.dot_dimension_numbers<[1], [0], [0], [1], [0, 0, 1, 1], [], []>} : vector<8x128xbf16>, vector<128x384xbf16>, vector<8x384xf32> -> vector<8x384xf32>
    %12 = arith.addf %9, %11 : vector<8x384xf32>
    %c0_10 = arith.constant 0 : index
    %c0_11 = arith.constant 0 : index
    %13 = vector.load %arg6[%c0_10, %c0_11] : memref<1x384xf32, #tpu.memory_space<vmem>>, vector<1x384xf32>
    %14 = vector.broadcast %13 : vector<1x384xf32> to vector<8x384xf32>
    %15 = arith.addf %12, %14 : vector<8x384xf32>
    %c0_12 = arith.constant 0 : index
    %c0_13 = arith.constant 0 : index
    %16 = vector.load %arg7[%c0_12, %c0_13] : memref<128x128xbf16, #tpu.memory_space<vmem>>, vector<128x128xbf16>
    %cst_14 = arith.constant dense<0.000000e+00> : vector<8x128xf32>
    %17 = tpu.matmul %4, %16, %cst_14 {dimension_numbers = #tpu.dot_dimension_numbers<[1], [0], [0], [1], [0, 0, 1, 1], [], []>} : vector<8x128xbf16>, vector<128x128xbf16>, vector<8x128xf32> -> vector<8x128xf32>
    %c0_15 = arith.constant 0 : index
    %c0_16 = arith.constant 0 : index
    %18 = vector.load %arg8[%c0_15, %c0_16] : memref<1x128xf32, #tpu.memory_space<vmem>>, vector<1x128xf32>
    %19 = vector.broadcast %18 : vector<1x128xf32> to vector<8x128xf32>
    %20 = arith.addf %17, %19 : vector<8x128xf32>
    %21 = vector.extract_strided_slice %15 {offsets = [0, 0], sizes = [8, 128], strides = [1, 1]} : vector<8x384xf32> to vector<8x128xf32>
    %22 = arith.negf %21 : vector<8x128xf32>
    %23 = math.exp %22 : vector<8x128xf32>
    %cst_17 = arith.constant 1.000000e+00 : f32
    %24 = vector.broadcast %cst_17 : f32 to vector<8x128xf32>
    %25 = arith.addf %24, %23 : vector<8x128xf32>
    %26 = arith.divf %24, %25 : vector<8x128xf32>
    %27 = vector.extract_strided_slice %15 {offsets = [0, 128], sizes = [8, 128], strides = [1, 1]} : vector<8x384xf32> to vector<8x128xf32>
    %28 = arith.negf %27 : vector<8x128xf32>
    %29 = math.exp %28 : vector<8x128xf32>
    %cst_18 = arith.constant 1.000000e+00 : f32
    %30 = vector.broadcast %cst_18 : f32 to vector<8x128xf32>
    %31 = arith.addf %30, %29 : vector<8x128xf32>
    %32 = arith.divf %30, %31 : vector<8x128xf32>
    %33 = vector.extract_strided_slice %15 {offsets = [0, 256], sizes = [8, 128], strides = [1, 1]} : vector<8x384xf32> to vector<8x128xf32>
    %34 = arith.mulf %26, %20 : vector<8x128xf32>
    %35 = arith.addf %33, %34 : vector<8x128xf32>
    %36 = math.tanh %35 : vector<8x128xf32>
    %cst_19 = arith.constant 1.000000e+00 : f32
    %37 = vector.broadcast %cst_19 : f32 to vector<8x128xf32>
    %38 = arith.subf %37, %32 : vector<8x128xf32>
    %39 = arith.mulf %38, %36 : vector<8x128xf32>
    %40 = arith.mulf %32, %3 : vector<8x128xf32>
    %41 = arith.addf %39, %40 : vector<8x128xf32>
    %42 = vector.extract_strided_slice %41 {offsets = [0, 0], sizes = [8, 32], strides = [1, 1]} : vector<8x128xf32> to vector<8x32xf32>
    %43 = arith.index_cast %c0_i32_2 : i32 to index
    %c0_20 = arith.constant 0 : index
    %c0_21 = arith.constant 0 : index
    %44 = vector.load %arg9[%43, %c0_20, %c0_21] : memref<8x8x32xf32, #tpu.memory_space<vmem>>, vector<1x8x32xf32>
    %45 = vector.shape_cast %44 : vector<1x8x32xf32> to vector<8x32xf32>
    %46 = vector.shape_cast %42 : vector<8x32xf32> to vector<1x8x32xf32>
    tpu.vector_store %arg9[%43, %c0_20, %c0_21], %46 {strides = array<i32>} : memref<8x8x32xf32, #tpu.memory_space<vmem>>, vector<1x8x32xf32>,
    %c1_i32 = arith.constant 1 : i32
    %47 = arith.truncf %41 : vector<8x128xf32> to vector<8x128xbf16>
    %48 = arith.index_cast %c1_i32 : i32 to index
    %c0_22 = arith.constant 0 : index
    %c0_23 = arith.constant 0 : index
    %49 = vector.load %arg2[%48, %c0_22, %c0_23] : memref<8x8x128xbf16, #tpu.memory_space<vmem>>, vector<1x8x128xbf16>
    %50 = vector.shape_cast %49 : vector<1x8x128xbf16> to vector<8x128xbf16>
    %c0_24 = arith.constant 0 : index
    %c0_25 = arith.constant 0 : index
    %51 = vector.load %arg4[%c0_24, %c0_25] : memref<128x384xbf16, #tpu.memory_space<vmem>>, vector<128x384xbf16>
    %cst_26 = arith.constant dense<0.000000e+00> : vector<8x384xf32>
    %52 = tpu.matmul %50, %51, %cst_26 {dimension_numbers = #tpu.dot_dimension_numbers<[1], [0], [0], [1], [0, 0, 1, 1], [], []>} : vector<8x128xbf16>, vector<128x384xbf16>, vector<8x384xf32> -> vector<8x384xf32>
    %c0_27 = arith.constant 0 : index
    %c0_28 = arith.constant 0 : index
    %53 = vector.load %arg5[%c0_27, %c0_28] : memref<128x384xbf16, #tpu.memory_space<vmem>>, vector<128x384xbf16>
    %cst_29 = arith.constant dense<0.000000e+00> : vector<8x384xf32>
    %54 = tpu.matmul %47, %53, %cst_29 {dimension_numbers = #tpu.dot_dimension_numbers<[1], [0], [0], [1], [0, 0, 1, 1], [], []>} : vector<8x128xbf16>, vector<128x384xbf16>, vector<8x384xf32> -> vector<8x384xf32>
    %55 = arith.addf %52, %54 : vector<8x384xf32>
    %c0_30 = arith.constant 0 : index
    %c0_31 = arith.constant 0 : index
    %56 = vector.load %arg6[%c0_30, %c0_31] : memref<1x384xf32, #tpu.memory_space<vmem>>, vector<1x384xf32>
    %57 = vector.broadcast %56 : vector<1x384xf32> to vector<8x384xf32>
    %58 = arith.addf %55, %57 : vector<8x384xf32>
    %c0_32 = arith.constant 0 : index
    %c0_33 = arith.constant 0 : index
    %59 = vector.load %arg7[%c0_32, %c0_33] : memref<128x128xbf16, #tpu.memory_space<vmem>>, vector<128x128xbf16>
    %cst_34 = arith.constant dense<0.000000e+00> : vector<8x128xf32>
    %60 = tpu.matmul %47, %59, %cst_34 {dimension_numbers = #tpu.dot_dimension_numbers<[1], [0], [0], [1], [0, 0, 1, 1], [], []>} : vector<8x128xbf16>, vector<128x128xbf16>, vector<8x128xf32> -> vector<8x128xf32>
    %c0_35 = arith.constant 0 : index
    %c0_36 = arith.constant 0 : index
    %61 = vector.load %arg8[%c0_35, %c0_36] : memref<1x128xf32, #tpu.memory_space<vmem>>, vector<1x128xf32>
    %62 = vector.broadcast %61 : vector<1x128xf32> to vector<8x128xf32>
    %63 = arith.addf %60, %62 : vector<8x128xf32>
    %64 = vector.extract_strided_slice %58 {offsets = [0, 0], sizes = [8, 128], strides = [1, 1]} : vector<8x384xf32> to vector<8x128xf32>
    %65 = arith.negf %64 : vector<8x128xf32>
    %66 = math.exp %65 : vector<8x128xf32>
    %cst_37 = arith.constant 1.000000e+00 : f32
    %67 = vector.broadcast %cst_37 : f32 to vector<8x128xf32>
    %68 = arith.addf %67, %66 : vector<8x128xf32>
    %69 = arith.divf %67, %68 : vector<8x128xf32>
    %70 = vector.extract_strided_slice %58 {offsets = [0, 128], sizes = [8, 128], strides = [1, 1]} : vector<8x384xf32> to vector<8x128xf32>
    %71 = arith.negf %70 : vector<8x128xf32>
    %72 = math.exp %71 : vector<8x128xf32>
    %cst_38 = arith.constant 1.000000e+00 : f32
    %73 = vector.broadcast %cst_38 : f32 to vector<8x128xf32>
    %74 = arith.addf %73, %72 : vector<8x128xf32>
    %75 = arith.divf %73, %74 : vector<8x128xf32>
    %76 = vector.extract_strided_slice %58 {offsets = [0, 256], sizes = [8, 128], strides = [1, 1]} : vector<8x384xf32> to vector<8x128xf32>
    %77 = arith.mulf %69, %63 : vector<8x128xf32>
    %78 = arith.addf %76, %77 : vector<8x128xf32>
    %79 = math.tanh %78 : vector<8x128xf32>
    %cst_39 = arith.constant 1.000000e+00 : f32
    %80 = vector.broadcast %cst_39 : f32 to vector<8x128xf32>
    %81 = arith.subf %80, %75 : vector<8x128xf32>
    %82 = arith.mulf %81, %79 : vector<8x128xf32>
    %83 = arith.mulf %75, %41 : vector<8x128xf32>
    %84 = arith.addf %82, %83 : vector<8x128xf32>
    %85 = vector.extract_strided_slice %84 {offsets = [0, 0], sizes = [8, 32], strides = [1, 1]} : vector<8x128xf32> to vector<8x32xf32>
    %86 = arith.index_cast %c1_i32 : i32 to index
    %c0_40 = arith.constant 0 : index
    %c0_41 = arith.constant 0 : index
    %87 = vector.load %arg9[%86, %c0_40, %c0_41] : memref<8x8x32xf32, #tpu.memory_space<vmem>>, vector<1x8x32xf32>
    %88 = vector.shape_cast %87 : vector<1x8x32xf32> to vector<8x32xf32>
    %89 = vector.shape_cast %85 : vector<8x32xf32> to vector<1x8x32xf32>
    tpu.vector_store %arg9[%86, %c0_40, %c0_41], %89 {strides = array<i32>} : memref<8x8x32xf32, #tpu.memory_space<vmem>>, vector<1x8x32xf32>,
    %c2_i32 = arith.constant 2 : i32
    %90 = arith.truncf %84 : vector<8x128xf32> to vector<8x128xbf16>
    %91 = arith.index_cast %c2_i32 : i32 to index
    %c0_42 = arith.constant 0 : index
    %c0_43 = arith.constant 0 : index
    %92 = vector.load %arg2[%91, %c0_42, %c0_43] : memref<8x8x128xbf16, #tpu.memory_space<vmem>>, vector<1x8x128xbf16>
    %93 = vector.shape_cast %92 : vector<1x8x128xbf16> to vector<8x128xbf16>
    %c0_44 = arith.constant 0 : index
    %c0_45 = arith.constant 0 : index
    %94 = vector.load %arg4[%c0_44, %c0_45] : memref<128x384xbf16, #tpu.memory_space<vmem>>, vector<128x384xbf16>
    %cst_46 = arith.constant dense<0.000000e+00> : vector<8x384xf32>
    %95 = tpu.matmul %93, %94, %cst_46 {dimension_numbers = #tpu.dot_dimension_numbers<[1], [0], [0], [1], [0, 0, 1, 1], [], []>} : vector<8x128xbf16>, vector<128x384xbf16>, vector<8x384xf32> -> vector<8x384xf32>
    %c0_47 = arith.constant 0 : index
    %c0_48 = arith.constant 0 : index
    %96 = vector.load %arg5[%c0_47, %c0_48] : memref<128x384xbf16, #tpu.memory_space<vmem>>, vector<128x384xbf16>
    %cst_49 = arith.constant dense<0.000000e+00> : vector<8x384xf32>
    %97 = tpu.matmul %90, %96, %cst_49 {dimension_numbers = #tpu.dot_dimension_numbers<[1], [0], [0], [1], [0, 0, 1, 1], [], []>} : vector<8x128xbf16>, vector<128x384xbf16>, vector<8x384xf32> -> vector<8x384xf32>
    %98 = arith.addf %95, %97 : vector<8x384xf32>
    %c0_50 = arith.constant 0 : index
    %c0_51 = arith.constant 0 : index
    %99 = vector.load %arg6[%c0_50, %c0_51] : memref<1x384xf32, #tpu.memory_space<vmem>>, vector<1x384xf32>
    %100 = vector.broadcast %99 : vector<1x384xf32> to vector<8x384xf32>
    %101 = arith.addf %98, %100 : vector<8x384xf32>
    %c0_52 = arith.constant 0 : index
    %c0_53 = arith.constant 0 : index
    %102 = vector.load %arg7[%c0_52, %c0_53] : memref<128x128xbf16, #tpu.memory_space<vmem>>, vector<128x128xbf16>
    %cst_54 = arith.constant dense<0.000000e+00> : vector<8x128xf32>
    %103 = tpu.matmul %90, %102, %cst_54 {dimension_numbers = #tpu.dot_dimension_numbers<[1], [0], [0], [1], [0, 0, 1, 1], [], []>} : vector<8x128xbf16>, vector<128x128xbf16>, vector<8x128xf32> -> vector<8x128xf32>
    %c0_55 = arith.constant 0 : index
    %c0_56 = arith.constant 0 : index
    %104 = vector.load %arg8[%c0_55, %c0_56] : memref<1x128xf32, #tpu.memory_space<vmem>>, vector<1x128xf32>
    %105 = vector.broadcast %104 : vector<1x128xf32> to vector<8x128xf32>
    %106 = arith.addf %103, %105 : vector<8x128xf32>
    %107 = vector.extract_strided_slice %101 {offsets = [0, 0], sizes = [8, 128], strides = [1, 1]} : vector<8x384xf32> to vector<8x128xf32>
    %108 = arith.negf %107 : vector<8x128xf32>
    %109 = math.exp %108 : vector<8x128xf32>
    %cst_57 = arith.constant 1.000000e+00 : f32
    %110 = vector.broadcast %cst_57 : f32 to vector<8x128xf32>
    %111 = arith.addf %110, %109 : vector<8x128xf32>
    %112 = arith.divf %110, %111 : vector<8x128xf32>
    %113 = vector.extract_strided_slice %101 {offsets = [0, 128], sizes = [8, 128], strides = [1, 1]} : vector<8x384xf32> to vector<8x128xf32>
    %114 = arith.negf %113 : vector<8x128xf32>
    %115 = math.exp %114 : vector<8x128xf32>
    %cst_58 = arith.constant 1.000000e+00 : f32
    %116 = vector.broadcast %cst_58 : f32 to vector<8x128xf32>
    %117 = arith.addf %116, %115 : vector<8x128xf32>
    %118 = arith.divf %116, %117 : vector<8x128xf32>
    %119 = vector.extract_strided_slice %101 {offsets = [0, 256], sizes = [8, 128], strides = [1, 1]} : vector<8x384xf32> to vector<8x128xf32>
    %120 = arith.mulf %112, %106 : vector<8x128xf32>
    %121 = arith.addf %119, %120 : vector<8x128xf32>
    %122 = math.tanh %121 : vector<8x128xf32>
    %cst_59 = arith.constant 1.000000e+00 : f32
    %123 = vector.broadcast %cst_59 : f32 to vector<8x128xf32>
    %124 = arith.subf %123, %118 : vector<8x128xf32>
    %125 = arith.mulf %124, %122 : vector<8x128xf32>
    %126 = arith.mulf %118, %84 : vector<8x128xf32>
    %127 = arith.addf %125, %126 : vector<8x128xf32>
    %128 = vector.extract_strided_slice %127 {offsets = [0, 0], sizes = [8, 32], strides = [1, 1]} : vector<8x128xf32> to vector<8x32xf32>
    %129 = arith.index_cast %c2_i32 : i32 to index
    %c0_60 = arith.constant 0 : index
    %c0_61 = arith.constant 0 : index
    %130 = vector.load %arg9[%129, %c0_60, %c0_61] : memref<8x8x32xf32, #tpu.memory_space<vmem>>, vector<1x8x32xf32>
    %131 = vector.shape_cast %130 : vector<1x8x32xf32> to vector<8x32xf32>
    %132 = vector.shape_cast %128 : vector<8x32xf32> to vector<1x8x32xf32>
    tpu.vector_store %arg9[%129, %c0_60, %c0_61], %132 {strides = array<i32>} : memref<8x8x32xf32, #tpu.memory_space<vmem>>, vector<1x8x32xf32>,
    %c3_i32 = arith.constant 3 : i32
    %133 = arith.truncf %127 : vector<8x128xf32> to vector<8x128xbf16>
    %134 = arith.index_cast %c3_i32 : i32 to index
    %c0_62 = arith.constant 0 : index
    %c0_63 = arith.constant 0 : index
    %135 = vector.load %arg2[%134, %c0_62, %c0_63] : memref<8x8x128xbf16, #tpu.memory_space<vmem>>, vector<1x8x128xbf16>
    %136 = vector.shape_cast %135 : vector<1x8x128xbf16> to vector<8x128xbf16>
    %c0_64 = arith.constant 0 : index
    %c0_65 = arith.constant 0 : index
    %137 = vector.load %arg4[%c0_64, %c0_65] : memref<128x384xbf16, #tpu.memory_space<vmem>>, vector<128x384xbf16>
    %cst_66 = arith.constant dense<0.000000e+00> : vector<8x384xf32>
    %138 = tpu.matmul %136, %137, %cst_66 {dimension_numbers = #tpu.dot_dimension_numbers<[1], [0], [0], [1], [0, 0, 1, 1], [], []>} : vector<8x128xbf16>, vector<128x384xbf16>, vector<8x384xf32> -> vector<8x384xf32>
    %c0_67 = arith.constant 0 : index
    %c0_68 = arith.constant 0 : index
    %139 = vector.load %arg5[%c0_67, %c0_68] : memref<128x384xbf16, #tpu.memory_space<vmem>>, vector<128x384xbf16>
    %cst_69 = arith.constant dense<0.000000e+00> : vector<8x384xf32>
    %140 = tpu.matmul %133, %139, %cst_69 {dimension_numbers = #tpu.dot_dimension_numbers<[1], [0], [0], [1], [0, 0, 1, 1], [], []>} : vector<8x128xbf16>, vector<128x384xbf16>, vector<8x384xf32> -> vector<8x384xf32>
    %141 = arith.addf %138, %140 : vector<8x384xf32>
    %c0_70 = arith.constant 0 : index
    %c0_71 = arith.constant 0 : index
    %142 = vector.load %arg6[%c0_70, %c0_71] : memref<1x384xf32, #tpu.memory_space<vmem>>, vector<1x384xf32>
    %143 = vector.broadcast %142 : vector<1x384xf32> to vector<8x384xf32>
    %144 = arith.addf %141, %143 : vector<8x384xf32>
    %c0_72 = arith.constant 0 : index
    %c0_73 = arith.constant 0 : index
    %145 = vector.load %arg7[%c0_72, %c0_73] : memref<128x128xbf16, #tpu.memory_space<vmem>>, vector<128x128xbf16>
    %cst_74 = arith.constant dense<0.000000e+00> : vector<8x128xf32>
    %146 = tpu.matmul %133, %145, %cst_74 {dimension_numbers = #tpu.dot_dimension_numbers<[1], [0], [0], [1], [0, 0, 1, 1], [], []>} : vector<8x128xbf16>, vector<128x128xbf16>, vector<8x128xf32> -> vector<8x128xf32>
    %c0_75 = arith.constant 0 : index
    %c0_76 = arith.constant 0 : index
    %147 = vector.load %arg8[%c0_75, %c0_76] : memref<1x128xf32, #tpu.memory_space<vmem>>, vector<1x128xf32>
    %148 = vector.broadcast %147 : vector<1x128xf32> to vector<8x128xf32>
    %149 = arith.addf %146, %148 : vector<8x128xf32>
    %150 = vector.extract_strided_slice %144 {offsets = [0, 0], sizes = [8, 128], strides = [1, 1]} : vector<8x384xf32> to vector<8x128xf32>
    %151 = arith.negf %150 : vector<8x128xf32>
    %152 = math.exp %151 : vector<8x128xf32>
    %cst_77 = arith.constant 1.000000e+00 : f32
    %153 = vector.broadcast %cst_77 : f32 to vector<8x128xf32>
    %154 = arith.addf %153, %152 : vector<8x128xf32>
    %155 = arith.divf %153, %154 : vector<8x128xf32>
    %156 = vector.extract_strided_slice %144 {offsets = [0, 128], sizes = [8, 128], strides = [1, 1]} : vector<8x384xf32> to vector<8x128xf32>
    %157 = arith.negf %156 : vector<8x128xf32>
    %158 = math.exp %157 : vector<8x128xf32>
    %cst_78 = arith.constant 1.000000e+00 : f32
    %159 = vector.broadcast %cst_78 : f32 to vector<8x128xf32>
    %160 = arith.addf %159, %158 : vector<8x128xf32>
    %161 = arith.divf %159, %160 : vector<8x128xf32>
    %162 = vector.extract_strided_slice %144 {offsets = [0, 256], sizes = [8, 128], strides = [1, 1]} : vector<8x384xf32> to vector<8x128xf32>
    %163 = arith.mulf %155, %149 : vector<8x128xf32>
    %164 = arith.addf %162, %163 : vector<8x128xf32>
    %165 = math.tanh %164 : vector<8x128xf32>
    %cst_79 = arith.constant 1.000000e+00 : f32
    %166 = vector.broadcast %cst_79 : f32 to vector<8x128xf32>
    %167 = arith.subf %166, %161 : vector<8x128xf32>
    %168 = arith.mulf %167, %165 : vector<8x128xf32>
    %169 = arith.mulf %161, %127 : vector<8x128xf32>
    %170 = arith.addf %168, %169 : vector<8x128xf32>
    %171 = vector.extract_strided_slice %170 {offsets = [0, 0], sizes = [8, 32], strides = [1, 1]} : vector<8x128xf32> to vector<8x32xf32>
    %172 = arith.index_cast %c3_i32 : i32 to index
    %c0_80 = arith.constant 0 : index
    %c0_81 = arith.constant 0 : index
    %173 = vector.load %arg9[%172, %c0_80, %c0_81] : memref<8x8x32xf32, #tpu.memory_space<vmem>>, vector<1x8x32xf32>
    %174 = vector.shape_cast %173 : vector<1x8x32xf32> to vector<8x32xf32>
    %175 = vector.shape_cast %171 : vector<8x32xf32> to vector<1x8x32xf32>
    tpu.vector_store %arg9[%172, %c0_80, %c0_81], %175 {strides = array<i32>} : memref<8x8x32xf32, #tpu.memory_space<vmem>>, vector<1x8x32xf32>,
    %c4_i32 = arith.constant 4 : i32
    %176 = arith.truncf %170 : vector<8x128xf32> to vector<8x128xbf16>
    %177 = arith.index_cast %c4_i32 : i32 to index
    %c0_82 = arith.constant 0 : index
    %c0_83 = arith.constant 0 : index
    %178 = vector.load %arg2[%177, %c0_82, %c0_83] : memref<8x8x128xbf16, #tpu.memory_space<vmem>>, vector<1x8x128xbf16>
    %179 = vector.shape_cast %178 : vector<1x8x128xbf16> to vector<8x128xbf16>
    %c0_84 = arith.constant 0 : index
    %c0_85 = arith.constant 0 : index
    %180 = vector.load %arg4[%c0_84, %c0_85] : memref<128x384xbf16, #tpu.memory_space<vmem>>, vector<128x384xbf16>
    %cst_86 = arith.constant dense<0.000000e+00> : vector<8x384xf32>
    %181 = tpu.matmul %179, %180, %cst_86 {dimension_numbers = #tpu.dot_dimension_numbers<[1], [0], [0], [1], [0, 0, 1, 1], [], []>} : vector<8x128xbf16>, vector<128x384xbf16>, vector<8x384xf32> -> vector<8x384xf32>
    %c0_87 = arith.constant 0 : index
    %c0_88 = arith.constant 0 : index
    %182 = vector.load %arg5[%c0_87, %c0_88] : memref<128x384xbf16, #tpu.memory_space<vmem>>, vector<128x384xbf16>
    %cst_89 = arith.constant dense<0.000000e+00> : vector<8x384xf32>
    %183 = tpu.matmul %176, %182, %cst_89 {dimension_numbers = #tpu.dot_dimension_numbers<[1], [0], [0], [1], [0, 0, 1, 1], [], []>} : vector<8x128xbf16>, vector<128x384xbf16>, vector<8x384xf32> -> vector<8x384xf32>
    %184 = arith.addf %181, %183 : vector<8x384xf32>
    %c0_90 = arith.constant 0 : index
    %c0_91 = arith.constant 0 : index
    %185 = vector.load %arg6[%c0_90, %c0_91] : memref<1x384xf32, #tpu.memory_space<vmem>>, vector<1x384xf32>
    %186 = vector.broadcast %185 : vector<1x384xf32> to vector<8x384xf32>
    %187 = arith.addf %184, %186 : vector<8x384xf32>
    %c0_92 = arith.constant 0 : index
    %c0_93 = arith.constant 0 : index
    %188 = vector.load %arg7[%c0_92, %c0_93] : memref<128x128xbf16, #tpu.memory_space<vmem>>, vector<128x128xbf16>
    %cst_94 = arith.constant dense<0.000000e+00> : vector<8x128xf32>
    %189 = tpu.matmul %176, %188, %cst_94 {dimension_numbers = #tpu.dot_dimension_numbers<[1], [0], [0], [1], [0, 0, 1, 1], [], []>} : vector<8x128xbf16>, vector<128x128xbf16>, vector<8x128xf32> -> vector<8x128xf32>
    %c0_95 = arith.constant 0 : index
    %c0_96 = arith.constant 0 : index
    %190 = vector.load %arg8[%c0_95, %c0_96] : memref<1x128xf32, #tpu.memory_space<vmem>>, vector<1x128xf32>
    %191 = vector.broadcast %190 : vector<1x128xf32> to vector<8x128xf32>
    %192 = arith.addf %189, %191 : vector<8x128xf32>
    %193 = vector.extract_strided_slice %187 {offsets = [0, 0], sizes = [8, 128], strides = [1, 1]} : vector<8x384xf32> to vector<8x128xf32>
    %194 = arith.negf %193 : vector<8x128xf32>
    %195 = math.exp %194 : vector<8x128xf32>
    %cst_97 = arith.constant 1.000000e+00 : f32
    %196 = vector.broadcast %cst_97 : f32 to vector<8x128xf32>
    %197 = arith.addf %196, %195 : vector<8x128xf32>
    %198 = arith.divf %196, %197 : vector<8x128xf32>
    %199 = vector.extract_strided_slice %187 {offsets = [0, 128], sizes = [8, 128], strides = [1, 1]} : vector<8x384xf32> to vector<8x128xf32>
    %200 = arith.negf %199 : vector<8x128xf32>
    %201 = math.exp %200 : vector<8x128xf32>
    %cst_98 = arith.constant 1.000000e+00 : f32
    %202 = vector.broadcast %cst_98 : f32 to vector<8x128xf32>
    %203 = arith.addf %202, %201 : vector<8x128xf32>
    %204 = arith.divf %202, %203 : vector<8x128xf32>
    %205 = vector.extract_strided_slice %187 {offsets = [0, 256], sizes = [8, 128], strides = [1, 1]} : vector<8x384xf32> to vector<8x128xf32>
    %206 = arith.mulf %198, %192 : vector<8x128xf32>
    %207 = arith.addf %205, %206 : vector<8x128xf32>
    %208 = math.tanh %207 : vector<8x128xf32>
    %cst_99 = arith.constant 1.000000e+00 : f32
    %209 = vector.broadcast %cst_99 : f32 to vector<8x128xf32>
    %210 = arith.subf %209, %204 : vector<8x128xf32>
    %211 = arith.mulf %210, %208 : vector<8x128xf32>
    %212 = arith.mulf %204, %170 : vector<8x128xf32>
    %213 = arith.addf %211, %212 : vector<8x128xf32>
    %214 = vector.extract_strided_slice %213 {offsets = [0, 0], sizes = [8, 32], strides = [1, 1]} : vector<8x128xf32> to vector<8x32xf32>
    %215 = arith.index_cast %c4_i32 : i32 to index
    %c0_100 = arith.constant 0 : index
    %c0_101 = arith.constant 0 : index
    %216 = vector.load %arg9[%215, %c0_100, %c0_101] : memref<8x8x32xf32, #tpu.memory_space<vmem>>, vector<1x8x32xf32>
    %217 = vector.shape_cast %216 : vector<1x8x32xf32> to vector<8x32xf32>
    %218 = vector.shape_cast %214 : vector<8x32xf32> to vector<1x8x32xf32>
    tpu.vector_store %arg9[%215, %c0_100, %c0_101], %218 {strides = array<i32>} : memref<8x8x32xf32, #tpu.memory_space<vmem>>, vector<1x8x32xf32>,
    %c5_i32 = arith.constant 5 : i32
    %219 = arith.truncf %213 : vector<8x128xf32> to vector<8x128xbf16>
    %220 = arith.index_cast %c5_i32 : i32 to index
    %c0_102 = arith.constant 0 : index
    %c0_103 = arith.constant 0 : index
    %221 = vector.load %arg2[%220, %c0_102, %c0_103] : memref<8x8x128xbf16, #tpu.memory_space<vmem>>, vector<1x8x128xbf16>
    %222 = vector.shape_cast %221 : vector<1x8x128xbf16> to vector<8x128xbf16>
    %c0_104 = arith.constant 0 : index
    %c0_105 = arith.constant 0 : index
    %223 = vector.load %arg4[%c0_104, %c0_105] : memref<128x384xbf16, #tpu.memory_space<vmem>>, vector<128x384xbf16>
    %cst_106 = arith.constant dense<0.000000e+00> : vector<8x384xf32>
    %224 = tpu.matmul %222, %223, %cst_106 {dimension_numbers = #tpu.dot_dimension_numbers<[1], [0], [0], [1], [0, 0, 1, 1], [], []>} : vector<8x128xbf16>, vector<128x384xbf16>, vector<8x384xf32> -> vector<8x384xf32>
    %c0_107 = arith.constant 0 : index
    %c0_108 = arith.constant 0 : index
    %225 = vector.load %arg5[%c0_107, %c0_108] : memref<128x384xbf16, #tpu.memory_space<vmem>>, vector<128x384xbf16>
    %cst_109 = arith.constant dense<0.000000e+00> : vector<8x384xf32>
    %226 = tpu.matmul %219, %225, %cst_109 {dimension_numbers = #tpu.dot_dimension_numbers<[1], [0], [0], [1], [0, 0, 1, 1], [], []>} : vector<8x128xbf16>, vector<128x384xbf16>, vector<8x384xf32> -> vector<8x384xf32>
    %227 = arith.addf %224, %226 : vector<8x384xf32>
    %c0_110 = arith.constant 0 : index
    %c0_111 = arith.constant 0 : index
    %228 = vector.load %arg6[%c0_110, %c0_111] : memref<1x384xf32, #tpu.memory_space<vmem>>, vector<1x384xf32>
    %229 = vector.broadcast %228 : vector<1x384xf32> to vector<8x384xf32>
    %230 = arith.addf %227, %229 : vector<8x384xf32>
    %c0_112 = arith.constant 0 : index
    %c0_113 = arith.constant 0 : index
    %231 = vector.load %arg7[%c0_112, %c0_113] : memref<128x128xbf16, #tpu.memory_space<vmem>>, vector<128x128xbf16>
    %cst_114 = arith.constant dense<0.000000e+00> : vector<8x128xf32>
    %232 = tpu.matmul %219, %231, %cst_114 {dimension_numbers = #tpu.dot_dimension_numbers<[1], [0], [0], [1], [0, 0, 1, 1], [], []>} : vector<8x128xbf16>, vector<128x128xbf16>, vector<8x128xf32> -> vector<8x128xf32>
    %c0_115 = arith.constant 0 : index
    %c0_116 = arith.constant 0 : index
    %233 = vector.load %arg8[%c0_115, %c0_116] : memref<1x128xf32, #tpu.memory_space<vmem>>, vector<1x128xf32>
    %234 = vector.broadcast %233 : vector<1x128xf32> to vector<8x128xf32>
    %235 = arith.addf %232, %234 : vector<8x128xf32>
    %236 = vector.extract_strided_slice %230 {offsets = [0, 0], sizes = [8, 128], strides = [1, 1]} : vector<8x384xf32> to vector<8x128xf32>
    %237 = arith.negf %236 : vector<8x128xf32>
    %238 = math.exp %237 : vector<8x128xf32>
    %cst_117 = arith.constant 1.000000e+00 : f32
    %239 = vector.broadcast %cst_117 : f32 to vector<8x128xf32>
    %240 = arith.addf %239, %238 : vector<8x128xf32>
    %241 = arith.divf %239, %240 : vector<8x128xf32>
    %242 = vector.extract_strided_slice %230 {offsets = [0, 128], sizes = [8, 128], strides = [1, 1]} : vector<8x384xf32> to vector<8x128xf32>
    %243 = arith.negf %242 : vector<8x128xf32>
    %244 = math.exp %243 : vector<8x128xf32>
    %cst_118 = arith.constant 1.000000e+00 : f32
    %245 = vector.broadcast %cst_118 : f32 to vector<8x128xf32>
    %246 = arith.addf %245, %244 : vector<8x128xf32>
    %247 = arith.divf %245, %246 : vector<8x128xf32>
    %248 = vector.extract_strided_slice %230 {offsets = [0, 256], sizes = [8, 128], strides = [1, 1]} : vector<8x384xf32> to vector<8x128xf32>
    %249 = arith.mulf %241, %235 : vector<8x128xf32>
    %250 = arith.addf %248, %249 : vector<8x128xf32>
    %251 = math.tanh %250 : vector<8x128xf32>
    %cst_119 = arith.constant 1.000000e+00 : f32
    %252 = vector.broadcast %cst_119 : f32 to vector<8x128xf32>
    %253 = arith.subf %252, %247 : vector<8x128xf32>
    %254 = arith.mulf %253, %251 : vector<8x128xf32>
    %255 = arith.mulf %247, %213 : vector<8x128xf32>
    %256 = arith.addf %254, %255 : vector<8x128xf32>
    %257 = vector.extract_strided_slice %256 {offsets = [0, 0], sizes = [8, 32], strides = [1, 1]} : vector<8x128xf32> to vector<8x32xf32>
    %258 = arith.index_cast %c5_i32 : i32 to index
    %c0_120 = arith.constant 0 : index
    %c0_121 = arith.constant 0 : index
    %259 = vector.load %arg9[%258, %c0_120, %c0_121] : memref<8x8x32xf32, #tpu.memory_space<vmem>>, vector<1x8x32xf32>
    %260 = vector.shape_cast %259 : vector<1x8x32xf32> to vector<8x32xf32>
    %261 = vector.shape_cast %257 : vector<8x32xf32> to vector<1x8x32xf32>
    tpu.vector_store %arg9[%258, %c0_120, %c0_121], %261 {strides = array<i32>} : memref<8x8x32xf32, #tpu.memory_space<vmem>>, vector<1x8x32xf32>,
    %c6_i32 = arith.constant 6 : i32
    %262 = arith.truncf %256 : vector<8x128xf32> to vector<8x128xbf16>
    %263 = arith.index_cast %c6_i32 : i32 to index
    %c0_122 = arith.constant 0 : index
    %c0_123 = arith.constant 0 : index
    %264 = vector.load %arg2[%263, %c0_122, %c0_123] : memref<8x8x128xbf16, #tpu.memory_space<vmem>>, vector<1x8x128xbf16>
    %265 = vector.shape_cast %264 : vector<1x8x128xbf16> to vector<8x128xbf16>
    %c0_124 = arith.constant 0 : index
    %c0_125 = arith.constant 0 : index
    %266 = vector.load %arg4[%c0_124, %c0_125] : memref<128x384xbf16, #tpu.memory_space<vmem>>, vector<128x384xbf16>
    %cst_126 = arith.constant dense<0.000000e+00> : vector<8x384xf32>
    %267 = tpu.matmul %265, %266, %cst_126 {dimension_numbers = #tpu.dot_dimension_numbers<[1], [0], [0], [1], [0, 0, 1, 1], [], []>} : vector<8x128xbf16>, vector<128x384xbf16>, vector<8x384xf32> -> vector<8x384xf32>
    %c0_127 = arith.constant 0 : index
    %c0_128 = arith.constant 0 : index
    %268 = vector.load %arg5[%c0_127, %c0_128] : memref<128x384xbf16, #tpu.memory_space<vmem>>, vector<128x384xbf16>
    %cst_129 = arith.constant dense<0.000000e+00> : vector<8x384xf32>
    %269 = tpu.matmul %262, %268, %cst_129 {dimension_numbers = #tpu.dot_dimension_numbers<[1], [0], [0], [1], [0, 0, 1, 1], [], []>} : vector<8x128xbf16>, vector<128x384xbf16>, vector<8x384xf32> -> vector<8x384xf32>
    %270 = arith.addf %267, %269 : vector<8x384xf32>
    %c0_130 = arith.constant 0 : index
    %c0_131 = arith.constant 0 : index
    %271 = vector.load %arg6[%c0_130, %c0_131] : memref<1x384xf32, #tpu.memory_space<vmem>>, vector<1x384xf32>
    %272 = vector.broadcast %271 : vector<1x384xf32> to vector<8x384xf32>
    %273 = arith.addf %270, %272 : vector<8x384xf32>
    %c0_132 = arith.constant 0 : index
    %c0_133 = arith.constant 0 : index
    %274 = vector.load %arg7[%c0_132, %c0_133] : memref<128x128xbf16, #tpu.memory_space<vmem>>, vector<128x128xbf16>
    %cst_134 = arith.constant dense<0.000000e+00> : vector<8x128xf32>
    %275 = tpu.matmul %262, %274, %cst_134 {dimension_numbers = #tpu.dot_dimension_numbers<[1], [0], [0], [1], [0, 0, 1, 1], [], []>} : vector<8x128xbf16>, vector<128x128xbf16>, vector<8x128xf32> -> vector<8x128xf32>
    %c0_135 = arith.constant 0 : index
    %c0_136 = arith.constant 0 : index
    %276 = vector.load %arg8[%c0_135, %c0_136] : memref<1x128xf32, #tpu.memory_space<vmem>>, vector<1x128xf32>
    %277 = vector.broadcast %276 : vector<1x128xf32> to vector<8x128xf32>
    %278 = arith.addf %275, %277 : vector<8x128xf32>
    %279 = vector.extract_strided_slice %273 {offsets = [0, 0], sizes = [8, 128], strides = [1, 1]} : vector<8x384xf32> to vector<8x128xf32>
    %280 = arith.negf %279 : vector<8x128xf32>
    %281 = math.exp %280 : vector<8x128xf32>
    %cst_137 = arith.constant 1.000000e+00 : f32
    %282 = vector.broadcast %cst_137 : f32 to vector<8x128xf32>
    %283 = arith.addf %282, %281 : vector<8x128xf32>
    %284 = arith.divf %282, %283 : vector<8x128xf32>
    %285 = vector.extract_strided_slice %273 {offsets = [0, 128], sizes = [8, 128], strides = [1, 1]} : vector<8x384xf32> to vector<8x128xf32>
    %286 = arith.negf %285 : vector<8x128xf32>
    %287 = math.exp %286 : vector<8x128xf32>
    %cst_138 = arith.constant 1.000000e+00 : f32
    %288 = vector.broadcast %cst_138 : f32 to vector<8x128xf32>
    %289 = arith.addf %288, %287 : vector<8x128xf32>
    %290 = arith.divf %288, %289 : vector<8x128xf32>
    %291 = vector.extract_strided_slice %273 {offsets = [0, 256], sizes = [8, 128], strides = [1, 1]} : vector<8x384xf32> to vector<8x128xf32>
    %292 = arith.mulf %284, %278 : vector<8x128xf32>
    %293 = arith.addf %291, %292 : vector<8x128xf32>
    %294 = math.tanh %293 : vector<8x128xf32>
    %cst_139 = arith.constant 1.000000e+00 : f32
    %295 = vector.broadcast %cst_139 : f32 to vector<8x128xf32>
    %296 = arith.subf %295, %290 : vector<8x128xf32>
    %297 = arith.mulf %296, %294 : vector<8x128xf32>
    %298 = arith.mulf %290, %256 : vector<8x128xf32>
    %299 = arith.addf %297, %298 : vector<8x128xf32>
    %300 = vector.extract_strided_slice %299 {offsets = [0, 0], sizes = [8, 32], strides = [1, 1]} : vector<8x128xf32> to vector<8x32xf32>
    %301 = arith.index_cast %c6_i32 : i32 to index
    %c0_140 = arith.constant 0 : index
    %c0_141 = arith.constant 0 : index
    %302 = vector.load %arg9[%301, %c0_140, %c0_141] : memref<8x8x32xf32, #tpu.memory_space<vmem>>, vector<1x8x32xf32>
    %303 = vector.shape_cast %302 : vector<1x8x32xf32> to vector<8x32xf32>
    %304 = vector.shape_cast %300 : vector<8x32xf32> to vector<1x8x32xf32>
    tpu.vector_store %arg9[%301, %c0_140, %c0_141], %304 {strides = array<i32>} : memref<8x8x32xf32, #tpu.memory_space<vmem>>, vector<1x8x32xf32>,
    %c7_i32 = arith.constant 7 : i32
    %305 = arith.truncf %299 : vector<8x128xf32> to vector<8x128xbf16>
    %306 = arith.index_cast %c7_i32 : i32 to index
    %c0_142 = arith.constant 0 : index
    %c0_143 = arith.constant 0 : index
    %307 = vector.load %arg2[%306, %c0_142, %c0_143] : memref<8x8x128xbf16, #tpu.memory_space<vmem>>, vector<1x8x128xbf16>
    %308 = vector.shape_cast %307 : vector<1x8x128xbf16> to vector<8x128xbf16>
    %c0_144 = arith.constant 0 : index
    %c0_145 = arith.constant 0 : index
    %309 = vector.load %arg4[%c0_144, %c0_145] : memref<128x384xbf16, #tpu.memory_space<vmem>>, vector<128x384xbf16>
    %cst_146 = arith.constant dense<0.000000e+00> : vector<8x384xf32>
    %310 = tpu.matmul %308, %309, %cst_146 {dimension_numbers = #tpu.dot_dimension_numbers<[1], [0], [0], [1], [0, 0, 1, 1], [], []>} : vector<8x128xbf16>, vector<128x384xbf16>, vector<8x384xf32> -> vector<8x384xf32>
    %c0_147 = arith.constant 0 : index
    %c0_148 = arith.constant 0 : index
    %311 = vector.load %arg5[%c0_147, %c0_148] : memref<128x384xbf16, #tpu.memory_space<vmem>>, vector<128x384xbf16>
    %cst_149 = arith.constant dense<0.000000e+00> : vector<8x384xf32>
    %312 = tpu.matmul %305, %311, %cst_149 {dimension_numbers = #tpu.dot_dimension_numbers<[1], [0], [0], [1], [0, 0, 1, 1], [], []>} : vector<8x128xbf16>, vector<128x384xbf16>, vector<8x384xf32> -> vector<8x384xf32>
    %313 = arith.addf %310, %312 : vector<8x384xf32>
    %c0_150 = arith.constant 0 : index
    %c0_151 = arith.constant 0 : index
    %314 = vector.load %arg6[%c0_150, %c0_151] : memref<1x384xf32, #tpu.memory_space<vmem>>, vector<1x384xf32>
    %315 = vector.broadcast %314 : vector<1x384xf32> to vector<8x384xf32>
    %316 = arith.addf %313, %315 : vector<8x384xf32>
    %c0_152 = arith.constant 0 : index
    %c0_153 = arith.constant 0 : index
    %317 = vector.load %arg7[%c0_152, %c0_153] : memref<128x128xbf16, #tpu.memory_space<vmem>>, vector<128x128xbf16>
    %cst_154 = arith.constant dense<0.000000e+00> : vector<8x128xf32>
    %318 = tpu.matmul %305, %317, %cst_154 {dimension_numbers = #tpu.dot_dimension_numbers<[1], [0], [0], [1], [0, 0, 1, 1], [], []>} : vector<8x128xbf16>, vector<128x128xbf16>, vector<8x128xf32> -> vector<8x128xf32>
    %c0_155 = arith.constant 0 : index
    %c0_156 = arith.constant 0 : index
    %319 = vector.load %arg8[%c0_155, %c0_156] : memref<1x128xf32, #tpu.memory_space<vmem>>, vector<1x128xf32>
    %320 = vector.broadcast %319 : vector<1x128xf32> to vector<8x128xf32>
    %321 = arith.addf %318, %320 : vector<8x128xf32>
    %322 = vector.extract_strided_slice %316 {offsets = [0, 0], sizes = [8, 128], strides = [1, 1]} : vector<8x384xf32> to vector<8x128xf32>
    %323 = arith.negf %322 : vector<8x128xf32>
    %324 = math.exp %323 : vector<8x128xf32>
    %cst_157 = arith.constant 1.000000e+00 : f32
    %325 = vector.broadcast %cst_157 : f32 to vector<8x128xf32>
    %326 = arith.addf %325, %324 : vector<8x128xf32>
    %327 = arith.divf %325, %326 : vector<8x128xf32>
    %328 = vector.extract_strided_slice %316 {offsets = [0, 128], sizes = [8, 128], strides = [1, 1]} : vector<8x384xf32> to vector<8x128xf32>
    %329 = arith.negf %328 : vector<8x128xf32>
    %330 = math.exp %329 : vector<8x128xf32>
    %cst_158 = arith.constant 1.000000e+00 : f32
    %331 = vector.broadcast %cst_158 : f32 to vector<8x128xf32>
    %332 = arith.addf %331, %330 : vector<8x128xf32>
    %333 = arith.divf %331, %332 : vector<8x128xf32>
    %334 = vector.extract_strided_slice %316 {offsets = [0, 256], sizes = [8, 128], strides = [1, 1]} : vector<8x384xf32> to vector<8x128xf32>
    %335 = arith.mulf %327, %321 : vector<8x128xf32>
    %336 = arith.addf %334, %335 : vector<8x128xf32>
    %337 = math.tanh %336 : vector<8x128xf32>
    %cst_159 = arith.constant 1.000000e+00 : f32
    %338 = vector.broadcast %cst_159 : f32 to vector<8x128xf32>
    %339 = arith.subf %338, %333 : vector<8x128xf32>
    %340 = arith.mulf %339, %337 : vector<8x128xf32>
    %341 = arith.mulf %333, %299 : vector<8x128xf32>
    %342 = arith.addf %340, %341 : vector<8x128xf32>
    %343 = vector.extract_strided_slice %342 {offsets = [0, 0], sizes = [8, 32], strides = [1, 1]} : vector<8x128xf32> to vector<8x32xf32>
    %344 = arith.index_cast %c7_i32 : i32 to index
    %c0_160 = arith.constant 0 : index
    %c0_161 = arith.constant 0 : index
    %345 = vector.load %arg9[%344, %c0_160, %c0_161] : memref<8x8x32xf32, #tpu.memory_space<vmem>>, vector<1x8x32xf32>
    %346 = vector.shape_cast %345 : vector<1x8x32xf32> to vector<8x32xf32>
    %347 = vector.shape_cast %343 : vector<8x32xf32> to vector<1x8x32xf32>
    tpu.vector_store %arg9[%344, %c0_160, %c0_161], %347 {strides = array<i32>} : memref<8x8x32xf32, #tpu.memory_space<vmem>>, vector<1x8x32xf32>,
    %c8_i32 = arith.constant 8 : i32
    %c0_162 = arith.constant 0 : index
    %c0_163 = arith.constant 0 : index
    %348 = vector.load %arg10[%c0_162, %c0_163] : memref<8x128xf32, #tpu.memory_space<vmem>>, vector<8x128xf32>
    tpu.vector_store %arg10[%c0_162, %c0_163], %342 {strides = array<i32>} : memref<8x128xf32, #tpu.memory_space<vmem>>, vector<8x128xf32>,
    return
  }
  func.func @transform_0(%arg0: i32, %arg1: i32) -> (i32, i32, i32) {
    %c0_i32 = arith.constant 0 : i32
    %c0_i32_0 = arith.constant 0 : i32
    return %arg1, %arg0, %c0_i32 : i32, i32, i32
  }
  func.func @transform_1(%arg0: i32, %arg1: i32) -> (i32, i32) {
    %c0_i32 = arith.constant 0 : i32
    %c0_i32_0 = arith.constant 0 : i32
    return %arg0, %c0_i32 : i32, i32
  }
  func.func @transform_2(%arg0: i32, %arg1: i32) -> (i32, i32) {
    %c0_i32 = arith.constant 0 : i32
    %c0_i32_0 = arith.constant 0 : i32
    %c0_i32_1 = arith.constant 0 : i32
    return %c0_i32, %c0_i32_0 : i32, i32
  }
  func.func @transform_3(%arg0: i32, %arg1: i32) -> (i32, i32) {
    %c0_i32 = arith.constant 0 : i32
    %c0_i32_0 = arith.constant 0 : i32
    %c0_i32_1 = arith.constant 0 : i32
    return %c0_i32, %c0_i32_0 : i32, i32
  }
  func.func @transform_4(%arg0: i32, %arg1: i32) -> (i32, i32) {
    %c0_i32 = arith.constant 0 : i32
    %c0_i32_0 = arith.constant 0 : i32
    %c0_i32_1 = arith.constant 0 : i32
    return %c0_i32, %c0_i32_0 : i32, i32
  }
  func.func @transform_5(%arg0: i32, %arg1: i32) -> (i32, i32) {
    %c0_i32 = arith.constant 0 : i32
    %c0_i32_0 = arith.constant 0 : i32
    %c0_i32_1 = arith.constant 0 : i32
    return %c0_i32, %c0_i32_0 : i32, i32
  }
  func.func @transform_6(%arg0: i32, %arg1: i32) -> (i32, i32) {
    %c0_i32 = arith.constant 0 : i32
    %c0_i32_0 = arith.constant 0 : i32
    %c0_i32_1 = arith.constant 0 : i32
    return %c0_i32, %c0_i32_0 : i32, i32
  }
  func.func @transform_7(%arg0: i32, %arg1: i32) -> (i32, i32, i32) {
    %c0_i32 = arith.constant 0 : i32
    %c0_i32_0 = arith.constant 0 : i32
    return %arg1, %arg0, %c0_i32 : i32, i32, i32
  }
}

</mosaic_0001>

<bundles_post_ra>
// kernel: tpu_custom_call.1
= control target key start
LH: loop header
LB: loop body
LE: loop exit
PB: predicated region body
PF: predicated region fallthrough
CT: control target
= control target key end

     0   :  { %12 = vsyncpa [#allocation4], 0  ;;  %s8038_s0 = inlined_call_operand.hbm [shape: bf16[8,8,128], index: 0, kind: input, shape index: {}]   ;;  %s8039_s1 = inlined_call_operand.hbm [shape: f32[8,128], index: 1, kind: input, shape index: {}]   ;;  %s8040_s2 = inlined_call_operand.hbm [shape: bf16[128,384], index: 2, kind: input, shape index: {}]   ;;  %s8041_s3 = inlined_call_operand.hbm [shape: bf16[128,384], index: 3, kind: input, shape index: {}]   ;;  %s8042_s4 = inlined_call_operand.vmem [shape: f32[1,384], index: 4, kind: input, shape index: {}]   ;;  %s8043_s5 = inlined_call_operand.hbm [shape: bf16[128,128], index: 5, kind: input, shape index: {}]   ;;  %s8044_s6 = inlined_call_operand.vmem [shape: f32[1,128], index: 6, kind: input, shape index: {}]   ;;  %s8045_s7 = inlined_call_operand.hbm [shape: f32[8,8,32], index: 7, kind: output, shape index: {}]  }
   0x1   :  { %13 = vsyncpa [#allocation7], 0 }
   0x2   :  { %14 = vsyncpa [#allocation10], 0 }
   0x3   :  { %15 = vsyncpa [#allocation5], 0  ;;  %s7019_s24 = smov [#allocation6]   ;;  %s6879_s28 = scalar_lea.hbm %s8039_s1, 128 }
   0x4   :  { %s34_s25 = sshll.u32 %s7019_s24, 4  ;;  %p6880_p0 = scmp.ne.s32.totalorder %s8039_s1, %s6879_s28  ;;  %s35_s25 = int_to_ptr.vmem [resolvable:$true] %s34_s25 }
   0x5   :  { %p6883_p1 = scmp.lt.u32.totalorder %s6879_s28, %s8039_s1 }
   0x7   :  { %p6885_p2 = pnand %p6883_p1, %p6880_p0 }
   0x9   :  { %6888 = shalt.err (!%p6885_p2)
}
   0xa   :  { %s6889_s10 = scalar_lea.vmem %s35_s25, 128  ;;  %p6894_p4 = scmp.lt.s32.totalorder %s35_s25, %s35_s25 }
   0xb   :  { %p6890_p3 = scmp.ne.s32.totalorder %s35_s25, %s6889_s10  ;;  %p6895_p5 = scmp.lt.s32.totalorder %s6889_s10, %s6889_s10 }
   0xd   :  { %p6896_p6 = por %p6895_p5, %p6894_p4 }
   0xf   :  { %p6897_p7 = pnand %p6896_p6, %p6890_p3 }
  0x11   :  { %6900 = shalt.err (!%p6897_p7)
}
  0x12   :  { %37 = dma.hbm_to_vmem [thread:$0]  %s8039_s1, 128, %s35_s25, [#allocation7]  }
  0x13   :  { %s7020_s13 = smov [#allocation9]   ;;  %s7021_s15 = smov [#allocation3]  }
  0x14   :  { %s55_s14 = sshll.u32 %s7020_s13, 4  ;;  %s21_s16 = sshll.u32 %s7021_s15, 4  ;;  %s56_s14 = int_to_ptr.vmem [resolvable:$true] %s55_s14  ;;  %s22_s16 = int_to_ptr.vmem [resolvable:$true] %s21_s16 }
  0x15   :  { %s6901_s19 = scalar_lea.hbm %s8041_s3, 3072 }
  0x16   :  { %p6902_p8 = scmp.ne.s32.totalorder %s8041_s3, %s6901_s19  ;;  %p6905_p9 = scmp.lt.u32.totalorder %s6901_s19, %s8041_s3 }
  0x18   :  { %p6907_p10 = pnand %p6905_p9, %p6902_p8 }
  0x1a   :  { %6910 = shalt.err (!%p6907_p10)
}
  0x1b   :  { %s6911_s1 = scalar_lea.vmem %s56_s14, 3072  ;;  %p6916_p12 = scmp.lt.s32.totalorder %s56_s14, %s56_s14 }
  0x1c   :  { %p6912_p11 = scmp.ne.s32.totalorder %s56_s14, %s6911_s1  ;;  %p6917_p13 = scmp.lt.s32.totalorder %s6911_s1, %s6911_s1 }
  0x1e   :  { %p6918_p0 = por %p6917_p13, %p6916_p12 }
  0x20   :  { %p6919_p1 = pnand %p6918_p0, %p6912_p11 }
  0x22   :  { %6922 = shalt.err (!%p6919_p1)
}
  0x23   :  { %s7022_s24 = smov 192   ;;  %s7023_s25 = smov 12  }
  0x24   :  { %61 = dma.hbm_to_vmem [thread:$0]  %s8041_s3, 3072, %s56_s14, [#allocation10], %s7022_s24, %s7022_s24, %s7023_s25  }
  0x25   :  { %s6923_s30 = scalar_lea.hbm %s8038_s0, 512 }
  0x26   :  { %p6924_p2 = scmp.ne.s32.totalorder %s8038_s0, %s6923_s30  ;;  %p6927_p3 = scmp.lt.u32.totalorder %s6923_s30, %s8038_s0 }
  0x28   :  { %p6929_p4 = pnand %p6927_p3, %p6924_p2 }
  0x2a   :  { %6932 = shalt.err (!%p6929_p4)
}
  0x2b   :  { %s6933_s12 = scalar_lea.vmem %s22_s16, 512  ;;  %p6938_p6 = scmp.lt.s32.totalorder %s22_s16, %s22_s16 }
  0x2c   :  { %p6934_p5 = scmp.ne.s32.totalorder %s22_s16, %s6933_s12  ;;  %p6939_p7 = scmp.lt.s32.totalorder %s6933_s12, %s6933_s12 }
  0x2e   :  { %p6940_p8 = por %p6939_p7, %p6938_p6 }
  0x30   :  { %p6941_p9 = pnand %p6940_p8, %p6934_p5 }
  0x32   :  { %6944 = shalt.err (!%p6941_p9)
}
  0x33   :  { %s7024_s3 = smov 64   ;;  %s7025_s13 = smov 4  }
  0x34   :  { %27 = dma.hbm_to_vmem [thread:$0]  %s8038_s0, 512, %s22_s16, [#allocation4], %s7024_s3, %s7024_s3, %s7025_s13  }
  0x35   :  { %s7026_s17 = smov [#allocation8]   ;;  %s7027_s19 = smov [#allocation11]  }
  0x36   :  { %s43_s18 = sshll.u32 %s7026_s17, 4  ;;  %s69_s20 = sshll.u32 %s7027_s19, 4  ;;  %s44_s18 = int_to_ptr.vmem [resolvable:$true] %s43_s18  ;;  %s70_s20 = int_to_ptr.vmem [resolvable:$true] %s69_s20 }
  0x37   :  { %s6945_s23 = scalar_lea.hbm %s8040_s2, 3072 }
  0x38   :  { %p6946_p10 = scmp.ne.s32.totalorder %s8040_s2, %s6945_s23  ;;  %p6949_p11 = scmp.lt.u32.totalorder %s6945_s23, %s8040_s2 }
  0x3a   :  { %p6951_p12 = pnand %p6949_p11, %p6946_p10 }
  0x3c   :  { %6954 = shalt.err (!%p6951_p12)
}
  0x3d   :  { %s6955_s0 = scalar_lea.vmem %s44_s18, 3072  ;;  %p6960_p0 = scmp.lt.s32.totalorder %s44_s18, %s44_s18 }
  0x3e   :  { %p6956_p13 = scmp.ne.s32.totalorder %s44_s18, %s6955_s0  ;;  %p6961_p1 = scmp.lt.s32.totalorder %s6955_s0, %s6955_s0 }
  0x40   :  { %p6962_p2 = por %p6961_p1, %p6960_p0 }
  0x42   :  { %p6963_p3 = pnand %p6962_p2, %p6956_p13 }
  0x44   :  { %6966 = shalt.err (!%p6963_p3)
}
  0x45   :  { %49 = dma.hbm_to_vmem [thread:$0]  %s8040_s2, 3072, %s44_s18, [#allocation7], %s7022_s24, %s7022_s24, %s7023_s25  }
  0x46   :  { %s6967_s9 = scalar_lea.hbm %s8043_s5, 1024 }
  0x47   :  { %p6968_p4 = scmp.ne.s32.totalorder %s8043_s5, %s6967_s9  ;;  %p6971_p5 = scmp.lt.u32.totalorder %s6967_s9, %s8043_s5 }
  0x49   :  { %p6973_p6 = pnand %p6971_p5, %p6968_p4 }
  0x4b   :  { %6976 = shalt.err (!%p6973_p6)
}
  0x4c   :  { %s6977_s15 = scalar_lea.vmem %s70_s20, 1024  ;;  %p6982_p8 = scmp.lt.s32.totalorder %s70_s20, %s70_s20 }
  0x4d   :  { %p6978_p7 = scmp.ne.s32.totalorder %s70_s20, %s6977_s15  ;;  %p6983_p9 = scmp.lt.s32.totalorder %s6977_s15, %s6977_s15 }
  0x4f   :  { %p6984_p10 = por %p6983_p9, %p6982_p8 }
  0x51   :  { %p6985_p11 = pnand %p6984_p10, %p6978_p7 }
  0x53   :  { %6988 = shalt.err (!%p6985_p11)
}
  0x54   :  { %75 = dma.hbm_to_vmem [thread:$0]  %s8043_s5, 1024, %s70_s20, [#allocation10], %s7024_s3, %s7024_s3, %s7025_s13  }
  0x55   :  { %7011 = dma.done.wait [#allocation4], 512  }
  0x56   :  { %7012 = vsyncadd [#allocation4], 4294966784 }
  0x57   :  { %7013 = dma.done.wait [#allocation7], 3200  }
  0x58   :  { %7014 = vsyncadd [#allocation7], 4294964096 }
  0x59   :  { %7015 = dma.done.wait [#allocation10], 4096  }
  0x5a   :  { %7016 = vsyncadd [#allocation10], 4294963200  ;;  %v7028_v0 = vmov 0.0   ;;  %v7029_v1 = vmov 0   ;;  %vm7030_vm0 = vmmov 0   ;;  %v98_v26 = vld [vmem:[#allocation6] sm:$0xff] }
  0x5b   :  { %5904 = vmatprep.subr.bf16.mxu1 %v7028_v0  ;;  %327 = vmatprep.mubr.bf16.mxu0 %v7029_v1  ;;  %v7150_v2 = vld [vmem:[#allocation9 + $0x4] ss:$12 sps:$4 sm:$0xff]   ;;  %v7152_v3 = vld [vmem:[#allocation9] ss:$12 sps:$4 sm:$0xff]   ;;  %v6402_v4 = vld [vmem:[#allocation9 + $0x8] ss:$12 sps:$4 sm:$0xff]   ;;  %v7206_v28 = vpack.c.bf16 %v98_v26, %v98_v26 }
  0x5c   :  { %5920 = vmatprep.mubr.msk.bf16.mxu1 %vm7030_vm0, %v7028_v0  ;;  %295 = vmatprep.subr.bf16.mxu0 %v7150_v2  ;;  %v7156_v5 = vld [vmem:[#allocation9 + $0x1c] ss:$12 sps:$4 sm:$0xff]   ;;  %v7158_v6 = vld [vmem:[#allocation9 + $0x18] ss:$12 sps:$4 sm:$0xff]   ;;  %v6406_v7 = vld [vmem:[#allocation9 + $0x20] ss:$12 sps:$4 sm:$0xff]  }
  0x5d   :  { %296 = vmatpush1.bf16.msra.mxu0 %v7152_v3  ;;  %5905 = vmatpush3.bf16.msra.mxu1 %v6402_v4  ;;  %v7162_v8 = vld [vmem:[#allocation9 + $0x34] ss:$12 sps:$4 sm:$0xff]   ;;  %v7164_v9 = vld [vmem:[#allocation9 + $0x30] ss:$12 sps:$4 sm:$0xff]   ;;  %v6410_v10 = vld [vmem:[#allocation9 + $0x38] ss:$12 sps:$4 sm:$0xff]  }
  0x5e   :  { %297 = vmatprep.subr.bf16.mxu0 %v7156_v5  ;;  %5906 = vmatprep.subr.bf16.mxu1 %v7028_v0  ;;  %v7168_v11 = vld [vmem:[#allocation9 + $0x4c] ss:$12 sps:$4 sm:$0xff]   ;;  %v7172_v12 = vld [vmem:[#allocation9 + $0x48] ss:$12 sps:$4 sm:$0xff]   ;;  %v6414_v13 = vld [vmem:[#allocation9 + $0x50] ss:$12 sps:$4 sm:$0xff]  }
  0x5f   :  { %v7175_v14 = vld [vmem:[#allocation9 + $0x64] ss:$12 sps:$4 sm:$0xff]   ;;  %v7178_v15 = vld [vmem:[#allocation9 + $0x60] ss:$12 sps:$4 sm:$0xff]   ;;  %v6418_v16 = vld [vmem:[#allocation9 + $0x68] ss:$12 sps:$4 sm:$0xff]  }
  0x60   :  { %v7182_v17 = vld [vmem:[#allocation9 + $0x7c] ss:$12 sps:$4 sm:$0xff]   ;;  %v7185_v18 = vld [vmem:[#allocation9 + $0x78] ss:$12 sps:$4 sm:$0xff]   ;;  %v6422_v19 = vld [vmem:[#allocation9 + $0x80] ss:$12 sps:$4 sm:$0xff]  }
  0x61   :  { %298 = vmatpush1.bf16.msra.mxu0 %v7158_v6  ;;  %5907 = vmatpush3.bf16.msra.mxu1 %v6406_v7  ;;  %v7189_v20 = vld [vmem:[#allocation9 + $0x94] ss:$12 sps:$4 sm:$0xff]   ;;  %v7193_v21 = vld [vmem:[#allocation9 + $0x90] ss:$12 sps:$4 sm:$0xff]   ;;  %v6426_v22 = vld [vmem:[#allocation9 + $0x98] ss:$12 sps:$4 sm:$0xff]  }
  0x62   :  { %299 = vmatprep.subr.bf16.mxu0 %v7162_v8  ;;  %5908 = vmatprep.subr.bf16.mxu1 %v7028_v0  ;;  %v7196_v23 = vld [vmem:[#allocation9 + $0xac] ss:$12 sps:$4 sm:$0xff]   ;;  %v7199_v24 = vld [vmem:[#allocation9 + $0xa8] ss:$12 sps:$4 sm:$0xff]   ;;  %v6430_v25 = vld [vmem:[#allocation9 + $0xb0] ss:$12 sps:$4 sm:$0xff]  }
  0x63   :  { %v7203_v27 = vld [vmem:[#allocation8 + $0x4] ss:$12 sps:$4 sm:$0xff]   ;;  %v6431_v29 = vld [vmem:[#allocation8] ss:$12 sps:$4 sm:$0xff]   ;;  %v6434_v30 = vld [vmem:[#allocation8 + $0x8] ss:$12 sps:$4 sm:$0xff]  }
  0x64   :  { %v6437_v31 = vld [vmem:[#allocation8 + $0x1c] ss:$12 sps:$4 sm:$0xff]   ;;  %v6435_v32 = vld [vmem:[#allocation8 + $0x18] ss:$12 sps:$4 sm:$0xff]   ;;  %v6438_v33 = vld [vmem:[#allocation8 + $0x20] ss:$12 sps:$4 sm:$0xff]  }
  0x65   :  { %300 = vmatpush1.bf16.msra.mxu0 %v7164_v9  ;;  %5909 = vmatpush3.bf16.msra.mxu1 %v6410_v10  ;;  %v6441_v34 = vld [vmem:[#allocation8 + $0x34] ss:$12 sps:$4 sm:$0xff]   ;;  %v6439_v35 = vld [vmem:[#allocation8 + $0x30] ss:$12 sps:$4 sm:$0xff]   ;;  %v6442_v36 = vld [vmem:[#allocation8 + $0x38] ss:$12 sps:$4 sm:$0xff]  }
  0x66   :  { %301 = vmatprep.subr.bf16.mxu0 %v7168_v11  ;;  %5910 = vmatprep.subr.bf16.mxu1 %v7028_v0  ;;  %v6445_v37 = vld [vmem:[#allocation8 + $0x4c] ss:$12 sps:$4 sm:$0xff]   ;;  %v6443_v38 = vld [vmem:[#allocation8 + $0x48] ss:$12 sps:$4 sm:$0xff]   ;;  %v6446_v39 = vld [vmem:[#allocation8 + $0x50] ss:$12 sps:$4 sm:$0xff]  }
  0x67   :  { %v6449_v40 = vld [vmem:[#allocation8 + $0x64] ss:$12 sps:$4 sm:$0xff]   ;;  %v6447_v41 = vld [vmem:[#allocation8 + $0x60] ss:$12 sps:$4 sm:$0xff]   ;;  %v6450_v42 = vld [vmem:[#allocation8 + $0x68] ss:$12 sps:$4 sm:$0xff]  }
  0x68   :  { %v6453_v43 = vld [vmem:[#allocation8 + $0x7c] ss:$12 sps:$4 sm:$0xff]   ;;  %v6451_v44 = vld [vmem:[#allocation8 + $0x78] ss:$12 sps:$4 sm:$0xff]   ;;  %v6454_v45 = vld [vmem:[#allocation8 + $0x80] ss:$12 sps:$4 sm:$0xff]  }
  0x69   :  { %302 = vmatpush1.bf16.msra.mxu0 %v7172_v12  ;;  %5911 = vmatpush3.bf16.msra.mxu1 %v6414_v13  ;;  %v6457_v46 = vld [vmem:[#allocation8 + $0x94] ss:$12 sps:$4 sm:$0xff]   ;;  %v6455_v47 = vld [vmem:[#allocation8 + $0x90] ss:$12 sps:$4 sm:$0xff]   ;;  %v6458_v48 = vld [vmem:[#allocation8 + $0x98] ss:$12 sps:$4 sm:$0xff]  }
  0x6a   :  { %303 = vmatprep.subr.bf16.mxu0 %v7175_v14  ;;  %5912 = vmatprep.subr.bf16.mxu1 %v7028_v0  ;;  %v6461_v49 = vld [vmem:[#allocation8 + $0xac] ss:$12 sps:$4 sm:$0xff]   ;;  %v6459_v50 = vld [vmem:[#allocation8 + $0xa8] ss:$12 sps:$4 sm:$0xff]   ;;  %v6462_v51 = vld [vmem:[#allocation8 + $0xb0] ss:$12 sps:$4 sm:$0xff]  }
  0x6b   :  { %v102_v52 = vld [vmem:[#allocation3] sm:$0xf]  ;;  %v6463_v53 = vld [vmem:[#allocation11] sm:$0xff]   ;;  %v6464_v54 = vld [vmem:[#allocation11 + $0x8] sm:$0xff]   ;;  %vm735_vm1 = vcmask 261120  }
  0x6c   :  { %v6465_v55 = vld [vmem:[#allocation11 + $0x10] sm:$0xff]   ;;  %v6466_v56 = vld [vmem:[#allocation11 + $0x18] sm:$0xff]   ;;  %v6467_v57 = vld [vmem:[#allocation11 + $0x20] sm:$0xff]  }
  0x6d   :  { %304 = vmatpush1.bf16.msra.mxu0 %v7178_v15  ;;  %5913 = vmatpush3.bf16.msra.mxu1 %v6418_v16  ;;  %v6468_v58 = vld [vmem:[#allocation11 + $0x28] sm:$0xff]   ;;  %v6469_v59 = vld [vmem:[#allocation11 + $0x30] sm:$0xff]   ;;  %v6470_v60 = vld [vmem:[#allocation11 + $0x38] sm:$0xff]  }
  0x6e   :  { %305 = vmatprep.subr.bf16.mxu0 %v7182_v17  ;;  %5914 = vmatprep.subr.bf16.mxu1 %v7028_v0  ;;  %v6471_v61 = vld [vmem:[#allocation9 + $0x8] ss:$12 sps:$4 sm:$0xff]   ;;  %v6472_v62 = vld [vmem:[#allocation9 + $0x20] ss:$12 sps:$4 sm:$0xff]   ;;  %v6473_v63 = vld [vmem:[#allocation9 + $0x38] ss:$12 sps:$4 sm:$0xff]  }
  0x6f   :  { %v6476_v4 = vld [vmem:[#allocation9 + $0x80] ss:$12 sps:$4 sm:$0xff]  }
  0x71   :  { %306 = vmatpush1.bf16.msra.mxu0 %v7185_v18  ;;  %5915 = vmatpush3.bf16.msra.mxu1 %v6422_v19 }
  0x72   :  { %307 = vmatprep.subr.bf16.mxu0 %v7189_v20  ;;  %5916 = vmatprep.subr.bf16.mxu1 %v7028_v0 }
  0x75   :  { %308 = vmatpush1.bf16.msra.mxu0 %v7193_v21  ;;  %5917 = vmatpush3.bf16.msra.mxu1 %v6426_v22 }
  0x76   :  { %309 = vmatprep.subr.bf16.mxu0 %v7196_v23  ;;  %5918 = vmatprep.subr.bf16.mxu1 %v7028_v0 }
  0x79   :  { %310 = vmatpush1.bf16.msra.mxu0 %v7199_v24  ;;  %5919 = vmatpush3.bf16.msra.mxu1 %v6430_v25 }
  0x7a   :  { %504 = vmatprep.subr.bf16.mxu0 %v7203_v27  ;;  %5924 = vmatprep.subr.bf16.mxu1 %v7028_v0 }
  0x7c   :  { %328 = vmatmul.mubr.bf16.vlgmr.msra.gmra.mrb[0].mxu0 %v7206_v28  ;;  %5921 = vmatmul.mubr.bf16.vlgmr.msra.gmra.mrb[0].mxu1 %v7206_v28 }
  0x7d   :  { %505 = vmatpush1.bf16.msra.mxu0 %v6431_v29  ;;  %5925 = vmatpush3.bf16.msra.mxu1 %v6434_v30 }
  0x7e   :  { %506 = vmatprep.subr.bf16.mxu0 %v6437_v31  ;;  %5926 = vmatprep.subr.bf16.mxu1 %v7028_v0 }
  0x7f   :  { %536 = vmatprep.mubr.bf16.mxu0 %v7029_v1  ;;  %5940 = vmatprep.mubr.msk.bf16.mxu1 %vm7030_vm0, %v7028_v0 }
  0x81   :  { %507 = vmatpush1.bf16.msra.mxu0 %v6435_v32  ;;  %5927 = vmatpush3.bf16.msra.mxu1 %v6438_v33 }
  0x82   :  { %508 = vmatprep.subr.bf16.mxu0 %v6441_v34  ;;  %5928 = vmatprep.subr.bf16.mxu1 %v7028_v0 }
  0x85   :  { %509 = vmatpush1.bf16.msra.mxu0 %v6439_v35  ;;  %5929 = vmatpush3.bf16.msra.mxu1 %v6442_v36 }
  0x86   :  { %510 = vmatprep.subr.bf16.mxu0 %v6445_v37  ;;  %5930 = vmatprep.subr.bf16.mxu1 %v7028_v0 }
  0x89   :  { %511 = vmatpush1.bf16.msra.mxu0 %v6443_v38  ;;  %5931 = vmatpush3.bf16.msra.mxu1 %v6446_v39 }
  0x8a   :  { %512 = vmatprep.subr.bf16.mxu0 %v6449_v40  ;;  %5932 = vmatprep.subr.bf16.mxu1 %v7028_v0 }
  0x8d   :  { %513 = vmatpush1.bf16.msra.mxu0 %v6447_v41  ;;  %5933 = vmatpush3.bf16.msra.mxu1 %v6450_v42  ;;  %v7277_v41 = vld [vmem:[%s8044_s6] ss:$0 sm:$0xff] }
  0x8e   :  { %514 = vmatprep.subr.bf16.mxu0 %v6453_v43  ;;  %5934 = vmatprep.subr.bf16.mxu1 %v7028_v0 }
  0x91   :  { %515 = vmatpush1.bf16.msra.mxu0 %v6451_v44  ;;  %5935 = vmatpush3.bf16.msra.mxu1 %v6454_v45 }
  0x92   :  { %516 = vmatprep.subr.bf16.mxu0 %v6457_v46  ;;  %5936 = vmatprep.subr.bf16.mxu1 %v7028_v0 }
  0x95   :  { %517 = vmatpush1.bf16.msra.mxu0 %v6455_v47  ;;  %5937 = vmatpush3.bf16.msra.mxu1 %v6458_v48 }
  0x96   :  { %518 = vmatprep.subr.bf16.mxu0 %v6461_v49  ;;  %5938 = vmatprep.subr.bf16.mxu1 %v7028_v0 }
  0x99   :  { %519 = vmatpush1.bf16.msra.mxu0 %v6459_v50  ;;  %5939 = vmatpush3.bf16.msra.mxu1 %v6462_v51 }
  0x9a   :  { %5944 = vmatprep.subr.bf16.mxu0 %v7028_v0  ;;  %932 = vmatprep.subr.bf16.mxu1 %v7150_v2  ;;  %v6474_v2 = vld [vmem:[#allocation9 + $0x50] ss:$12 sps:$4 sm:$0xff]  }
  0x9c   :  { %537 = vmatmul.mubr.bf16.vlgmr.msra.gmra.mrb[4].mxu0 %v102_v52  ;;  %5941 = vmatmul.mubr.bf16.vlgmr.msra.gmra.mrb[4].mxu1 %v102_v52 }
  0x9d   :  { %5945 = vmatpush3.bf16.msra.mxu0 %v6463_v53  ;;  %5960 = vmatprep.mubr.msk.bf16.mxu0 %vm7030_vm0, %v7028_v0 }
  0x9e   :  { %5946 = vmatprep.subr.bf16.mxu0 %v7028_v0  ;;  %933 = vmatpush1.bf16.msra.mxu1 %v7152_v3  ;;  %v6475_v3 = vld [vmem:[#allocation9 + $0x68] ss:$12 sps:$4 sm:$0xff]  }
  0x9f   :  { %964 = vmatprep.mubr.bf16.mxu1 %v7029_v1  ;;  %934 = vmatprep.subr.bf16.mxu1 %v7156_v5  ;;  %v6477_v5 = vld [vmem:[#allocation9 + $0x98] ss:$12 sps:$4 sm:$0xff]  }
  0xa1   :  { %5947 = vmatpush3.bf16.msra.mxu0 %v6464_v54 }
  0xa2   :  { %5948 = vmatprep.subr.bf16.mxu0 %v7028_v0  ;;  %935 = vmatpush1.bf16.msra.mxu1 %v7158_v6  ;;  %v6478_v6 = vld [vmem:[#allocation9 + $0xb0] ss:$12 sps:$4 sm:$0xff]  }
  0xa3   :  { %936 = vmatprep.subr.bf16.mxu1 %v7162_v8 }
  0xa5   :  { %5949 = vmatpush3.bf16.msra.mxu0 %v6465_v55 }
  0xa6   :  { %5950 = vmatprep.subr.bf16.mxu0 %v7028_v0  ;;  %937 = vmatpush1.bf16.msra.mxu1 %v7164_v9 }
  0xa7   :  { %938 = vmatprep.subr.bf16.mxu1 %v7168_v11 }
  0xa9   :  { %5951 = vmatpush3.bf16.msra.mxu0 %v6466_v56 }
  0xaa   :  { %5952 = vmatprep.subr.bf16.mxu0 %v7028_v0  ;;  %939 = vmatpush1.bf16.msra.mxu1 %v7172_v12 }
  0xab   :  { %940 = vmatprep.subr.bf16.mxu1 %v7175_v14 }
  0xad   :  { %5953 = vmatpush3.bf16.msra.mxu0 %v6467_v57  ;;  %v6863_v57 = vld [vmem:[#allocation6] sm:$0xff] }
  0xae   :  { %5954 = vmatprep.subr.bf16.mxu0 %v7028_v0  ;;  %941 = vmatpush1.bf16.msra.mxu1 %v7178_v15  ;;  %v587_v15 = vlaneseq }
  0xaf   :  { %942 = vmatprep.subr.bf16.mxu1 %v7182_v17 }
  0xb0   :  { %v588_v16 = vshrl.u32 %v587_v15, 7  ;;  %v6874_v15 = vld [vmem:[#allocation8 + $0x78] ss:$12 sps:$4 sm:$0xff]  }
  0xb1   :  { %5955 = vmatpush3.bf16.msra.mxu0 %v6468_v58 }
  0xb2   :  { %5956 = vmatprep.subr.bf16.mxu0 %v7028_v0  ;;  %943 = vmatpush1.bf16.msra.mxu1 %v7185_v18  ;;  %v7263_v17 = vsub.s32 0, %v588_v16  ;;  %v585_v18 = vld [vmem:[%s8042_s4] sm:$0x7]  ;;  %v7269_v25 = vsub.s32 1, %v588_v16  ;;  %v7272_v39 = vsub.s32 2, %v588_v16 }
  0xb3   :  { %944 = vmatprep.subr.bf16.mxu1 %v7189_v20  ;;  %v6485_v16 = vld [vmem:[#allocation8 + $0x98] ss:$12 sps:$4 sm:$0xff]  }
  0xb4   :  { %v590_v19 = vrot.slane %v585_v18, %v7263_v17  ;;  %v594_v34 = vrot.slane %v585_v18, %v7269_v25  ;;  %v598_v43 = vrot.slane %v585_v18, %v7272_v39  ;;  %v6875_v18 = vld [vmem:[#allocation8 + $0x94] ss:$12 sps:$4 sm:$0xff]  }
  0xb5   :  { %5957 = vmatpush3.bf16.msra.mxu0 %v6469_v59 }
  0xb6   :  { %5958 = vmatprep.subr.bf16.mxu0 %v7028_v0  ;;  %945 = vmatpush1.bf16.msra.mxu1 %v7193_v21 }
  0xb7   :  { %946 = vmatprep.subr.bf16.mxu1 %v7196_v23 }
  0xb9   :  { %5959 = vmatpush3.bf16.msra.mxu0 %v6470_v60  ;;  %v6479_v60 = vld [vmem:[#allocation8 + $0x8] ss:$12 sps:$4 sm:$0xff]  }
  0xba   :  { %5964 = vmatprep.subr.bf16.mxu0 %v7028_v0  ;;  %947 = vmatpush1.bf16.msra.mxu1 %v7199_v24 }
  0xbb   :  { %1141 = vmatprep.subr.bf16.mxu1 %v7203_v27 }
  0xbc   :  { %5961 = vmatmul.mubr.bf16.vlgmr.msra.gmra.mrb[8].mxu0 %v7206_v28 }
  0xbd   :  { %5980 = vmatprep.mubr.msk.bf16.mxu0 %vm7030_vm0, %v7028_v0  ;;  %5965 = vmatpush3.bf16.msra.mxu0 %v6471_v61 }
  0xbe   :  { %5966 = vmatprep.subr.bf16.mxu0 %v7028_v0 }
  0xc1   :  { %5967 = vmatpush3.bf16.msra.mxu0 %v6472_v62  ;;  %v6864_v62 = vld [vmem:[#allocation8] ss:$12 sps:$4 sm:$0xff]  }
  0xc2   :  { %5968 = vmatprep.subr.bf16.mxu0 %v7028_v0 }
  0xc5   :  { %5969 = vmatpush3.bf16.msra.mxu0 %v6473_v63  ;;  %v6480_v63 = vld [vmem:[#allocation8 + $0x20] ss:$12 sps:$4 sm:$0xff]  }
  0xc6   :  { %5970 = vmatprep.subr.bf16.mxu0 %v7028_v0 }
  0xc9   :  { %5971 = vmatpush3.bf16.msra.mxu0 %v6474_v2  ;;  %v6865_v2 = vld [vmem:[#allocation8 + $0x1c] ss:$12 sps:$4 sm:$0xff]  }
  0xca   :  { %5972 = vmatprep.subr.bf16.mxu0 %v7028_v0 }
  0xcd   :  { %5973 = vmatpush3.bf16.msra.mxu0 %v6475_v3  ;;  %v6866_v3 = vld [vmem:[#allocation8 + $0x18] ss:$12 sps:$4 sm:$0xff]  }
  0xce   :  { %5974 = vmatprep.subr.bf16.mxu0 %v7028_v0 }
  0xd1   :  { %5975 = vmatpush3.bf16.msra.mxu0 %v6476_v4  ;;  %v6481_v4 = vld [vmem:[#allocation8 + $0x38] ss:$12 sps:$4 sm:$0xff]  }
  0xd2   :  { %5976 = vmatprep.subr.bf16.mxu0 %v7028_v0 }
  0xd5   :  { %5977 = vmatpush3.bf16.msra.mxu0 %v6477_v5  ;;  %v6867_v5 = vld [vmem:[#allocation8 + $0x34] ss:$12 sps:$4 sm:$0xff]  }
  0xd6   :  { %5978 = vmatprep.subr.bf16.mxu0 %v7028_v0 }
  0xd9   :  { %5979 = vmatpush3.bf16.msra.mxu0 %v6478_v6  ;;  %v6868_v6 = vld [vmem:[#allocation8 + $0x30] ss:$12 sps:$4 sm:$0xff]  }
  0xda   :  { %5984 = vmatprep.subr.bf16.mxu0 %v7028_v0 }
 0x14f   :  { %v329_v7 = vpop.f32.mrb[0].mxu0  ;;  %v370_v9 = vpop.f32.mrb[0].mxu1 }
 0x150   :  { %v331_v8 = vpop.f32.mrb[1].mxu0  ;;  %v5922_v11 = vpop.f32.mrb[1].mxu1 }
 0x151   :  { %v333_v10 = vpop.f32.mrb[2].mxu0  ;;  %v373_v13 = vpop.f32.mrb[2].mxu1  ;;  %v6871_v11 = vld [vmem:[#allocation8 + $0x64] ss:$12 sps:$4 sm:$0xff]  }
 0x152   :  { %v334_v12 = vpop.f32.mrb[3].mxu0  ;;  %v5923_v14 = vpop.f32.mrb[3].mxu1  ;;  %v6483_v10 = vld [vmem:[#allocation8 + $0x68] ss:$12 sps:$4 sm:$0xff]   ;;  %v6484_v13 = vld [vmem:[#allocation8 + $0x80] ss:$12 sps:$4 sm:$0xff]  }
 0x153   :  { %v6872_v12 = vld [vmem:[#allocation8 + $0x60] ss:$12 sps:$4 sm:$0xff]   ;;  %v6873_v14 = vld [vmem:[#allocation8 + $0x7c] ss:$12 sps:$4 sm:$0xff]  }
 0x16f   :  { %v538_v20 = vpop.f32.mrb[4].mxu0  ;;  %v579_v23 = vpop.f32.mrb[4].mxu1 }
 0x170   :  { %v539_v21 = vadd.f32 %v538_v20, %v329_v7  ;;  %v540_v22 = vpop.f32.mrb[5].mxu0  ;;  %v580_v26 = vadd.f32 %v579_v23, %v370_v9  ;;  %v5942_v28 = vpop.f32.mrb[5].mxu1  ;;  %v6482_v7 = vld [vmem:[#allocation8 + $0x50] ss:$12 sps:$4 sm:$0xff]   ;;  %v6870_v9 = vld [vmem:[#allocation8 + $0x48] ss:$12 sps:$4 sm:$0xff]  }
 0x171   :  { %v541_v24 = vadd.f32 %v540_v22, %v331_v8  ;;  %v542_v27 = vpop.f32.mrb[6].mxu0  ;;  %v582_v31 = vpop.f32.mrb[6].mxu1  ;;  %v6869_v8 = vld [vmem:[#allocation8 + $0x4c] ss:$12 sps:$4 sm:$0xff]   ;;  %v6486_v20 = vld [vmem:[#allocation8 + $0xb0] ss:$12 sps:$4 sm:$0xff]  }
 0x172   :  { %v602_v29 = vadd.f32 %v590_v19, %v539_v21  ;;  %v543_v30 = vpop.f32.mrb[7].mxu0  ;;  %v5943_v32 = vpop.f32.mrb[7].mxu1  ;;  %v604_v49 = vadd.f32 %v598_v43, %v580_v26  ;;  %v6876_v19 = vld [vmem:[#allocation8 + $0x90] ss:$12 sps:$4 sm:$0xff]   ;;  %v6877_v21 = vld [vmem:[#allocation8 + $0xac] ss:$12 sps:$4 sm:$0xff]  }
 0x173   :  { %v603_v35 = vadd.f32 %v594_v34, %v541_v24  ;;  %v6878_v22 = vld [vmem:[#allocation8 + $0xa8] ss:$12 sps:$4 sm:$0xff]   ;;  %v739_v23 = vld [vmem:[#allocation3 + $0x4] sm:$0xf]  ;;  %v6487_v24 = vld [vmem:[#allocation11] sm:$0xff]  }
 0x174   :  { %v5273_v33 = vmul.f32 -1.442695, %v602_v29  ;;  %v6488_v26 = vld [vmem:[#allocation11 + $0x8] sm:$0xff]   ;;  %v6489_v27 = vld [vmem:[#allocation11 + $0x10] sm:$0xff]   ;;  %v6490_v28 = vld [vmem:[#allocation11 + $0x18] sm:$0xff]  }
 0x175   :  { %v5274_v36 = vmul.f32 -1.442695, %v603_v35  ;;  %v6491_v29 = vld [vmem:[#allocation11 + $0x20] sm:$0xff]   ;;  %v6492_v30 = vld [vmem:[#allocation11 + $0x28] sm:$0xff]   ;;  %v6493_v31 = vld [vmem:[#allocation11 + $0x30] sm:$0xff]  }
 0x176   :  { %6783 = vpow2.f32 %v5273_v33  ;;  %v6494_v32 = vld [vmem:[#allocation11 + $0x38] sm:$0xff]   ;;  %v7316_v33 = vld [vmem:[#allocation9] ss:$12 sps:$4 sm:$0xff]   ;;  %v7318_v34 = vld [vmem:[#allocation9 + $0x4] ss:$12 sps:$4 sm:$0xff]  }
 0x177   :  { %6785 = vpow2.f32 %v5274_v36  ;;  %v6498_v35 = vld [vmem:[#allocation9 + $0x8] ss:$12 sps:$4 sm:$0xff]   ;;  %v6506_v43 = vld [vmem:[#allocation9 + $0x38] ss:$12 sps:$4 sm:$0xff]  }
 0x178   :  { %v7320_v36 = vld [vmem:[#allocation9 + $0x1c] ss:$12 sps:$4 sm:$0xff]  }
 0x180   :  { %v6784_v37 = vpop.eup %6783 }
 0x181   :  { %v719_v38 = vadd.f32 1.0, %v6784_v37  ;;  %v6786_v40 = vpop.eup %6785  ;;  %v6502_v37 = vld [vmem:[#allocation9 + $0x20] ss:$12 sps:$4 sm:$0xff]  }
 0x182   :  { %v725_v42 = vadd.f32 1.0, %v6786_v40  ;;  %v7328_v40 = vld [vmem:[#allocation9 + $0x34] ss:$12 sps:$4 sm:$0xff]  }
 0x183   :  { %6787 = vrcp.f32 %v719_v38  ;;  %v7324_v38 = vld [vmem:[#allocation9 + $0x18] ss:$12 sps:$4 sm:$0xff]  }
 0x184   :  { %6789 = vrcp.f32 %v725_v42  ;;  %v7331_v42 = vld [vmem:[#allocation9 + $0x30] ss:$12 sps:$4 sm:$0xff]  }
 0x18d   :  { %v6788_v47 = vpop.eup %6787 }
 0x18e   :  { %v6790_v53 = vpop.eup %6789 }
 0x18f   :  { %v710_v44 = vpop.f32.mrb[8].mxu0  ;;  %v731_v54 = vsub.f32 1.0, %v6790_v53  ;;  %v733_v58 = vmul.f32 %v6863_v57, %v6790_v53  ;;  %v7356_v53 = vld [vmem:[#allocation9 + $0x94] ss:$12 sps:$4 sm:$0xff]  }
 0x190   :  { %v711_v45 = vadd.f32 %v7277_v41, %v710_v44  ;;  %v5962_v46 = vpop.f32.mrb[9].mxu0  ;;  %v7336_v44 = vld [vmem:[#allocation9 + $0x4c] ss:$12 sps:$4 sm:$0xff]   ;;  %v7366_v57 = vld [vmem:[#allocation9 + $0xa8] ss:$12 sps:$4 sm:$0xff]  }
 0x191   :  { %v713_v48 = vpop.f32.mrb[10].mxu0  ;;  %v6510_v46 = vld [vmem:[#allocation9 + $0x50] ss:$12 sps:$4 sm:$0xff]  }
 0x192   :  { %v728_v50 = vmul.f32 %v6788_v47, %v711_v45  ;;  %v5963_v51 = vpop.f32.mrb[11].mxu0  ;;  %v7339_v45 = vld [vmem:[#allocation9 + $0x48] ss:$12 sps:$4 sm:$0xff]   ;;  %v7343_v47 = vld [vmem:[#allocation9 + $0x64] ss:$12 sps:$4 sm:$0xff]  }
 0x193   :  { %v7346_v48 = vld [vmem:[#allocation9 + $0x60] ss:$12 sps:$4 sm:$0xff]   ;;  %v7352_v51 = vld [vmem:[#allocation9 + $0x78] ss:$12 sps:$4 sm:$0xff]  }
 0x194   :  { %v729_v52 = vadd.f32 %v728_v50, %v604_v49  ;;  %v6514_v49 = vld [vmem:[#allocation9 + $0x68] ss:$12 sps:$4 sm:$0xff]  }
 0x195   :  { %v7349_v50 = vld [vmem:[#allocation9 + $0x7c] ss:$12 sps:$4 sm:$0xff]  }
 0x196   :  { %6791 = vtanh.f32 %v729_v52  ;;  %v6518_v52 = vld [vmem:[#allocation9 + $0x80] ss:$12 sps:$4 sm:$0xff]  }
 0x1a0   :  { %v6792_v55 = vpop.eup %6791 }
 0x1a1   :  { %v732_v56 = vmul.f32 %v6792_v55, %v731_v54  ;;  %v7359_v54 = vld [vmem:[#allocation9 + $0x90] ss:$12 sps:$4 sm:$0xff]   ;;  %v6522_v55 = vld [vmem:[#allocation9 + $0x98] ss:$12 sps:$4 sm:$0xff]  }
 0x1a3   :  { %v7281_v59 = vadd.f32 %v733_v58, %v732_v56  ;;  %v7363_v56 = vld [vmem:[#allocation9 + $0xac] ss:$12 sps:$4 sm:$0xff]   ;;  %v6526_v58 = vld [vmem:[#allocation9 + $0xb0] ss:$12 sps:$4 sm:$0xff]  }
 0x1a5   :  { %736 = vst.msk [vmem:[#allocation12] sm:$0xff] %vm735_vm1, %v7281_v59  ;;  %v7287_v61 = vpack.c.bf16 %v7281_v59, %v7281_v59 }
 0x1a7   :  { %965 = vmatmul.mubr.bf16.vlgmr.msra.gmra.mrb[8].mxu1 %v7287_v61  ;;  %5981 = vmatmul.mubr.bf16.vlgmr.msra.gmra.mrb[12].mxu0 %v7287_v61 }
 0x1a8   :  { %1142 = vmatpush1.bf16.msra.mxu1 %v6864_v62  ;;  %5985 = vmatpush3.bf16.msra.mxu0 %v6479_v60  ;;  %v7370_v60 = vld [vmem:[#allocation8 + $0x4] ss:$12 sps:$4 sm:$0xff]  }
 0x1a9   :  { %1143 = vmatprep.subr.bf16.mxu1 %v6865_v2  ;;  %5986 = vmatprep.subr.bf16.mxu0 %v7028_v0 }
 0x1aa   :  { %1173 = vmatprep.mubr.bf16.mxu1 %v7029_v1  ;;  %6000 = vmatprep.mubr.msk.bf16.mxu0 %vm7030_vm0, %v7028_v0 }
 0x1ac   :  { %1144 = vmatpush1.bf16.msra.mxu1 %v6866_v3  ;;  %5987 = vmatpush3.bf16.msra.mxu0 %v6480_v63 }
 0x1ad   :  { %1145 = vmatprep.subr.bf16.mxu1 %v6867_v5  ;;  %5988 = vmatprep.subr.bf16.mxu0 %v7028_v0 }
 0x1b0   :  { %1146 = vmatpush1.bf16.msra.mxu1 %v6868_v6  ;;  %5989 = vmatpush3.bf16.msra.mxu0 %v6481_v4 }
 0x1b1   :  { %1147 = vmatprep.subr.bf16.mxu1 %v6869_v8  ;;  %5990 = vmatprep.subr.bf16.mxu0 %v7028_v0 }
 0x1b4   :  { %1148 = vmatpush1.bf16.msra.mxu1 %v6870_v9  ;;  %5991 = vmatpush3.bf16.msra.mxu0 %v6482_v7  ;;  %v1222_v7 = vld [vmem:[%s8042_s4] sm:$0x7] }
 0x1b5   :  { %1149 = vmatprep.subr.bf16.mxu1 %v6871_v11  ;;  %5992 = vmatprep.subr.bf16.mxu0 %v7028_v0  ;;  %v1227_v8 = vrot.slane %v1222_v7, %v7263_v17 }
 0x1b8   :  { %1150 = vmatpush1.bf16.msra.mxu1 %v6872_v12  ;;  %5993 = vmatpush3.bf16.msra.mxu0 %v6483_v10 }
 0x1b9   :  { %1151 = vmatprep.subr.bf16.mxu1 %v6873_v14  ;;  %5994 = vmatprep.subr.bf16.mxu0 %v7028_v0 }
 0x1bc   :  { %1152 = vmatpush1.bf16.msra.mxu1 %v6874_v15  ;;  %5995 = vmatpush3.bf16.msra.mxu0 %v6484_v13 }
 0x1bd   :  { %1153 = vmatprep.subr.bf16.mxu1 %v6875_v18  ;;  %5996 = vmatprep.subr.bf16.mxu0 %v7028_v0 }
 0x1c0   :  { %1154 = vmatpush1.bf16.msra.mxu1 %v6876_v19  ;;  %5997 = vmatpush3.bf16.msra.mxu0 %v6485_v16 }
 0x1c1   :  { %1155 = vmatprep.subr.bf16.mxu1 %v6877_v21  ;;  %5998 = vmatprep.subr.bf16.mxu0 %v7028_v0 }
 0x1c4   :  { %1156 = vmatpush1.bf16.msra.mxu1 %v6878_v22  ;;  %5999 = vmatpush3.bf16.msra.mxu0 %v6486_v20 }
 0x1c5   :  { %6004 = vmatprep.subr.bf16.mxu1 %v7028_v0  ;;  %1569 = vmatprep.subr.bf16.mxu0 %v7318_v34 }
 0x1c7   :  { %1174 = vmatmul.mubr.bf16.vlgmr.msra.gmra.mrb[12].mxu1 %v739_v23  ;;  %6001 = vmatmul.mubr.bf16.vlgmr.msra.gmra.mrb[16].mxu0 %v739_v23  ;;  %v1231_v23 = vrot.slane %v1222_v7, %v7269_v25 }
 0x1c8   :  { %6005 = vmatpush3.bf16.msra.mxu1 %v6487_v24  ;;  %6020 = vmatprep.mubr.msk.bf16.mxu1 %vm7030_vm0, %v7028_v0 }
 0x1c9   :  { %6006 = vmatprep.subr.bf16.mxu1 %v7028_v0  ;;  %1601 = vmatprep.mubr.bf16.mxu0 %v7029_v1 }
 0x1ca   :  { %1570 = vmatpush1.bf16.msra.mxu0 %v7316_v33 }
 0x1cb   :  { %1571 = vmatprep.subr.bf16.mxu0 %v7320_v36 }
 0x1cc   :  { %6007 = vmatpush3.bf16.msra.mxu1 %v6488_v26 }
 0x1cd   :  { %6008 = vmatprep.subr.bf16.mxu1 %v7028_v0 }
 0x1ce   :  { %1572 = vmatpush1.bf16.msra.mxu0 %v7324_v38 }
 0x1cf   :  { %1573 = vmatprep.subr.bf16.mxu0 %v7328_v40 }
 0x1d0   :  { %6009 = vmatpush3.bf16.msra.mxu1 %v6489_v27 }
 0x1d1   :  { %6010 = vmatprep.subr.bf16.mxu1 %v7028_v0 }
 0x1d2   :  { %1574 = vmatpush1.bf16.msra.mxu0 %v7331_v42 }
 0x1d3   :  { %1575 = vmatprep.subr.bf16.mxu0 %v7336_v44 }
 0x1d4   :  { %6011 = vmatpush3.bf16.msra.mxu1 %v6490_v28 }
 0x1d5   :  { %6012 = vmatprep.subr.bf16.mxu1 %v7028_v0 }
 0x1d6   :  { %1576 = vmatpush1.bf16.msra.mxu0 %v7339_v45 }
 0x1d7   :  { %1577 = vmatprep.subr.bf16.mxu0 %v7343_v47 }
 0x1d8   :  { %6013 = vmatpush3.bf16.msra.mxu1 %v6491_v29 }
 0x1d9   :  { %6014 = vmatprep.subr.bf16.mxu1 %v7028_v0 }
 0x1da   :  { %1578 = vmatpush1.bf16.msra.mxu0 %v7346_v48 }
 0x1db   :  { %1579 = vmatprep.subr.bf16.mxu0 %v7349_v50 }
 0x1dc   :  { %6015 = vmatpush3.bf16.msra.mxu1 %v6492_v30  ;;  %v1235_v30 = vrot.slane %v1222_v7, %v7272_v39  ;;  %v7393_v7 = vld [vmem:[#allocation8 + $0x1c] ss:$12 sps:$4 sm:$0xff]  }
 0x1dd   :  { %6016 = vmatprep.subr.bf16.mxu1 %v7028_v0 }
 0x1de   :  { %1580 = vmatpush1.bf16.msra.mxu0 %v7352_v51 }
 0x1df   :  { %1581 = vmatprep.subr.bf16.mxu0 %v7356_v53 }
 0x1e0   :  { %6017 = vmatpush3.bf16.msra.mxu1 %v6493_v31 }
 0x1e1   :  { %6018 = vmatprep.subr.bf16.mxu1 %v7028_v0 }
 0x1e2   :  { %1582 = vmatpush1.bf16.msra.mxu0 %v7359_v54 }
 0x1e3   :  { %1583 = vmatprep.subr.bf16.mxu0 %v7363_v56 }
 0x1e4   :  { %6019 = vmatpush3.bf16.msra.mxu1 %v6494_v32 }
 0x1e5   :  { %6024 = vmatprep.subr.bf16.mxu1 %v7028_v0 }
 0x1e6   :  { %1584 = vmatpush1.bf16.msra.mxu0 %v7366_v57 }
 0x1e7   :  { %6021 = vmatmul.mubr.bf16.vlgmr.msra.gmra.mrb[16].mxu1 %v7287_v61  ;;  %1778 = vmatprep.subr.bf16.mxu0 %v7370_v60 }
 0x1e8   :  { %6040 = vmatprep.mubr.msk.bf16.mxu1 %vm7030_vm0, %v7028_v0  ;;  %6025 = vmatpush3.bf16.msra.mxu1 %v6498_v35 }
 0x1e9   :  { %6026 = vmatprep.subr.bf16.mxu1 %v7028_v0 }
 0x1ec   :  { %6027 = vmatpush3.bf16.msra.mxu1 %v6502_v37 }
 0x1ed   :  { %6028 = vmatprep.subr.bf16.mxu1 %v7028_v0 }
 0x1f0   :  { %6029 = vmatpush3.bf16.msra.mxu1 %v6506_v43 }
 0x1f1   :  { %6030 = vmatprep.subr.bf16.mxu1 %v7028_v0 }
 0x1f4   :  { %6031 = vmatpush3.bf16.msra.mxu1 %v6510_v46 }
 0x1f5   :  { %6032 = vmatprep.subr.bf16.mxu1 %v7028_v0 }
 0x1f8   :  { %6033 = vmatpush3.bf16.msra.mxu1 %v6514_v49 }
 0x1f9   :  { %6034 = vmatprep.subr.bf16.mxu1 %v7028_v0 }
 0x1fc   :  { %6035 = vmatpush3.bf16.msra.mxu1 %v6518_v52 }
 0x1fd   :  { %6036 = vmatprep.subr.bf16.mxu1 %v7028_v0 }
 0x200   :  { %6037 = vmatpush3.bf16.msra.mxu1 %v6522_v55 }
 0x201   :  { %6038 = vmatprep.subr.bf16.mxu1 %v7028_v0 }
 0x204   :  { %6039 = vmatpush3.bf16.msra.mxu1 %v6526_v58 }
 0x205   :  { %6044 = vmatprep.subr.bf16.mxu1 %v7028_v0 }
 0x27a   :  { %v966_v61 = vpop.f32.mrb[8].mxu1  ;;  %v1007_v62 = vpop.f32.mrb[12].mxu0 }
 0x27b   :  { %v968_v63 = vpop.f32.mrb[9].mxu1  ;;  %v5982_v2 = vpop.f32.mrb[13].mxu0 }
 0x27c   :  { %v970_v3 = vpop.f32.mrb[10].mxu1  ;;  %v1010_v4 = vpop.f32.mrb[14].mxu0 }
 0x27d   :  { %v971_v5 = vpop.f32.mrb[11].mxu1  ;;  %v5983_v6 = vpop.f32.mrb[15].mxu0 }
 0x27e   :  { %v7385_v5 = vld [vmem:[#allocation8] ss:$12 sps:$4 sm:$0xff]  }
 0x29a   :  { %v1175_v9 = vpop.f32.mrb[12].mxu1  ;;  %v1216_v10 = vpop.f32.mrb[16].mxu0 }
 0x29b   :  { %v1176_v11 = vadd.f32 %v1175_v9, %v966_v61  ;;  %v1217_v12 = vadd.f32 %v1216_v10, %v1007_v62  ;;  %v1177_v13 = vpop.f32.mrb[13].mxu1  ;;  %v6002_v14 = vpop.f32.mrb[17].mxu0  ;;  %v7402_v9 = vld [vmem:[#allocation8 + $0x34] ss:$12 sps:$4 sm:$0xff]   ;;  %v7408_v10 = vld [vmem:[#allocation8 + $0x30] ss:$12 sps:$4 sm:$0xff]  }
 0x29c   :  { %v1178_v15 = vadd.f32 %v1177_v13, %v968_v63  ;;  %v1179_v16 = vpop.f32.mrb[14].mxu1  ;;  %v1219_v18 = vpop.f32.mrb[18].mxu0  ;;  %v7415_v13 = vld [vmem:[#allocation8 + $0x48] ss:$12 sps:$4 sm:$0xff]   ;;  %v6542_v14 = vld [vmem:[#allocation8 + $0x50] ss:$12 sps:$4 sm:$0xff]  }
 0x29d   :  { %v1239_v19 = vadd.f32 %v1227_v8, %v1176_v11  ;;  %v1180_v20 = vpop.f32.mrb[15].mxu1  ;;  %v6003_v21 = vpop.f32.mrb[19].mxu0  ;;  %v1241_v49 = vadd.f32 %v1235_v30, %v1217_v12  ;;  %v6534_v8 = vld [vmem:[#allocation8 + $0x20] ss:$12 sps:$4 sm:$0xff]   ;;  %v6538_v11 = vld [vmem:[#allocation8 + $0x38] ss:$12 sps:$4 sm:$0xff]  }
 0x29e   :  { %v1240_v24 = vadd.f32 %v1231_v23, %v1178_v15  ;;  %v7412_v12 = vld [vmem:[#allocation8 + $0x4c] ss:$12 sps:$4 sm:$0xff]   ;;  %v7419_v15 = vld [vmem:[#allocation8 + $0x64] ss:$12 sps:$4 sm:$0xff]   ;;  %v6546_v18 = vld [vmem:[#allocation8 + $0x68] ss:$12 sps:$4 sm:$0xff]  }
 0x29f   :  { %v5332_v22 = vmul.f32 -1.442695, %v1239_v19  ;;  %v7422_v16 = vld [vmem:[#allocation8 + $0x60] ss:$12 sps:$4 sm:$0xff]   ;;  %v7426_v19 = vld [vmem:[#allocation8 + $0x7c] ss:$12 sps:$4 sm:$0xff]  }
 0x2a0   :  { %v5333_v26 = vmul.f32 -1.442695, %v1240_v24  ;;  %v7429_v20 = vld [vmem:[#allocation8 + $0x78] ss:$12 sps:$4 sm:$0xff]   ;;  %v6550_v21 = vld [vmem:[#allocation8 + $0x80] ss:$12 sps:$4 sm:$0xff]  }
 0x2a1   :  { %6793 = vpow2.f32 %v5332_v22  ;;  %v7433_v22 = vld [vmem:[#allocation8 + $0x94] ss:$12 sps:$4 sm:$0xff]   ;;  %v7436_v23 = vld [vmem:[#allocation8 + $0x90] ss:$12 sps:$4 sm:$0xff]   ;;  %v6554_v24 = vld [vmem:[#allocation8 + $0x98] ss:$12 sps:$4 sm:$0xff]  }
 0x2a2   :  { %6795 = vpow2.f32 %v5333_v26  ;;  %v7440_v26 = vld [vmem:[#allocation8 + $0xac] ss:$12 sps:$4 sm:$0xff]   ;;  %v6559_v30 = vld [vmem:[#allocation11] sm:$0xff]  }
 0x2ab   :  { %v6794_v27 = vpop.eup %6793 }
 0x2ac   :  { %v1356_v28 = vadd.f32 1.0, %v6794_v27  ;;  %v6796_v29 = vpop.eup %6795  ;;  %v7443_v27 = vld [vmem:[#allocation8 + $0xa8] ss:$12 sps:$4 sm:$0xff]  }
 0x2ad   :  { %v1362_v31 = vadd.f32 1.0, %v6796_v29  ;;  %v1376_v29 = vld [vmem:[#allocation3 + $0x8] sm:$0xf] }
 0x2ae   :  { %6797 = vrcp.f32 %v1356_v28  ;;  %v6558_v28 = vld [vmem:[#allocation8 + $0xb0] ss:$12 sps:$4 sm:$0xff]  }
 0x2af   :  { %6799 = vrcp.f32 %v1362_v31  ;;  %v6560_v31 = vld [vmem:[#allocation11 + $0x8] sm:$0xff]  }
 0x2b8   :  { %v6798_v43 = vpop.eup %6797 }
 0x2b9   :  { %v6800_v61 = vpop.eup %6799 }
 0x2ba   :  { %v1347_v32 = vpop.f32.mrb[16].mxu1  ;;  %v1368_v62 = vsub.f32 1.0, %v6800_v61  ;;  %v1370_v3 = vmul.f32 %v6800_v61, %v7281_v59  ;;  %v7398_v59 = vld [vmem:[#allocation8 + $0x18] ss:$12 sps:$4 sm:$0xff]  }
 0x2bb   :  { %v1348_v35 = vadd.f32 %v7277_v41, %v1347_v32  ;;  %v6022_v37 = vpop.f32.mrb[17].mxu1  ;;  %v6530_v41 = vld [vmem:[#allocation8 + $0x8] ss:$12 sps:$4 sm:$0xff]  }
 0x2bc   :  { %v1350_v46 = vpop.f32.mrb[18].mxu1  ;;  %v6561_v32 = vld [vmem:[#allocation11 + $0x10] sm:$0xff]  }
 0x2bd   :  { %v1365_v52 = vmul.f32 %v6798_v43, %v1348_v35  ;;  %v6023_v55 = vpop.f32.mrb[19].mxu1 }
 0x2bf   :  { %v1366_v58 = vadd.f32 %v1365_v52, %v1241_v49  ;;  %v1859_v49 = vld [vmem:[%s8042_s4] sm:$0x7] }
 0x2c0   :  { %v1864_v52 = vrot.slane %v1859_v49, %v7263_v17 }
 0x2c1   :  { %6801 = vtanh.f32 %v1366_v58 }
 0x2cb   :  { %v6802_v63 = vpop.eup %6801 }
 0x2cc   :  { %v1369_v2 = vmul.f32 %v6802_v63, %v1368_v62 }
 0x2ce   :  { %v7383_v4 = vadd.f32 %v1370_v3, %v1369_v2 }
 0x2d0   :  { %1373 = vst.msk [vmem:[#allocation12 + $0x8] sm:$0xff] %vm735_vm1, %v7383_v4  ;;  %v7391_v6 = vpack.c.bf16 %v7383_v4, %v7383_v4 }
 0x2d2   :  { %1602 = vmatmul.mubr.bf16.vlgmr.msra.gmra.mrb[20].mxu0 %v7391_v6  ;;  %6041 = vmatmul.mubr.bf16.vlgmr.msra.gmra.mrb[20].mxu1 %v7391_v6 }
 0x2d3   :  { %1779 = vmatpush1.bf16.msra.mxu0 %v7385_v5  ;;  %6045 = vmatpush3.bf16.msra.mxu1 %v6530_v41 }
 0x2d4   :  { %1780 = vmatprep.subr.bf16.mxu0 %v7393_v7  ;;  %6046 = vmatprep.subr.bf16.mxu1 %v7028_v0 }
 0x2d5   :  { %1810 = vmatprep.mubr.bf16.mxu0 %v7029_v1  ;;  %6060 = vmatprep.mubr.msk.bf16.mxu1 %vm7030_vm0, %v7028_v0 }
 0x2d7   :  { %1781 = vmatpush1.bf16.msra.mxu0 %v7398_v59  ;;  %6047 = vmatpush3.bf16.msra.mxu1 %v6534_v8 }
 0x2d8   :  { %1782 = vmatprep.subr.bf16.mxu0 %v7402_v9  ;;  %6048 = vmatprep.subr.bf16.mxu1 %v7028_v0 }
 0x2db   :  { %1783 = vmatpush1.bf16.msra.mxu0 %v7408_v10  ;;  %6049 = vmatpush3.bf16.msra.mxu1 %v6538_v11 }
 0x2dc   :  { %1784 = vmatprep.subr.bf16.mxu0 %v7412_v12  ;;  %6050 = vmatprep.subr.bf16.mxu1 %v7028_v0 }
 0x2df   :  { %1785 = vmatpush1.bf16.msra.mxu0 %v7415_v13  ;;  %6051 = vmatpush3.bf16.msra.mxu1 %v6542_v14 }
 0x2e0   :  { %1786 = vmatprep.subr.bf16.mxu0 %v7419_v15  ;;  %6052 = vmatprep.subr.bf16.mxu1 %v7028_v0 }
 0x2e3   :  { %1787 = vmatpush1.bf16.msra.mxu0 %v7422_v16  ;;  %6053 = vmatpush3.bf16.msra.mxu1 %v6546_v18 }
 0x2e4   :  { %1788 = vmatprep.subr.bf16.mxu0 %v7426_v19  ;;  %6054 = vmatprep.subr.bf16.mxu1 %v7028_v0 }
 0x2e7   :  { %1789 = vmatpush1.bf16.msra.mxu0 %v7429_v20  ;;  %6055 = vmatpush3.bf16.msra.mxu1 %v6550_v21  ;;  %v1868_v21 = vrot.slane %v1859_v49, %v7269_v25 }
 0x2e8   :  { %1790 = vmatprep.subr.bf16.mxu0 %v7433_v22  ;;  %6056 = vmatprep.subr.bf16.mxu1 %v7028_v0 }
 0x2eb   :  { %1791 = vmatpush1.bf16.msra.mxu0 %v7436_v23  ;;  %6057 = vmatpush3.bf16.msra.mxu1 %v6554_v24 }
 0x2ec   :  { %1792 = vmatprep.subr.bf16.mxu0 %v7440_v26  ;;  %6058 = vmatprep.subr.bf16.mxu1 %v7028_v0 }
 0x2ef   :  { %1793 = vmatpush1.bf16.msra.mxu0 %v7443_v27  ;;  %6059 = vmatpush3.bf16.msra.mxu1 %v6558_v28 }
 0x2f0   :  { %6064 = vmatprep.subr.bf16.mxu0 %v7028_v0  ;;  %2206 = vmatprep.subr.bf16.mxu1 %v7318_v34  ;;  %v6562_v34 = vld [vmem:[#allocation11 + $0x18] sm:$0xff]  }
 0x2f2   :  { %1811 = vmatmul.mubr.bf16.vlgmr.msra.gmra.mrb[24].mxu0 %v1376_v29  ;;  %6061 = vmatmul.mubr.bf16.vlgmr.msra.gmra.mrb[24].mxu1 %v1376_v29 }
 0x2f3   :  { %6065 = vmatpush3.bf16.msra.mxu0 %v6559_v30  ;;  %6080 = vmatprep.mubr.msk.bf16.mxu0 %vm7030_vm0, %v7028_v0 }
 0x2f4   :  { %6066 = vmatprep.subr.bf16.mxu0 %v7028_v0  ;;  %2207 = vmatpush1.bf16.msra.mxu1 %v7316_v33  ;;  %v6563_v33 = vld [vmem:[#allocation11 + $0x20] sm:$0xff]  }
 0x2f5   :  { %2208 = vmatprep.subr.bf16.mxu1 %v7320_v36  ;;  %2238 = vmatprep.mubr.bf16.mxu1 %v7029_v1  ;;  %v6564_v36 = vld [vmem:[#allocation11 + $0x28] sm:$0xff]  }
 0x2f7   :  { %6067 = vmatpush3.bf16.msra.mxu0 %v6560_v31 }
 0x2f8   :  { %6068 = vmatprep.subr.bf16.mxu0 %v7028_v0  ;;  %2209 = vmatpush1.bf16.msra.mxu1 %v7324_v38  ;;  %v6565_v38 = vld [vmem:[#allocation11 + $0x30] sm:$0xff]  }
 0x2f9   :  { %2210 = vmatprep.subr.bf16.mxu1 %v7328_v40  ;;  %v6566_v40 = vld [vmem:[#allocation11 + $0x38] sm:$0xff]  }
 0x2fb   :  { %6069 = vmatpush3.bf16.msra.mxu0 %v6561_v32  ;;  %v7496_v32 = vld [vmem:[%s8044_s6] ss:$0 sm:$0xff] }
 0x2fc   :  { %6070 = vmatprep.subr.bf16.mxu0 %v7028_v0  ;;  %2211 = vmatpush1.bf16.msra.mxu1 %v7331_v42  ;;  %v6567_v42 = vld [vmem:[#allocation9 + $0x8] ss:$12 sps:$4 sm:$0xff]  }
 0x2fd   :  { %2212 = vmatprep.subr.bf16.mxu1 %v7336_v44  ;;  %v6568_v44 = vld [vmem:[#allocation9 + $0x20] ss:$12 sps:$4 sm:$0xff]  }
 0x2ff   :  { %6071 = vmatpush3.bf16.msra.mxu0 %v6562_v34  ;;  %v1872_v34 = vrot.slane %v1859_v49, %v7272_v39  ;;  %v6594_v49 = vld [vmem:[#allocation9 + $0x8] ss:$12 sps:$4 sm:$0xff]  }
 0x300   :  { %6072 = vmatprep.subr.bf16.mxu0 %v7028_v0  ;;  %2213 = vmatpush1.bf16.msra.mxu1 %v7339_v45  ;;  %v6569_v45 = vld [vmem:[#allocation9 + $0x38] ss:$12 sps:$4 sm:$0xff]  }
 0x301   :  { %2214 = vmatprep.subr.bf16.mxu1 %v7343_v47  ;;  %v6570_v47 = vld [vmem:[#allocation9 + $0x50] ss:$12 sps:$4 sm:$0xff]  }
 0x303   :  { %6073 = vmatpush3.bf16.msra.mxu0 %v6563_v33 }
 0x304   :  { %6074 = vmatprep.subr.bf16.mxu0 %v7028_v0  ;;  %2215 = vmatpush1.bf16.msra.mxu1 %v7346_v48  ;;  %v6571_v48 = vld [vmem:[#allocation9 + $0x68] ss:$12 sps:$4 sm:$0xff]  }
 0x305   :  { %2216 = vmatprep.subr.bf16.mxu1 %v7349_v50  ;;  %v6572_v50 = vld [vmem:[#allocation9 + $0x80] ss:$12 sps:$4 sm:$0xff]  }
 0x307   :  { %6075 = vmatpush3.bf16.msra.mxu0 %v6564_v36 }
 0x308   :  { %6076 = vmatprep.subr.bf16.mxu0 %v7028_v0  ;;  %2217 = vmatpush1.bf16.msra.mxu1 %v7352_v51  ;;  %v6573_v51 = vld [vmem:[#allocation9 + $0x98] ss:$12 sps:$4 sm:$0xff]  }
 0x309   :  { %2218 = vmatprep.subr.bf16.mxu1 %v7356_v53  ;;  %v6574_v53 = vld [vmem:[#allocation9 + $0xb0] ss:$12 sps:$4 sm:$0xff]  }
 0x30b   :  { %6077 = vmatpush3.bf16.msra.mxu0 %v6565_v38 }
 0x30c   :  { %6078 = vmatprep.subr.bf16.mxu0 %v7028_v0  ;;  %2219 = vmatpush1.bf16.msra.mxu1 %v7359_v54 }
 0x30d   :  { %2220 = vmatprep.subr.bf16.mxu1 %v7363_v56 }
 0x30f   :  { %6079 = vmatpush3.bf16.msra.mxu0 %v6566_v40 }
 0x310   :  { %6084 = vmatprep.subr.bf16.mxu0 %v7028_v0  ;;  %2221 = vmatpush1.bf16.msra.mxu1 %v7366_v57 }
 0x311   :  { %2415 = vmatprep.subr.bf16.mxu1 %v7370_v60 }
 0x312   :  { %6081 = vmatmul.mubr.bf16.vlgmr.msra.gmra.mrb[28].mxu0 %v7391_v6 }
 0x313   :  { %6100 = vmatprep.mubr.msk.bf16.mxu0 %vm7030_vm0, %v7028_v0  ;;  %6085 = vmatpush3.bf16.msra.mxu0 %v6567_v42 }
 0x314   :  { %6086 = vmatprep.subr.bf16.mxu0 %v7028_v0 }
 0x317   :  { %6087 = vmatpush3.bf16.msra.mxu0 %v6568_v44 }
 0x318   :  { %6088 = vmatprep.subr.bf16.mxu0 %v7028_v0 }
 0x31b   :  { %6089 = vmatpush3.bf16.msra.mxu0 %v6569_v45 }
 0x31c   :  { %6090 = vmatprep.subr.bf16.mxu0 %v7028_v0 }
 0x31f   :  { %6091 = vmatpush3.bf16.msra.mxu0 %v6570_v47 }
 0x320   :  { %6092 = vmatprep.subr.bf16.mxu0 %v7028_v0 }
 0x323   :  { %6093 = vmatpush3.bf16.msra.mxu0 %v6571_v48 }
 0x324   :  { %6094 = vmatprep.subr.bf16.mxu0 %v7028_v0 }
 0x327   :  { %6095 = vmatpush3.bf16.msra.mxu0 %v6572_v50 }
 0x328   :  { %6096 = vmatprep.subr.bf16.mxu0 %v7028_v0 }
 0x32b   :  { %6097 = vmatpush3.bf16.msra.mxu0 %v6573_v51 }
 0x32c   :  { %6098 = vmatprep.subr.bf16.mxu0 %v7028_v0 }
 0x32f   :  { %6099 = vmatpush3.bf16.msra.mxu0 %v6574_v53 }
 0x330   :  { %6104 = vmatprep.subr.bf16.mxu0 %v7028_v0 }
 0x3a5   :  { %v1603_v54 = vpop.f32.mrb[20].mxu0  ;;  %v1644_v56 = vpop.f32.mrb[20].mxu1 }
 0x3a6   :  { %v1605_v57 = vpop.f32.mrb[21].mxu0  ;;  %v6042_v60 = vpop.f32.mrb[21].mxu1 }
 0x3a7   :  { %v1607_v35 = vpop.f32.mrb[22].mxu0  ;;  %v1647_v37 = vpop.f32.mrb[22].mxu1 }
 0x3a8   :  { %v1608_v43 = vpop.f32.mrb[23].mxu0  ;;  %v6043_v46 = vpop.f32.mrb[23].mxu1  ;;  %v6575_v35 = vld [vmem:[#allocation8 + $0x8] ss:$12 sps:$4 sm:$0xff]  }
 0x3a9   :  { %v6576_v43 = vld [vmem:[#allocation8 + $0x20] ss:$12 sps:$4 sm:$0xff]   ;;  %v7553_v46 = vld [vmem:[#allocation9 + $0x4] ss:$12 sps:$4 sm:$0xff]  }
 0x3c5   :  { %v1812_v55 = vpop.f32.mrb[24].mxu0  ;;  %v1853_v58 = vpop.f32.mrb[24].mxu1 }
 0x3c6   :  { %v1813_v61 = vadd.f32 %v1812_v55, %v1603_v54  ;;  %v1854_v62 = vadd.f32 %v1853_v58, %v1644_v56  ;;  %v1814_v63 = vpop.f32.mrb[25].mxu0  ;;  %v6062_v2 = vpop.f32.mrb[25].mxu1  ;;  %v6598_v55 = vld [vmem:[#allocation9 + $0x20] ss:$12 sps:$4 sm:$0xff]   ;;  %v7559_v58 = vld [vmem:[#allocation9 + $0x18] ss:$12 sps:$4 sm:$0xff]  }
 0x3c7   :  { %v1815_v3 = vadd.f32 %v1814_v63, %v1605_v57  ;;  %v1816_v41 = vpop.f32.mrb[26].mxu0  ;;  %v1856_v6 = vpop.f32.mrb[26].mxu1  ;;  %v6602_v63 = vld [vmem:[#allocation9 + $0x38] ss:$12 sps:$4 sm:$0xff]  }
 0x3c8   :  { %v1876_v8 = vadd.f32 %v1864_v52, %v1813_v61  ;;  %v1817_v11 = vpop.f32.mrb[27].mxu0  ;;  %v6063_v14 = vpop.f32.mrb[27].mxu1  ;;  %v1878_v45 = vadd.f32 %v1872_v34, %v1854_v62  ;;  %v7555_v52 = vld [vmem:[#allocation9 + $0x1c] ss:$12 sps:$4 sm:$0xff]   ;;  %v7563_v61 = vld [vmem:[#allocation9 + $0x34] ss:$12 sps:$4 sm:$0xff]  }
 0x3c9   :  { %v1877_v24 = vadd.f32 %v1868_v21, %v1815_v3  ;;  %v7566_v62 = vld [vmem:[#allocation9 + $0x30] ss:$12 sps:$4 sm:$0xff]   ;;  %v7571_v2 = vld [vmem:[#allocation9 + $0x4c] ss:$12 sps:$4 sm:$0xff]   ;;  %v7574_v3 = vld [vmem:[#allocation9 + $0x48] ss:$12 sps:$4 sm:$0xff]  }
 0x3ca   :  { %v5391_v18 = vmul.f32 -1.442695, %v1876_v8  ;;  %v6606_v41 = vld [vmem:[#allocation9 + $0x50] ss:$12 sps:$4 sm:$0xff]   ;;  %v7581_v8 = vld [vmem:[#allocation9 + $0x60] ss:$12 sps:$4 sm:$0xff]  }
 0x3cb   :  { %v5392_v28 = vmul.f32 -1.442695, %v1877_v24  ;;  %v7578_v6 = vld [vmem:[#allocation9 + $0x64] ss:$12 sps:$4 sm:$0xff]   ;;  %v6610_v11 = vld [vmem:[#allocation9 + $0x68] ss:$12 sps:$4 sm:$0xff]  }
 0x3cc   :  { %6803 = vpow2.f32 %v5391_v18  ;;  %v7584_v14 = vld [vmem:[#allocation9 + $0x7c] ss:$12 sps:$4 sm:$0xff]   ;;  %v7587_v18 = vld [vmem:[#allocation9 + $0x78] ss:$12 sps:$4 sm:$0xff]   ;;  %v6614_v21 = vld [vmem:[#allocation9 + $0x80] ss:$12 sps:$4 sm:$0xff]  }
 0x3cd   :  { %6805 = vpow2.f32 %v5392_v28  ;;  %v7591_v24 = vld [vmem:[#allocation9 + $0x94] ss:$12 sps:$4 sm:$0xff]   ;;  %v7594_v28 = vld [vmem:[#allocation9 + $0x90] ss:$12 sps:$4 sm:$0xff]  }
 0x3ce   :  { %v6622_v34 = vld [vmem:[#allocation9 + $0xb0] ss:$12 sps:$4 sm:$0xff]  }
 0x3d6   :  { %v6804_v29 = vpop.eup %6803 }
 0x3d7   :  { %v1993_v30 = vadd.f32 1.0, %v6804_v29  ;;  %v6806_v31 = vpop.eup %6805  ;;  %v6618_v29 = vld [vmem:[#allocation9 + $0x98] ss:$12 sps:$4 sm:$0xff]  }
 0x3d8   :  { %v1999_v33 = vadd.f32 1.0, %v6806_v31  ;;  %v7601_v31 = vld [vmem:[#allocation9 + $0xa8] ss:$12 sps:$4 sm:$0xff]  }
 0x3d9   :  { %6807 = vrcp.f32 %v1993_v30  ;;  %v7598_v30 = vld [vmem:[#allocation9 + $0xac] ss:$12 sps:$4 sm:$0xff]  }
 0x3da   :  { %6809 = vrcp.f32 %v1999_v33  ;;  %v7605_v33 = vld [vmem:[#allocation8 + $0x4] ss:$12 sps:$4 sm:$0xff]  }
 0x3e3   :  { %v6808_v42 = vpop.eup %6807 }
 0x3e4   :  { %v6810_v51 = vpop.eup %6809 }
 0x3e5   :  { %v1984_v36 = vpop.f32.mrb[28].mxu0  ;;  %v2005_v53 = vsub.f32 1.0, %v6810_v51  ;;  %v2007_v57 = vmul.f32 %v6810_v51, %v7383_v4  ;;  %v6577_v4 = vld [vmem:[#allocation8 + $0x38] ss:$12 sps:$4 sm:$0xff]  }
 0x3e6   :  { %v1985_v38 = vadd.f32 %v7496_v32, %v1984_v36  ;;  %v6082_v40 = vpop.f32.mrb[29].mxu0 }
 0x3e7   :  { %v1987_v44 = vpop.f32.mrb[30].mxu0 }
 0x3e8   :  { %v2002_v47 = vmul.f32 %v6808_v42, %v1985_v38  ;;  %v6083_v48 = vpop.f32.mrb[31].mxu0 }
 0x3ea   :  { %v2003_v50 = vadd.f32 %v2002_v47, %v1878_v45 }
 0x3ec   :  { %6811 = vtanh.f32 %v2003_v50  ;;  %v2496_v50 = vld [vmem:[%s8042_s4] sm:$0x7] }
 0x3ed   :  { %v2501_v51 = vrot.slane %v2496_v50, %v7263_v17 }
 0x3f6   :  { %v6812_v54 = vpop.eup %6811 }
 0x3f7   :  { %v2006_v56 = vmul.f32 %v6812_v54, %v2005_v53 }
 0x3f9   :  { %v7501_v60 = vadd.f32 %v2007_v57, %v2006_v56 }
 0x3fb   :  { %2010 = vst.msk [vmem:[#allocation12 + $0x10] sm:$0xff] %vm735_vm1, %v7501_v60  ;;  %v7507_v37 = vpack.c.bf16 %v7501_v60, %v7501_v60 }
 0x3fd   :  { %2239 = vmatmul.mubr.bf16.vlgmr.msra.gmra.mrb[28].mxu1 %v7507_v37  ;;  %6101 = vmatmul.mubr.bf16.vlgmr.msra.gmra.mrb[32].mxu0 %v7507_v37 }
 0x3fe   :  { %2416 = vmatpush1.bf16.msra.mxu1 %v7385_v5  ;;  %6105 = vmatpush3.bf16.msra.mxu0 %v6575_v35  ;;  %v6578_v5 = vld [vmem:[#allocation8 + $0x50] ss:$12 sps:$4 sm:$0xff]  }
 0x3ff   :  { %2417 = vmatprep.subr.bf16.mxu1 %v7393_v7  ;;  %6106 = vmatprep.subr.bf16.mxu0 %v7028_v0  ;;  %v6579_v7 = vld [vmem:[#allocation8 + $0x68] ss:$12 sps:$4 sm:$0xff]  }
 0x400   :  { %2447 = vmatprep.mubr.bf16.mxu1 %v7029_v1  ;;  %6120 = vmatprep.mubr.msk.bf16.mxu0 %vm7030_vm0, %v7028_v0 }
 0x402   :  { %2418 = vmatpush1.bf16.msra.mxu1 %v7398_v59  ;;  %6107 = vmatpush3.bf16.msra.mxu0 %v6576_v43  ;;  %v6580_v59 = vld [vmem:[#allocation8 + $0x80] ss:$12 sps:$4 sm:$0xff]  }
 0x403   :  { %2419 = vmatprep.subr.bf16.mxu1 %v7402_v9  ;;  %6108 = vmatprep.subr.bf16.mxu0 %v7028_v0  ;;  %v6581_v9 = vld [vmem:[#allocation8 + $0x98] ss:$12 sps:$4 sm:$0xff]  }
 0x406   :  { %2420 = vmatpush1.bf16.msra.mxu1 %v7408_v10  ;;  %6109 = vmatpush3.bf16.msra.mxu0 %v6577_v4  ;;  %v6582_v10 = vld [vmem:[#allocation8 + $0xb0] ss:$12 sps:$4 sm:$0xff]  }
 0x407   :  { %2421 = vmatprep.subr.bf16.mxu1 %v7412_v12  ;;  %6110 = vmatprep.subr.bf16.mxu0 %v7028_v0  ;;  %v2013_v12 = vld [vmem:[#allocation3 + $0xc] sm:$0xf] }
 0x40a   :  { %2422 = vmatpush1.bf16.msra.mxu1 %v7415_v13  ;;  %6111 = vmatpush3.bf16.msra.mxu0 %v6578_v5  ;;  %v6583_v13 = vld [vmem:[#allocation11] sm:$0xff]  }
 0x40b   :  { %2423 = vmatprep.subr.bf16.mxu1 %v7419_v15  ;;  %6112 = vmatprep.subr.bf16.mxu0 %v7028_v0  ;;  %v6584_v15 = vld [vmem:[#allocation11 + $0x8] sm:$0xff]  }
 0x40e   :  { %2424 = vmatpush1.bf16.msra.mxu1 %v7422_v16  ;;  %6113 = vmatpush3.bf16.msra.mxu0 %v6579_v7  ;;  %v6585_v16 = vld [vmem:[#allocation11 + $0x10] sm:$0xff]  }
 0x40f   :  { %2425 = vmatprep.subr.bf16.mxu1 %v7426_v19  ;;  %6114 = vmatprep.subr.bf16.mxu0 %v7028_v0  ;;  %v6586_v19 = vld [vmem:[#allocation11 + $0x18] sm:$0xff]  }
 0x412   :  { %2426 = vmatpush1.bf16.msra.mxu1 %v7429_v20  ;;  %6115 = vmatpush3.bf16.msra.mxu0 %v6580_v59  ;;  %v6587_v20 = vld [vmem:[#allocation11 + $0x20] sm:$0xff]  }
 0x413   :  { %2427 = vmatprep.subr.bf16.mxu1 %v7433_v22  ;;  %6116 = vmatprep.subr.bf16.mxu0 %v7028_v0  ;;  %v6588_v22 = vld [vmem:[#allocation11 + $0x28] sm:$0xff]  }
 0x416   :  { %2428 = vmatpush1.bf16.msra.mxu1 %v7436_v23  ;;  %6117 = vmatpush3.bf16.msra.mxu0 %v6581_v9  ;;  %v6589_v23 = vld [vmem:[#allocation11 + $0x30] sm:$0xff]  }
 0x417   :  { %2429 = vmatprep.subr.bf16.mxu1 %v7440_v26  ;;  %6118 = vmatprep.subr.bf16.mxu0 %v7028_v0  ;;  %v6590_v26 = vld [vmem:[#allocation11 + $0x38] sm:$0xff]  }
 0x41a   :  { %2430 = vmatpush1.bf16.msra.mxu1 %v7443_v27  ;;  %6119 = vmatpush3.bf16.msra.mxu0 %v6582_v10  ;;  %v7551_v27 = vld [vmem:[#allocation9] ss:$12 sps:$4 sm:$0xff]  }
 0x41b   :  { %6124 = vmatprep.subr.bf16.mxu1 %v7028_v0  ;;  %2843 = vmatprep.subr.bf16.mxu0 %v7553_v46 }
 0x41d   :  { %2448 = vmatmul.mubr.bf16.vlgmr.msra.gmra.mrb[32].mxu1 %v2013_v12  ;;  %6121 = vmatmul.mubr.bf16.vlgmr.msra.gmra.mrb[36].mxu0 %v2013_v12  ;;  %v2505_v12 = vrot.slane %v2496_v50, %v7269_v25 }
 0x41e   :  { %6125 = vmatpush3.bf16.msra.mxu1 %v6583_v13  ;;  %6140 = vmatprep.mubr.msk.bf16.mxu1 %vm7030_vm0, %v7028_v0 }
 0x41f   :  { %6126 = vmatprep.subr.bf16.mxu1 %v7028_v0  ;;  %2875 = vmatprep.mubr.bf16.mxu0 %v7029_v1 }
 0x420   :  { %2844 = vmatpush1.bf16.msra.mxu0 %v7551_v27 }
 0x421   :  { %2845 = vmatprep.subr.bf16.mxu0 %v7555_v52 }
 0x422   :  { %6127 = vmatpush3.bf16.msra.mxu1 %v6584_v15 }
 0x423   :  { %6128 = vmatprep.subr.bf16.mxu1 %v7028_v0 }
 0x424   :  { %2846 = vmatpush1.bf16.msra.mxu0 %v7559_v58 }
 0x425   :  { %2847 = vmatprep.subr.bf16.mxu0 %v7563_v61 }
 0x426   :  { %6129 = vmatpush3.bf16.msra.mxu1 %v6585_v16 }
 0x427   :  { %6130 = vmatprep.subr.bf16.mxu1 %v7028_v0 }
 0x428   :  { %2848 = vmatpush1.bf16.msra.mxu0 %v7566_v62 }
 0x429   :  { %2849 = vmatprep.subr.bf16.mxu0 %v7571_v2 }
 0x42a   :  { %6131 = vmatpush3.bf16.msra.mxu1 %v6586_v19 }
 0x42b   :  { %6132 = vmatprep.subr.bf16.mxu1 %v7028_v0 }
 0x42c   :  { %2850 = vmatpush1.bf16.msra.mxu0 %v7574_v3 }
 0x42d   :  { %2851 = vmatprep.subr.bf16.mxu0 %v7578_v6 }
 0x42e   :  { %6133 = vmatpush3.bf16.msra.mxu1 %v6587_v20 }
 0x42f   :  { %6134 = vmatprep.subr.bf16.mxu1 %v7028_v0 }
 0x430   :  { %2852 = vmatpush1.bf16.msra.mxu0 %v7581_v8 }
 0x431   :  { %2853 = vmatprep.subr.bf16.mxu0 %v7584_v14 }
 0x432   :  { %6135 = vmatpush3.bf16.msra.mxu1 %v6588_v22  ;;  %v2509_v22 = vrot.slane %v2496_v50, %v7272_v39  ;;  %v7628_v50 = vld [vmem:[#allocation8 + $0x1c] ss:$12 sps:$4 sm:$0xff]  }
 0x433   :  { %6136 = vmatprep.subr.bf16.mxu1 %v7028_v0 }
 0x434   :  { %2854 = vmatpush1.bf16.msra.mxu0 %v7587_v18 }
 0x435   :  { %2855 = vmatprep.subr.bf16.mxu0 %v7591_v24 }
 0x436   :  { %6137 = vmatpush3.bf16.msra.mxu1 %v6589_v23 }
 0x437   :  { %6138 = vmatprep.subr.bf16.mxu1 %v7028_v0 }
 0x438   :  { %2856 = vmatpush1.bf16.msra.mxu0 %v7594_v28 }
 0x439   :  { %2857 = vmatprep.subr.bf16.mxu0 %v7598_v30 }
 0x43a   :  { %6139 = vmatpush3.bf16.msra.mxu1 %v6590_v26 }
 0x43b   :  { %6144 = vmatprep.subr.bf16.mxu1 %v7028_v0 }
 0x43c   :  { %2858 = vmatpush1.bf16.msra.mxu0 %v7601_v31 }
 0x43d   :  { %6141 = vmatmul.mubr.bf16.vlgmr.msra.gmra.mrb[36].mxu1 %v7507_v37  ;;  %3052 = vmatprep.subr.bf16.mxu0 %v7605_v33 }
 0x43e   :  { %6160 = vmatprep.mubr.msk.bf16.mxu1 %vm7030_vm0, %v7028_v0  ;;  %6145 = vmatpush3.bf16.msra.mxu1 %v6594_v49 }
 0x43f   :  { %6146 = vmatprep.subr.bf16.mxu1 %v7028_v0 }
 0x442   :  { %6147 = vmatpush3.bf16.msra.mxu1 %v6598_v55 }
 0x443   :  { %6148 = vmatprep.subr.bf16.mxu1 %v7028_v0 }
 0x446   :  { %6149 = vmatpush3.bf16.msra.mxu1 %v6602_v63 }
 0x447   :  { %6150 = vmatprep.subr.bf16.mxu1 %v7028_v0 }
 0x44a   :  { %6151 = vmatpush3.bf16.msra.mxu1 %v6606_v41 }
 0x44b   :  { %6152 = vmatprep.subr.bf16.mxu1 %v7028_v0 }
 0x44e   :  { %6153 = vmatpush3.bf16.msra.mxu1 %v6610_v11 }
 0x44f   :  { %6154 = vmatprep.subr.bf16.mxu1 %v7028_v0 }
 0x452   :  { %6155 = vmatpush3.bf16.msra.mxu1 %v6614_v21 }
 0x453   :  { %6156 = vmatprep.subr.bf16.mxu1 %v7028_v0 }
 0x456   :  { %6157 = vmatpush3.bf16.msra.mxu1 %v6618_v29 }
 0x457   :  { %6158 = vmatprep.subr.bf16.mxu1 %v7028_v0 }
 0x45a   :  { %6159 = vmatpush3.bf16.msra.mxu1 %v6622_v34 }
 0x45b   :  { %6164 = vmatprep.subr.bf16.mxu1 %v7028_v0 }
 0x4d0   :  { %v2240_v36 = vpop.f32.mrb[28].mxu1  ;;  %v2281_v38 = vpop.f32.mrb[32].mxu0 }
 0x4d1   :  { %v2242_v40 = vpop.f32.mrb[29].mxu1  ;;  %v6102_v42 = vpop.f32.mrb[33].mxu0 }
 0x4d2   :  { %v2244_v44 = vpop.f32.mrb[30].mxu1  ;;  %v2284_v45 = vpop.f32.mrb[34].mxu0 }
 0x4d3   :  { %v2245_v47 = vpop.f32.mrb[31].mxu1  ;;  %v6103_v48 = vpop.f32.mrb[35].mxu0 }
 0x4d4   :  { %v7620_v47 = vld [vmem:[#allocation8] ss:$12 sps:$4 sm:$0xff]  }
 0x4f0   :  { %v2449_v53 = vpop.f32.mrb[32].mxu1  ;;  %v2490_v54 = vpop.f32.mrb[36].mxu0 }
 0x4f1   :  { %v2450_v56 = vadd.f32 %v2449_v53, %v2240_v36  ;;  %v2491_v57 = vadd.f32 %v2490_v54, %v2281_v38  ;;  %v2451_v35 = vpop.f32.mrb[33].mxu1  ;;  %v6122_v37 = vpop.f32.mrb[37].mxu0  ;;  %v7637_v53 = vld [vmem:[#allocation8 + $0x34] ss:$12 sps:$4 sm:$0xff]   ;;  %v7643_v54 = vld [vmem:[#allocation8 + $0x30] ss:$12 sps:$4 sm:$0xff]  }
 0x4f2   :  { %v2452_v43 = vadd.f32 %v2451_v35, %v2242_v40  ;;  %v2453_v4 = vpop.f32.mrb[34].mxu1  ;;  %v2493_v5 = vpop.f32.mrb[38].mxu0  ;;  %v7650_v35 = vld [vmem:[#allocation8 + $0x48] ss:$12 sps:$4 sm:$0xff]   ;;  %v6638_v37 = vld [vmem:[#allocation8 + $0x50] ss:$12 sps:$4 sm:$0xff]  }
 0x4f3   :  { %v2513_v7 = vadd.f32 %v2501_v51, %v2450_v56  ;;  %v2454_v59 = vpop.f32.mrb[35].mxu1  ;;  %v6123_v9 = vpop.f32.mrb[39].mxu0  ;;  %v2515_v11 = vadd.f32 %v2509_v22, %v2491_v57  ;;  %v6630_v51 = vld [vmem:[#allocation8 + $0x20] ss:$12 sps:$4 sm:$0xff]   ;;  %v6634_v56 = vld [vmem:[#allocation8 + $0x38] ss:$12 sps:$4 sm:$0xff]  }
 0x4f4   :  { %v2514_v13 = vadd.f32 %v2505_v12, %v2452_v43  ;;  %v7647_v57 = vld [vmem:[#allocation8 + $0x4c] ss:$12 sps:$4 sm:$0xff]   ;;  %v7654_v43 = vld [vmem:[#allocation8 + $0x64] ss:$12 sps:$4 sm:$0xff]   ;;  %v6642_v5 = vld [vmem:[#allocation8 + $0x68] ss:$12 sps:$4 sm:$0xff]  }
 0x4f5   :  { %v5450_v10 = vmul.f32 -1.442695, %v2513_v7  ;;  %v7657_v4 = vld [vmem:[#allocation8 + $0x60] ss:$12 sps:$4 sm:$0xff]   ;;  %v7661_v7 = vld [vmem:[#allocation8 + $0x7c] ss:$12 sps:$4 sm:$0xff]  }
 0x4f6   :  { %v5451_v15 = vmul.f32 -1.442695, %v2514_v13  ;;  %v7664_v59 = vld [vmem:[#allocation8 + $0x78] ss:$12 sps:$4 sm:$0xff]   ;;  %v6646_v9 = vld [vmem:[#allocation8 + $0x80] ss:$12 sps:$4 sm:$0xff]  }
 0x4f7   :  { %6813 = vpow2.f32 %v5450_v10  ;;  %v7668_v10 = vld [vmem:[#allocation8 + $0x94] ss:$12 sps:$4 sm:$0xff]   ;;  %v7671_v12 = vld [vmem:[#allocation8 + $0x90] ss:$12 sps:$4 sm:$0xff]   ;;  %v6650_v13 = vld [vmem:[#allocation8 + $0x98] ss:$12 sps:$4 sm:$0xff]  }
 0x4f8   :  { %6815 = vpow2.f32 %v5451_v15  ;;  %v7675_v15 = vld [vmem:[#allocation8 + $0xac] ss:$12 sps:$4 sm:$0xff]   ;;  %v6655_v22 = vld [vmem:[#allocation11] sm:$0xff]  }
 0x501   :  { %v6814_v16 = vpop.eup %6813 }
 0x502   :  { %v2630_v19 = vadd.f32 1.0, %v6814_v16  ;;  %v6816_v20 = vpop.eup %6815  ;;  %v7678_v16 = vld [vmem:[#allocation8 + $0xa8] ss:$12 sps:$4 sm:$0xff]  }
 0x503   :  { %v2636_v23 = vadd.f32 1.0, %v6816_v20  ;;  %v2650_v20 = vld [vmem:[#allocation3 + $0x10] sm:$0xf] }
 0x504   :  { %6817 = vrcp.f32 %v2630_v19  ;;  %v6654_v19 = vld [vmem:[#allocation8 + $0xb0] ss:$12 sps:$4 sm:$0xff]  }
 0x505   :  { %6819 = vrcp.f32 %v2636_v23  ;;  %v6656_v23 = vld [vmem:[#allocation11 + $0x8] sm:$0xff]  }
 0x50e   :  { %v6818_v63 = vpop.eup %6817 }
 0x50f   :  { %v6820_v36 = vpop.eup %6819 }
 0x510   :  { %v2621_v26 = vpop.f32.mrb[36].mxu1  ;;  %v2642_v38 = vsub.f32 1.0, %v6820_v36  ;;  %v2644_v44 = vmul.f32 %v6820_v36, %v7501_v60  ;;  %v7633_v60 = vld [vmem:[#allocation8 + $0x18] ss:$12 sps:$4 sm:$0xff]  }
 0x511   :  { %v2622_v49 = vadd.f32 %v7496_v32, %v2621_v26  ;;  %v6142_v55 = vpop.f32.mrb[37].mxu1  ;;  %v6626_v32 = vld [vmem:[#allocation8 + $0x8] ss:$12 sps:$4 sm:$0xff]  }
 0x512   :  { %v2624_v41 = vpop.f32.mrb[38].mxu1  ;;  %v6657_v26 = vld [vmem:[#allocation11 + $0x10] sm:$0xff]  }
 0x513   :  { %v2639_v21 = vmul.f32 %v6818_v63, %v2622_v49  ;;  %v6143_v29 = vpop.f32.mrb[39].mxu1 }
 0x515   :  { %v2640_v34 = vadd.f32 %v2639_v21, %v2515_v11  ;;  %v3133_v11 = vld [vmem:[%s8042_s4] sm:$0x7] }
 0x516   :  { %v3138_v21 = vrot.slane %v3133_v11, %v7263_v17 }
 0x517   :  { %6821 = vtanh.f32 %v2640_v34 }
 0x521   :  { %v6822_v40 = vpop.eup %6821 }
 0x522   :  { %v2643_v42 = vmul.f32 %v6822_v40, %v2642_v38 }
 0x524   :  { %v7618_v45 = vadd.f32 %v2644_v44, %v2643_v42 }
 0x526   :  { %2647 = vst.msk [vmem:[#allocation12 + $0x18] sm:$0xff] %vm735_vm1, %v7618_v45  ;;  %v7626_v48 = vpack.c.bf16 %v7618_v45, %v7618_v45 }
 0x528   :  { %2876 = vmatmul.mubr.bf16.vlgmr.msra.gmra.mrb[40].mxu0 %v7626_v48  ;;  %6161 = vmatmul.mubr.bf16.vlgmr.msra.gmra.mrb[40].mxu1 %v7626_v48 }
 0x529   :  { %3053 = vmatpush1.bf16.msra.mxu0 %v7620_v47  ;;  %6165 = vmatpush3.bf16.msra.mxu1 %v6626_v32 }
 0x52a   :  { %3054 = vmatprep.subr.bf16.mxu0 %v7628_v50  ;;  %6166 = vmatprep.subr.bf16.mxu1 %v7028_v0 }
 0x52b   :  { %3084 = vmatprep.mubr.bf16.mxu0 %v7029_v1  ;;  %6180 = vmatprep.mubr.msk.bf16.mxu1 %vm7030_vm0, %v7028_v0 }
 0x52d   :  { %3055 = vmatpush1.bf16.msra.mxu0 %v7633_v60  ;;  %6167 = vmatpush3.bf16.msra.mxu1 %v6630_v51 }
 0x52e   :  { %3056 = vmatprep.subr.bf16.mxu0 %v7637_v53  ;;  %6168 = vmatprep.subr.bf16.mxu1 %v7028_v0 }
 0x531   :  { %3057 = vmatpush1.bf16.msra.mxu0 %v7643_v54  ;;  %6169 = vmatpush3.bf16.msra.mxu1 %v6634_v56 }
 0x532   :  { %3058 = vmatprep.subr.bf16.mxu0 %v7647_v57  ;;  %6170 = vmatprep.subr.bf16.mxu1 %v7028_v0 }
 0x535   :  { %3059 = vmatpush1.bf16.msra.mxu0 %v7650_v35  ;;  %6171 = vmatpush3.bf16.msra.mxu1 %v6638_v37 }
 0x536   :  { %3060 = vmatprep.subr.bf16.mxu0 %v7654_v43  ;;  %6172 = vmatprep.subr.bf16.mxu1 %v7028_v0 }
 0x539   :  { %3061 = vmatpush1.bf16.msra.mxu0 %v7657_v4  ;;  %6173 = vmatpush3.bf16.msra.mxu1 %v6642_v5 }
 0x53a   :  { %3062 = vmatprep.subr.bf16.mxu0 %v7661_v7  ;;  %6174 = vmatprep.subr.bf16.mxu1 %v7028_v0 }
 0x53d   :  { %3063 = vmatpush1.bf16.msra.mxu0 %v7664_v59  ;;  %6175 = vmatpush3.bf16.msra.mxu1 %v6646_v9  ;;  %v3142_v9 = vrot.slane %v3133_v11, %v7269_v25 }
 0x53e   :  { %3064 = vmatprep.subr.bf16.mxu0 %v7668_v10  ;;  %6176 = vmatprep.subr.bf16.mxu1 %v7028_v0 }
 0x541   :  { %3065 = vmatpush1.bf16.msra.mxu0 %v7671_v12  ;;  %6177 = vmatpush3.bf16.msra.mxu1 %v6650_v13 }
 0x542   :  { %3066 = vmatprep.subr.bf16.mxu0 %v7675_v15  ;;  %6178 = vmatprep.subr.bf16.mxu1 %v7028_v0 }
 0x545   :  { %3067 = vmatpush1.bf16.msra.mxu0 %v7678_v16  ;;  %6179 = vmatpush3.bf16.msra.mxu1 %v6654_v19 }
 0x546   :  { %6184 = vmatprep.subr.bf16.mxu0 %v7028_v0  ;;  %3480 = vmatprep.subr.bf16.mxu1 %v7553_v46  ;;  %v6658_v46 = vld [vmem:[#allocation11 + $0x18] sm:$0xff]  }
 0x548   :  { %3085 = vmatmul.mubr.bf16.vlgmr.msra.gmra.mrb[44].mxu0 %v2650_v20  ;;  %6181 = vmatmul.mubr.bf16.vlgmr.msra.gmra.mrb[44].mxu1 %v2650_v20 }
 0x549   :  { %6185 = vmatpush3.bf16.msra.mxu0 %v6655_v22  ;;  %6200 = vmatprep.mubr.msk.bf16.mxu0 %vm7030_vm0, %v7028_v0 }
 0x54a   :  { %6186 = vmatprep.subr.bf16.mxu0 %v7028_v0  ;;  %3481 = vmatpush1.bf16.msra.mxu1 %v7551_v27  ;;  %v6659_v27 = vld [vmem:[#allocation11 + $0x20] sm:$0xff]  }
 0x54b   :  { %3482 = vmatprep.subr.bf16.mxu1 %v7555_v52  ;;  %3512 = vmatprep.mubr.bf16.mxu1 %v7029_v1  ;;  %v6660_v52 = vld [vmem:[#allocation11 + $0x28] sm:$0xff]  }
 0x54d   :  { %6187 = vmatpush3.bf16.msra.mxu0 %v6656_v23 }
 0x54e   :  { %6188 = vmatprep.subr.bf16.mxu0 %v7028_v0  ;;  %3483 = vmatpush1.bf16.msra.mxu1 %v7559_v58  ;;  %v6661_v58 = vld [vmem:[#allocation11 + $0x30] sm:$0xff]  }
 0x54f   :  { %3484 = vmatprep.subr.bf16.mxu1 %v7563_v61  ;;  %v6662_v61 = vld [vmem:[#allocation11 + $0x38] sm:$0xff]  }
 0x551   :  { %6189 = vmatpush3.bf16.msra.mxu0 %v6657_v26  ;;  %v7731_v26 = vld [vmem:[%s8044_s6] ss:$0 sm:$0xff] }
 0x552   :  { %6190 = vmatprep.subr.bf16.mxu0 %v7028_v0  ;;  %3485 = vmatpush1.bf16.msra.mxu1 %v7566_v62  ;;  %v6663_v62 = vld [vmem:[#allocation9 + $0x8] ss:$12 sps:$4 sm:$0xff]  }
 0x553   :  { %3486 = vmatprep.subr.bf16.mxu1 %v7571_v2  ;;  %v6664_v2 = vld [vmem:[#allocation9 + $0x20] ss:$12 sps:$4 sm:$0xff]  }
 0x555   :  { %6191 = vmatpush3.bf16.msra.mxu0 %v6658_v46  ;;  %v3146_v46 = vrot.slane %v3133_v11, %v7272_v39  ;;  %v6690_v11 = vld [vmem:[#allocation9 + $0x8] ss:$12 sps:$4 sm:$0xff]  }
 0x556   :  { %6192 = vmatprep.subr.bf16.mxu0 %v7028_v0  ;;  %3487 = vmatpush1.bf16.msra.mxu1 %v7574_v3  ;;  %v6665_v3 = vld [vmem:[#allocation9 + $0x38] ss:$12 sps:$4 sm:$0xff]  }
 0x557   :  { %3488 = vmatprep.subr.bf16.mxu1 %v7578_v6  ;;  %v6666_v6 = vld [vmem:[#allocation9 + $0x50] ss:$12 sps:$4 sm:$0xff]  }
 0x559   :  { %6193 = vmatpush3.bf16.msra.mxu0 %v6659_v27 }
 0x55a   :  { %6194 = vmatprep.subr.bf16.mxu0 %v7028_v0  ;;  %3489 = vmatpush1.bf16.msra.mxu1 %v7581_v8  ;;  %v6667_v8 = vld [vmem:[#allocation9 + $0x68] ss:$12 sps:$4 sm:$0xff]  }
 0x55b   :  { %3490 = vmatprep.subr.bf16.mxu1 %v7584_v14  ;;  %v6668_v14 = vld [vmem:[#allocation9 + $0x80] ss:$12 sps:$4 sm:$0xff]  }
 0x55d   :  { %6195 = vmatpush3.bf16.msra.mxu0 %v6660_v52 }
 0x55e   :  { %6196 = vmatprep.subr.bf16.mxu0 %v7028_v0  ;;  %3491 = vmatpush1.bf16.msra.mxu1 %v7587_v18  ;;  %v6669_v18 = vld [vmem:[#allocation9 + $0x98] ss:$12 sps:$4 sm:$0xff]  }
 0x55f   :  { %3492 = vmatprep.subr.bf16.mxu1 %v7591_v24  ;;  %v6670_v24 = vld [vmem:[#allocation9 + $0xb0] ss:$12 sps:$4 sm:$0xff]  }
 0x561   :  { %6197 = vmatpush3.bf16.msra.mxu0 %v6661_v58 }
 0x562   :  { %6198 = vmatprep.subr.bf16.mxu0 %v7028_v0  ;;  %3493 = vmatpush1.bf16.msra.mxu1 %v7594_v28 }
 0x563   :  { %3494 = vmatprep.subr.bf16.mxu1 %v7598_v30 }
 0x565   :  { %6199 = vmatpush3.bf16.msra.mxu0 %v6662_v61 }
 0x566   :  { %6204 = vmatprep.subr.bf16.mxu0 %v7028_v0  ;;  %3495 = vmatpush1.bf16.msra.mxu1 %v7601_v31 }
 0x567   :  { %3689 = vmatprep.subr.bf16.mxu1 %v7605_v33 }
 0x568   :  { %6201 = vmatmul.mubr.bf16.vlgmr.msra.gmra.mrb[48].mxu0 %v7626_v48 }
 0x569   :  { %6220 = vmatprep.mubr.msk.bf16.mxu0 %vm7030_vm0, %v7028_v0  ;;  %6205 = vmatpush3.bf16.msra.mxu0 %v6663_v62 }
 0x56a   :  { %6206 = vmatprep.subr.bf16.mxu0 %v7028_v0 }
 0x56d   :  { %6207 = vmatpush3.bf16.msra.mxu0 %v6664_v2 }
 0x56e   :  { %6208 = vmatprep.subr.bf16.mxu0 %v7028_v0 }
 0x571   :  { %6209 = vmatpush3.bf16.msra.mxu0 %v6665_v3 }
 0x572   :  { %6210 = vmatprep.subr.bf16.mxu0 %v7028_v0 }
 0x575   :  { %6211 = vmatpush3.bf16.msra.mxu0 %v6666_v6 }
 0x576   :  { %6212 = vmatprep.subr.bf16.mxu0 %v7028_v0 }
 0x579   :  { %6213 = vmatpush3.bf16.msra.mxu0 %v6667_v8 }
 0x57a   :  { %6214 = vmatprep.subr.bf16.mxu0 %v7028_v0 }
 0x57d   :  { %6215 = vmatpush3.bf16.msra.mxu0 %v6668_v14 }
 0x57e   :  { %6216 = vmatprep.subr.bf16.mxu0 %v7028_v0 }
 0x581   :  { %6217 = vmatpush3.bf16.msra.mxu0 %v6669_v18 }
 0x582   :  { %6218 = vmatprep.subr.bf16.mxu0 %v7028_v0 }
 0x585   :  { %6219 = vmatpush3.bf16.msra.mxu0 %v6670_v24 }
 0x586   :  { %6224 = vmatprep.subr.bf16.mxu0 %v7028_v0 }
 0x5fb   :  { %v2877_v28 = vpop.f32.mrb[40].mxu0  ;;  %v2918_v30 = vpop.f32.mrb[40].mxu1 }
 0x5fc   :  { %v2879_v31 = vpop.f32.mrb[41].mxu0  ;;  %v6162_v33 = vpop.f32.mrb[41].mxu1 }
 0x5fd   :  { %v2881_v49 = vpop.f32.mrb[42].mxu0  ;;  %v2921_v55 = vpop.f32.mrb[42].mxu1 }
 0x5fe   :  { %v2882_v63 = vpop.f32.mrb[43].mxu0  ;;  %v6163_v41 = vpop.f32.mrb[43].mxu1  ;;  %v6671_v49 = vld [vmem:[#allocation8 + $0x8] ss:$12 sps:$4 sm:$0xff]  }
 0x5ff   :  { %v6672_v63 = vld [vmem:[#allocation8 + $0x20] ss:$12 sps:$4 sm:$0xff]   ;;  %v7788_v41 = vld [vmem:[#allocation9 + $0x4] ss:$12 sps:$4 sm:$0xff]  }
 0x61b   :  { %v3086_v29 = vpop.f32.mrb[44].mxu0  ;;  %v3127_v34 = vpop.f32.mrb[44].mxu1 }
 0x61c   :  { %v3087_v36 = vadd.f32 %v3086_v29, %v2877_v28  ;;  %v3128_v38 = vadd.f32 %v3127_v34, %v2918_v30  ;;  %v3088_v40 = vpop.f32.mrb[45].mxu0  ;;  %v6182_v42 = vpop.f32.mrb[45].mxu1  ;;  %v6694_v29 = vld [vmem:[#allocation9 + $0x20] ss:$12 sps:$4 sm:$0xff]   ;;  %v7794_v34 = vld [vmem:[#allocation9 + $0x18] ss:$12 sps:$4 sm:$0xff]  }
 0x61d   :  { %v3089_v44 = vadd.f32 %v3088_v40, %v2879_v31  ;;  %v3090_v32 = vpop.f32.mrb[46].mxu0  ;;  %v3130_v48 = vpop.f32.mrb[46].mxu1  ;;  %v6698_v40 = vld [vmem:[#allocation9 + $0x38] ss:$12 sps:$4 sm:$0xff]  }
 0x61e   :  { %v3150_v51 = vadd.f32 %v3138_v21, %v3087_v36  ;;  %v3091_v56 = vpop.f32.mrb[47].mxu0  ;;  %v6183_v37 = vpop.f32.mrb[47].mxu1  ;;  %v3152_v3 = vadd.f32 %v3146_v46, %v3128_v38  ;;  %v7790_v21 = vld [vmem:[#allocation9 + $0x1c] ss:$12 sps:$4 sm:$0xff]   ;;  %v7798_v36 = vld [vmem:[#allocation9 + $0x34] ss:$12 sps:$4 sm:$0xff]  }
 0x61f   :  { %v3151_v13 = vadd.f32 %v3142_v9, %v3089_v44  ;;  %v7801_v38 = vld [vmem:[#allocation9 + $0x30] ss:$12 sps:$4 sm:$0xff]   ;;  %v7806_v42 = vld [vmem:[#allocation9 + $0x4c] ss:$12 sps:$4 sm:$0xff]   ;;  %v7809_v44 = vld [vmem:[#allocation9 + $0x48] ss:$12 sps:$4 sm:$0xff]  }
 0x620   :  { %v5509_v5 = vmul.f32 -1.442695, %v3150_v51  ;;  %v6702_v32 = vld [vmem:[#allocation9 + $0x50] ss:$12 sps:$4 sm:$0xff]   ;;  %v7816_v51 = vld [vmem:[#allocation9 + $0x60] ss:$12 sps:$4 sm:$0xff]  }
 0x621   :  { %v5510_v19 = vmul.f32 -1.442695, %v3151_v13  ;;  %v7813_v48 = vld [vmem:[#allocation9 + $0x64] ss:$12 sps:$4 sm:$0xff]   ;;  %v6706_v56 = vld [vmem:[#allocation9 + $0x68] ss:$12 sps:$4 sm:$0xff]  }
 0x622   :  { %6823 = vpow2.f32 %v5509_v5  ;;  %v7819_v37 = vld [vmem:[#allocation9 + $0x7c] ss:$12 sps:$4 sm:$0xff]   ;;  %v7822_v5 = vld [vmem:[#allocation9 + $0x78] ss:$12 sps:$4 sm:$0xff]   ;;  %v6710_v9 = vld [vmem:[#allocation9 + $0x80] ss:$12 sps:$4 sm:$0xff]  }
 0x623   :  { %6825 = vpow2.f32 %v5510_v19  ;;  %v7826_v13 = vld [vmem:[#allocation9 + $0x94] ss:$12 sps:$4 sm:$0xff]   ;;  %v7829_v19 = vld [vmem:[#allocation9 + $0x90] ss:$12 sps:$4 sm:$0xff]  }
 0x624   :  { %v6718_v46 = vld [vmem:[#allocation9 + $0xb0] ss:$12 sps:$4 sm:$0xff]  }
 0x62c   :  { %v6824_v20 = vpop.eup %6823 }
 0x62d   :  { %v3267_v22 = vadd.f32 1.0, %v6824_v20  ;;  %v6826_v23 = vpop.eup %6825  ;;  %v6714_v20 = vld [vmem:[#allocation9 + $0x98] ss:$12 sps:$4 sm:$0xff]  }
 0x62e   :  { %v3273_v27 = vadd.f32 1.0, %v6826_v23  ;;  %v7836_v23 = vld [vmem:[#allocation9 + $0xa8] ss:$12 sps:$4 sm:$0xff]  }
 0x62f   :  { %6827 = vrcp.f32 %v3267_v22  ;;  %v7833_v22 = vld [vmem:[#allocation9 + $0xac] ss:$12 sps:$4 sm:$0xff]  }
 0x630   :  { %6829 = vrcp.f32 %v3273_v27  ;;  %v7840_v27 = vld [vmem:[#allocation8 + $0x4] ss:$12 sps:$4 sm:$0xff]  }
 0x639   :  { %v6828_v62 = vpop.eup %6827 }
 0x63a   :  { %v6830_v18 = vpop.eup %6829 }
 0x63b   :  { %v3258_v52 = vpop.f32.mrb[48].mxu0  ;;  %v3279_v24 = vsub.f32 1.0, %v6830_v18  ;;  %v3281_v31 = vmul.f32 %v6830_v18, %v7618_v45  ;;  %v6673_v45 = vld [vmem:[#allocation8 + $0x38] ss:$12 sps:$4 sm:$0xff]  }
 0x63c   :  { %v3259_v58 = vadd.f32 %v7731_v26, %v3258_v52  ;;  %v6202_v61 = vpop.f32.mrb[49].mxu0 }
 0x63d   :  { %v3261_v2 = vpop.f32.mrb[50].mxu0 }
 0x63e   :  { %v3276_v6 = vmul.f32 %v6828_v62, %v3259_v58  ;;  %v6203_v8 = vpop.f32.mrb[51].mxu0 }
 0x640   :  { %v3277_v14 = vadd.f32 %v3276_v6, %v3152_v3 }
 0x642   :  { %6831 = vtanh.f32 %v3277_v14  ;;  %v3770_v14 = vld [vmem:[%s8042_s4] sm:$0x7] }
 0x643   :  { %v3775_v18 = vrot.slane %v3770_v14, %v7263_v17 }
 0x64c   :  { %v6832_v28 = vpop.eup %6831 }
 0x64d   :  { %v3280_v30 = vmul.f32 %v6832_v28, %v3279_v24 }
 0x64f   :  { %v7736_v33 = vadd.f32 %v3281_v31, %v3280_v30 }
 0x651   :  { %3284 = vst.msk [vmem:[#allocation12 + $0x20] sm:$0xff] %vm735_vm1, %v7736_v33  ;;  %v7742_v55 = vpack.c.bf16 %v7736_v33, %v7736_v33 }
 0x653   :  { %3513 = vmatmul.mubr.bf16.vlgmr.msra.gmra.mrb[48].mxu1 %v7742_v55  ;;  %6221 = vmatmul.mubr.bf16.vlgmr.msra.gmra.mrb[52].mxu0 %v7742_v55 }
 0x654   :  { %3690 = vmatpush1.bf16.msra.mxu1 %v7620_v47  ;;  %6225 = vmatpush3.bf16.msra.mxu0 %v6671_v49  ;;  %v6674_v47 = vld [vmem:[#allocation8 + $0x50] ss:$12 sps:$4 sm:$0xff]  }
 0x655   :  { %3691 = vmatprep.subr.bf16.mxu1 %v7628_v50  ;;  %6226 = vmatprep.subr.bf16.mxu0 %v7028_v0  ;;  %v6675_v50 = vld [vmem:[#allocation8 + $0x68] ss:$12 sps:$4 sm:$0xff]  }
 0x656   :  { %3721 = vmatprep.mubr.bf16.mxu1 %v7029_v1  ;;  %6240 = vmatprep.mubr.msk.bf16.mxu0 %vm7030_vm0, %v7028_v0 }
 0x658   :  { %3692 = vmatpush1.bf16.msra.mxu1 %v7633_v60  ;;  %6227 = vmatpush3.bf16.msra.mxu0 %v6672_v63  ;;  %v6676_v60 = vld [vmem:[#allocation8 + $0x80] ss:$12 sps:$4 sm:$0xff]  }
 0x659   :  { %3693 = vmatprep.subr.bf16.mxu1 %v7637_v53  ;;  %6228 = vmatprep.subr.bf16.mxu0 %v7028_v0  ;;  %v6677_v53 = vld [vmem:[#allocation8 + $0x98] ss:$12 sps:$4 sm:$0xff]  }
 0x65c   :  { %3694 = vmatpush1.bf16.msra.mxu1 %v7643_v54  ;;  %6229 = vmatpush3.bf16.msra.mxu0 %v6673_v45  ;;  %v6678_v54 = vld [vmem:[#allocation8 + $0xb0] ss:$12 sps:$4 sm:$0xff]  }
 0x65d   :  { %3695 = vmatprep.subr.bf16.mxu1 %v7647_v57  ;;  %6230 = vmatprep.subr.bf16.mxu0 %v7028_v0  ;;  %v3287_v57 = vld [vmem:[#allocation3 + $0x14] sm:$0xf] }
 0x660   :  { %3696 = vmatpush1.bf16.msra.mxu1 %v7650_v35  ;;  %6231 = vmatpush3.bf16.msra.mxu0 %v6674_v47  ;;  %v6679_v35 = vld [vmem:[#allocation11] sm:$0xff]  }
 0x661   :  { %3697 = vmatprep.subr.bf16.mxu1 %v7654_v43  ;;  %6232 = vmatprep.subr.bf16.mxu0 %v7028_v0  ;;  %v6680_v43 = vld [vmem:[#allocation11 + $0x8] sm:$0xff]  }
 0x664   :  { %3698 = vmatpush1.bf16.msra.mxu1 %v7657_v4  ;;  %6233 = vmatpush3.bf16.msra.mxu0 %v6675_v50  ;;  %v6681_v4 = vld [vmem:[#allocation11 + $0x10] sm:$0xff]  }
 0x665   :  { %3699 = vmatprep.subr.bf16.mxu1 %v7661_v7  ;;  %6234 = vmatprep.subr.bf16.mxu0 %v7028_v0  ;;  %v6682_v7 = vld [vmem:[#allocation11 + $0x18] sm:$0xff]  }
 0x668   :  { %3700 = vmatpush1.bf16.msra.mxu1 %v7664_v59  ;;  %6235 = vmatpush3.bf16.msra.mxu0 %v6676_v60  ;;  %v6683_v59 = vld [vmem:[#allocation11 + $0x20] sm:$0xff]  }
 0x669   :  { %3701 = vmatprep.subr.bf16.mxu1 %v7668_v10  ;;  %6236 = vmatprep.subr.bf16.mxu0 %v7028_v0  ;;  %v6684_v10 = vld [vmem:[#allocation11 + $0x28] sm:$0xff]  }
 0x66c   :  { %3702 = vmatpush1.bf16.msra.mxu1 %v7671_v12  ;;  %6237 = vmatpush3.bf16.msra.mxu0 %v6677_v53  ;;  %v6685_v12 = vld [vmem:[#allocation11 + $0x30] sm:$0xff]  }
 0x66d   :  { %3703 = vmatprep.subr.bf16.mxu1 %v7675_v15  ;;  %6238 = vmatprep.subr.bf16.mxu0 %v7028_v0  ;;  %v6686_v15 = vld [vmem:[#allocation11 + $0x38] sm:$0xff]  }
 0x670   :  { %3704 = vmatpush1.bf16.msra.mxu1 %v7678_v16  ;;  %6239 = vmatpush3.bf16.msra.mxu0 %v6678_v54  ;;  %v7786_v16 = vld [vmem:[#allocation9] ss:$12 sps:$4 sm:$0xff]  }
 0x671   :  { %6244 = vmatprep.subr.bf16.mxu1 %v7028_v0  ;;  %4117 = vmatprep.subr.bf16.mxu0 %v7788_v41 }
 0x673   :  { %3722 = vmatmul.mubr.bf16.vlgmr.msra.gmra.mrb[52].mxu1 %v3287_v57  ;;  %6241 = vmatmul.mubr.bf16.vlgmr.msra.gmra.mrb[56].mxu0 %v3287_v57  ;;  %v3779_v57 = vrot.slane %v3770_v14, %v7269_v25 }
 0x674   :  { %6245 = vmatpush3.bf16.msra.mxu1 %v6679_v35  ;;  %6260 = vmatprep.mubr.msk.bf16.mxu1 %vm7030_vm0, %v7028_v0 }
 0x675   :  { %6246 = vmatprep.subr.bf16.mxu1 %v7028_v0  ;;  %4149 = vmatprep.mubr.bf16.mxu0 %v7029_v1 }
 0x676   :  { %4118 = vmatpush1.bf16.msra.mxu0 %v7786_v16 }
 0x677   :  { %4119 = vmatprep.subr.bf16.mxu0 %v7790_v21 }
 0x678   :  { %6247 = vmatpush3.bf16.msra.mxu1 %v6680_v43 }
 0x679   :  { %6248 = vmatprep.subr.bf16.mxu1 %v7028_v0 }
 0x67a   :  { %4120 = vmatpush1.bf16.msra.mxu0 %v7794_v34 }
 0x67b   :  { %4121 = vmatprep.subr.bf16.mxu0 %v7798_v36 }
 0x67c   :  { %6249 = vmatpush3.bf16.msra.mxu1 %v6681_v4 }
 0x67d   :  { %6250 = vmatprep.subr.bf16.mxu1 %v7028_v0 }
 0x67e   :  { %4122 = vmatpush1.bf16.msra.mxu0 %v7801_v38 }
 0x67f   :  { %4123 = vmatprep.subr.bf16.mxu0 %v7806_v42 }
 0x680   :  { %6251 = vmatpush3.bf16.msra.mxu1 %v6682_v7 }
 0x681   :  { %6252 = vmatprep.subr.bf16.mxu1 %v7028_v0 }
 0x682   :  { %4124 = vmatpush1.bf16.msra.mxu0 %v7809_v44 }
 0x683   :  { %4125 = vmatprep.subr.bf16.mxu0 %v7813_v48 }
 0x684   :  { %6253 = vmatpush3.bf16.msra.mxu1 %v6683_v59 }
 0x685   :  { %6254 = vmatprep.subr.bf16.mxu1 %v7028_v0 }
 0x686   :  { %4126 = vmatpush1.bf16.msra.mxu0 %v7816_v51 }
 0x687   :  { %4127 = vmatprep.subr.bf16.mxu0 %v7819_v37 }
 0x688   :  { %6255 = vmatpush3.bf16.msra.mxu1 %v6684_v10  ;;  %v3783_v10 = vrot.slane %v3770_v14, %v7272_v39  ;;  %v7863_v14 = vld [vmem:[#allocation8 + $0x1c] ss:$12 sps:$4 sm:$0xff]  }
 0x689   :  { %6256 = vmatprep.subr.bf16.mxu1 %v7028_v0 }
 0x68a   :  { %4128 = vmatpush1.bf16.msra.mxu0 %v7822_v5 }
 0x68b   :  { %4129 = vmatprep.subr.bf16.mxu0 %v7826_v13 }
 0x68c   :  { %6257 = vmatpush3.bf16.msra.mxu1 %v6685_v12 }
 0x68d   :  { %6258 = vmatprep.subr.bf16.mxu1 %v7028_v0 }
 0x68e   :  { %4130 = vmatpush1.bf16.msra.mxu0 %v7829_v19 }
 0x68f   :  { %4131 = vmatprep.subr.bf16.mxu0 %v7833_v22 }
 0x690   :  { %6259 = vmatpush3.bf16.msra.mxu1 %v6686_v15 }
 0x691   :  { %6264 = vmatprep.subr.bf16.mxu1 %v7028_v0 }
 0x692   :  { %4132 = vmatpush1.bf16.msra.mxu0 %v7836_v23 }
 0x693   :  { %6261 = vmatmul.mubr.bf16.vlgmr.msra.gmra.mrb[56].mxu1 %v7742_v55  ;;  %4326 = vmatprep.subr.bf16.mxu0 %v7840_v27 }
 0x694   :  { %6280 = vmatprep.mubr.msk.bf16.mxu1 %vm7030_vm0, %v7028_v0  ;;  %6265 = vmatpush3.bf16.msra.mxu1 %v6690_v11 }
 0x695   :  { %6266 = vmatprep.subr.bf16.mxu1 %v7028_v0 }
 0x698   :  { %6267 = vmatpush3.bf16.msra.mxu1 %v6694_v29 }
 0x699   :  { %6268 = vmatprep.subr.bf16.mxu1 %v7028_v0 }
 0x69c   :  { %6269 = vmatpush3.bf16.msra.mxu1 %v6698_v40 }
 0x69d   :  { %6270 = vmatprep.subr.bf16.mxu1 %v7028_v0 }
 0x6a0   :  { %6271 = vmatpush3.bf16.msra.mxu1 %v6702_v32 }
 0x6a1   :  { %6272 = vmatprep.subr.bf16.mxu1 %v7028_v0 }
 0x6a4   :  { %6273 = vmatpush3.bf16.msra.mxu1 %v6706_v56 }
 0x6a5   :  { %6274 = vmatprep.subr.bf16.mxu1 %v7028_v0 }
 0x6a8   :  { %6275 = vmatpush3.bf16.msra.mxu1 %v6710_v9 }
 0x6a9   :  { %6276 = vmatprep.subr.bf16.mxu1 %v7028_v0 }
 0x6ac   :  { %6277 = vmatpush3.bf16.msra.mxu1 %v6714_v20 }
 0x6ad   :  { %6278 = vmatprep.subr.bf16.mxu1 %v7028_v0 }
 0x6b0   :  { %6279 = vmatpush3.bf16.msra.mxu1 %v6718_v46 }
 0x6b1   :  { %6284 = vmatprep.subr.bf16.mxu1 %v7028_v0 }
 0x726   :  { %v3514_v52 = vpop.f32.mrb[48].mxu1  ;;  %v3555_v58 = vpop.f32.mrb[52].mxu0 }
 0x727   :  { %v3516_v61 = vpop.f32.mrb[49].mxu1  ;;  %v6222_v62 = vpop.f32.mrb[53].mxu0 }
 0x728   :  { %v3518_v2 = vpop.f32.mrb[50].mxu1  ;;  %v3558_v3 = vpop.f32.mrb[54].mxu0 }
 0x729   :  { %v3519_v6 = vpop.f32.mrb[51].mxu1  ;;  %v6223_v8 = vpop.f32.mrb[55].mxu0 }
 0x72a   :  { %v7855_v6 = vld [vmem:[#allocation8] ss:$12 sps:$4 sm:$0xff]  }
 0x746   :  { %v3723_v24 = vpop.f32.mrb[52].mxu1  ;;  %v3764_v28 = vpop.f32.mrb[56].mxu0 }
 0x747   :  { %v3724_v30 = vadd.f32 %v3723_v24, %v3514_v52  ;;  %v3765_v31 = vadd.f32 %v3764_v28, %v3555_v58  ;;  %v3725_v49 = vpop.f32.mrb[53].mxu1  ;;  %v6242_v55 = vpop.f32.mrb[57].mxu0  ;;  %v7872_v24 = vld [vmem:[#allocation8 + $0x34] ss:$12 sps:$4 sm:$0xff]   ;;  %v7878_v28 = vld [vmem:[#allocation8 + $0x30] ss:$12 sps:$4 sm:$0xff]  }
 0x748   :  { %v3726_v63 = vadd.f32 %v3725_v49, %v3516_v61  ;;  %v3727_v45 = vpop.f32.mrb[54].mxu1  ;;  %v3767_v47 = vpop.f32.mrb[58].mxu0  ;;  %v7885_v49 = vld [vmem:[#allocation8 + $0x48] ss:$12 sps:$4 sm:$0xff]   ;;  %v6734_v55 = vld [vmem:[#allocation8 + $0x50] ss:$12 sps:$4 sm:$0xff]  }
 0x749   :  { %v3787_v50 = vadd.f32 %v3775_v18, %v3724_v30  ;;  %v3728_v60 = vpop.f32.mrb[55].mxu1  ;;  %v6243_v53 = vpop.f32.mrb[59].mxu0  ;;  %v3789_v56 = vadd.f32 %v3783_v10, %v3765_v31  ;;  %v6726_v18 = vld [vmem:[#allocation8 + $0x20] ss:$12 sps:$4 sm:$0xff]   ;;  %v6730_v30 = vld [vmem:[#allocation8 + $0x38] ss:$12 sps:$4 sm:$0xff]  }
 0x74a   :  { %v3788_v35 = vadd.f32 %v3779_v57, %v3726_v63  ;;  %v7882_v31 = vld [vmem:[#allocation8 + $0x4c] ss:$12 sps:$4 sm:$0xff]   ;;  %v7889_v63 = vld [vmem:[#allocation8 + $0x64] ss:$12 sps:$4 sm:$0xff]   ;;  %v6738_v47 = vld [vmem:[#allocation8 + $0x68] ss:$12 sps:$4 sm:$0xff]  }
 0x74b   :  { %v5568_v54 = vmul.f32 -1.442695, %v3787_v50  ;;  %v7892_v45 = vld [vmem:[#allocation8 + $0x60] ss:$12 sps:$4 sm:$0xff]   ;;  %v7896_v50 = vld [vmem:[#allocation8 + $0x7c] ss:$12 sps:$4 sm:$0xff]  }
 0x74c   :  { %v5569_v43 = vmul.f32 -1.442695, %v3788_v35  ;;  %v7899_v60 = vld [vmem:[#allocation8 + $0x78] ss:$12 sps:$4 sm:$0xff]   ;;  %v6742_v53 = vld [vmem:[#allocation8 + $0x80] ss:$12 sps:$4 sm:$0xff]  }
 0x74d   :  { %6833 = vpow2.f32 %v5568_v54  ;;  %v7903_v54 = vld [vmem:[#allocation8 + $0x94] ss:$12 sps:$4 sm:$0xff]   ;;  %v7906_v57 = vld [vmem:[#allocation8 + $0x90] ss:$12 sps:$4 sm:$0xff]   ;;  %v6746_v35 = vld [vmem:[#allocation8 + $0x98] ss:$12 sps:$4 sm:$0xff]  }
 0x74e   :  { %6835 = vpow2.f32 %v5569_v43  ;;  %v7910_v43 = vld [vmem:[#allocation8 + $0xac] ss:$12 sps:$4 sm:$0xff]   ;;  %v6751_v10 = vld [vmem:[#allocation11] sm:$0xff]  }
 0x757   :  { %v6834_v4 = vpop.eup %6833 }
 0x758   :  { %v3904_v7 = vadd.f32 1.0, %v6834_v4  ;;  %v6836_v59 = vpop.eup %6835  ;;  %v7913_v4 = vld [vmem:[#allocation8 + $0xa8] ss:$12 sps:$4 sm:$0xff]  }
 0x759   :  { %v3910_v12 = vadd.f32 1.0, %v6836_v59  ;;  %v3924_v59 = vld [vmem:[#allocation3 + $0x18] sm:$0xf] }
 0x75a   :  { %6837 = vrcp.f32 %v3904_v7  ;;  %v6750_v7 = vld [vmem:[#allocation8 + $0xb0] ss:$12 sps:$4 sm:$0xff]  }
 0x75b   :  { %6839 = vrcp.f32 %v3910_v12  ;;  %v6752_v12 = vld [vmem:[#allocation11 + $0x8] sm:$0xff]  }
 0x764   :  { %v6838_v40 = vpop.eup %6837 }
 0x765   :  { %v6840_v52 = vpop.eup %6839 }
 0x766   :  { %v3895_v15 = vpop.f32.mrb[56].mxu1  ;;  %v3916_v58 = vsub.f32 1.0, %v6840_v52  ;;  %v3918_v2 = vmul.f32 %v6840_v52, %v7736_v33  ;;  %v7868_v33 = vld [vmem:[#allocation8 + $0x18] ss:$12 sps:$4 sm:$0xff]  }
 0x767   :  { %v3896_v11 = vadd.f32 %v7731_v26, %v3895_v15  ;;  %v6262_v29 = vpop.f32.mrb[57].mxu1  ;;  %v6722_v26 = vld [vmem:[#allocation8 + $0x8] ss:$12 sps:$4 sm:$0xff]  }
 0x768   :  { %v3898_v32 = vpop.f32.mrb[58].mxu1  ;;  %v6753_v15 = vld [vmem:[#allocation11 + $0x10] sm:$0xff]  }
 0x769   :  { %v3913_v9 = vmul.f32 %v6838_v40, %v3896_v11  ;;  %v6263_v20 = vpop.f32.mrb[59].mxu1 }
 0x76b   :  { %v3914_v46 = vadd.f32 %v3913_v9, %v3789_v56  ;;  %v4407_v56 = vld [vmem:[%s8042_s4] sm:$0x7] }
 0x76c   :  { %v4412_v9 = vrot.slane %v4407_v56, %v7263_v17 }
 0x76d   :  { %6841 = vtanh.f32 %v3914_v46 }
 0x777   :  { %v6842_v61 = vpop.eup %6841 }
 0x778   :  { %v3917_v62 = vmul.f32 %v6842_v61, %v3916_v58 }
 0x77a   :  { %v7853_v3 = vadd.f32 %v3918_v2, %v3917_v62 }
 0x77c   :  { %3921 = vst.msk [vmem:[#allocation12 + $0x28] sm:$0xff] %vm735_vm1, %v7853_v3  ;;  %v7861_v8 = vpack.c.bf16 %v7853_v3, %v7853_v3 }
 0x77e   :  { %4150 = vmatmul.mubr.bf16.vlgmr.msra.gmra.mrb[60].mxu0 %v7861_v8  ;;  %6281 = vmatmul.mubr.bf16.vlgmr.msra.gmra.mrb[60].mxu1 %v7861_v8 }
 0x77f   :  { %4327 = vmatpush1.bf16.msra.mxu0 %v7855_v6  ;;  %6285 = vmatpush3.bf16.msra.mxu1 %v6722_v26 }
 0x780   :  { %4328 = vmatprep.subr.bf16.mxu0 %v7863_v14  ;;  %6286 = vmatprep.subr.bf16.mxu1 %v7028_v0 }
 0x781   :  { %4358 = vmatprep.mubr.bf16.mxu0 %v7029_v1  ;;  %6300 = vmatprep.mubr.msk.bf16.mxu1 %vm7030_vm0, %v7028_v0 }
 0x783   :  { %4329 = vmatpush1.bf16.msra.mxu0 %v7868_v33  ;;  %6287 = vmatpush3.bf16.msra.mxu1 %v6726_v18 }
 0x784   :  { %4330 = vmatprep.subr.bf16.mxu0 %v7872_v24  ;;  %6288 = vmatprep.subr.bf16.mxu1 %v7028_v0 }
 0x787   :  { %4331 = vmatpush1.bf16.msra.mxu0 %v7878_v28  ;;  %6289 = vmatpush3.bf16.msra.mxu1 %v6730_v30 }
 0x788   :  { %4332 = vmatprep.subr.bf16.mxu0 %v7882_v31  ;;  %6290 = vmatprep.subr.bf16.mxu1 %v7028_v0 }
 0x78b   :  { %4333 = vmatpush1.bf16.msra.mxu0 %v7885_v49  ;;  %6291 = vmatpush3.bf16.msra.mxu1 %v6734_v55 }
 0x78c   :  { %4334 = vmatprep.subr.bf16.mxu0 %v7889_v63  ;;  %6292 = vmatprep.subr.bf16.mxu1 %v7028_v0 }
 0x78f   :  { %4335 = vmatpush1.bf16.msra.mxu0 %v7892_v45  ;;  %6293 = vmatpush3.bf16.msra.mxu1 %v6738_v47 }
 0x790   :  { %4336 = vmatprep.subr.bf16.mxu0 %v7896_v50  ;;  %6294 = vmatprep.subr.bf16.mxu1 %v7028_v0 }
 0x793   :  { %4337 = vmatpush1.bf16.msra.mxu0 %v7899_v60  ;;  %6295 = vmatpush3.bf16.msra.mxu1 %v6742_v53  ;;  %v4416_v53 = vrot.slane %v4407_v56, %v7269_v25 }
 0x794   :  { %4338 = vmatprep.subr.bf16.mxu0 %v7903_v54  ;;  %6296 = vmatprep.subr.bf16.mxu1 %v7028_v0 }
 0x797   :  { %4339 = vmatpush1.bf16.msra.mxu0 %v7906_v57  ;;  %6297 = vmatpush3.bf16.msra.mxu1 %v6746_v35 }
 0x798   :  { %4340 = vmatprep.subr.bf16.mxu0 %v7910_v43  ;;  %6298 = vmatprep.subr.bf16.mxu1 %v7028_v0 }
 0x79b   :  { %4341 = vmatpush1.bf16.msra.mxu0 %v7913_v4  ;;  %6299 = vmatpush3.bf16.msra.mxu1 %v6750_v7 }
 0x79c   :  { %6304 = vmatprep.subr.bf16.mxu0 %v7028_v0  ;;  %4754 = vmatprep.subr.bf16.mxu1 %v7788_v41  ;;  %v6754_v41 = vld [vmem:[#allocation11 + $0x18] sm:$0xff]  }
 0x79e   :  { %4359 = vmatmul.mubr.bf16.vlgmr.msra.gmra.mrb[64].mxu0 %v3924_v59  ;;  %6301 = vmatmul.mubr.bf16.vlgmr.msra.gmra.mrb[64].mxu1 %v3924_v59 }
 0x79f   :  { %6305 = vmatpush3.bf16.msra.mxu0 %v6751_v10  ;;  %6320 = vmatprep.mubr.msk.bf16.mxu0 %vm7030_vm0, %v7028_v0 }
 0x7a0   :  { %6306 = vmatprep.subr.bf16.mxu0 %v7028_v0  ;;  %4755 = vmatpush1.bf16.msra.mxu1 %v7786_v16  ;;  %v6755_v16 = vld [vmem:[#allocation11 + $0x20] sm:$0xff]  }
 0x7a1   :  { %4756 = vmatprep.subr.bf16.mxu1 %v7790_v21  ;;  %4786 = vmatprep.mubr.bf16.mxu1 %v7029_v1  ;;  %v6756_v21 = vld [vmem:[#allocation11 + $0x28] sm:$0xff]  }
 0x7a3   :  { %6307 = vmatpush3.bf16.msra.mxu0 %v6752_v12 }
 0x7a4   :  { %6308 = vmatprep.subr.bf16.mxu0 %v7028_v0  ;;  %4757 = vmatpush1.bf16.msra.mxu1 %v7794_v34  ;;  %v6757_v34 = vld [vmem:[#allocation11 + $0x30] sm:$0xff]  }
 0x7a5   :  { %4758 = vmatprep.subr.bf16.mxu1 %v7798_v36  ;;  %v6758_v36 = vld [vmem:[#allocation11 + $0x38] sm:$0xff]  }
 0x7a7   :  { %6309 = vmatpush3.bf16.msra.mxu0 %v6753_v15  ;;  %v7966_v15 = vld [vmem:[%s8044_s6] ss:$0 sm:$0xff] }
 0x7a8   :  { %6310 = vmatprep.subr.bf16.mxu0 %v7028_v0  ;;  %4759 = vmatpush1.bf16.msra.mxu1 %v7801_v38  ;;  %v6759_v38 = vld [vmem:[#allocation9 + $0x8] ss:$12 sps:$4 sm:$0xff]  }
 0x7a9   :  { %4760 = vmatprep.subr.bf16.mxu1 %v7806_v42  ;;  %v6760_v42 = vld [vmem:[#allocation9 + $0x20] ss:$12 sps:$4 sm:$0xff]  }
 0x7ab   :  { %6311 = vmatpush3.bf16.msra.mxu0 %v6754_v41  ;;  %v4420_v41 = vrot.slane %v4407_v56, %v7272_v39 }
 0x7ac   :  { %6312 = vmatprep.subr.bf16.mxu0 %v7028_v0  ;;  %4761 = vmatpush1.bf16.msra.mxu1 %v7809_v44  ;;  %v6761_v44 = vld [vmem:[#allocation9 + $0x38] ss:$12 sps:$4 sm:$0xff]  }
 0x7ad   :  { %4762 = vmatprep.subr.bf16.mxu1 %v7813_v48  ;;  %v6762_v48 = vld [vmem:[#allocation9 + $0x50] ss:$12 sps:$4 sm:$0xff]  }
 0x7af   :  { %6313 = vmatpush3.bf16.msra.mxu0 %v6755_v16 }
 0x7b0   :  { %6314 = vmatprep.subr.bf16.mxu0 %v7028_v0  ;;  %4763 = vmatpush1.bf16.msra.mxu1 %v7816_v51  ;;  %v6763_v51 = vld [vmem:[#allocation9 + $0x68] ss:$12 sps:$4 sm:$0xff]  }
 0x7b1   :  { %4764 = vmatprep.subr.bf16.mxu1 %v7819_v37  ;;  %v6764_v37 = vld [vmem:[#allocation9 + $0x80] ss:$12 sps:$4 sm:$0xff]  }
 0x7b3   :  { %6315 = vmatpush3.bf16.msra.mxu0 %v6756_v21 }
 0x7b4   :  { %6316 = vmatprep.subr.bf16.mxu0 %v7028_v0  ;;  %4765 = vmatpush1.bf16.msra.mxu1 %v7822_v5  ;;  %v6765_v5 = vld [vmem:[#allocation9 + $0x98] ss:$12 sps:$4 sm:$0xff]  }
 0x7b5   :  { %4766 = vmatprep.subr.bf16.mxu1 %v7826_v13  ;;  %v6766_v13 = vld [vmem:[#allocation9 + $0xb0] ss:$12 sps:$4 sm:$0xff]  }
 0x7b7   :  { %6317 = vmatpush3.bf16.msra.mxu0 %v6757_v34 }
 0x7b8   :  { %6318 = vmatprep.subr.bf16.mxu0 %v7028_v0  ;;  %4767 = vmatpush1.bf16.msra.mxu1 %v7829_v19 }
 0x7b9   :  { %4768 = vmatprep.subr.bf16.mxu1 %v7833_v22 }
 0x7bb   :  { %6319 = vmatpush3.bf16.msra.mxu0 %v6758_v36 }
 0x7bc   :  { %6324 = vmatprep.subr.bf16.mxu0 %v7028_v0  ;;  %4769 = vmatpush1.bf16.msra.mxu1 %v7836_v23 }
 0x7bd   :  { %4963 = vmatprep.subr.bf16.mxu1 %v7840_v27 }
 0x7be   :  { %6321 = vmatmul.mubr.bf16.vlgmr.msra.gmra.mrb[68].mxu0 %v7861_v8 }
 0x7bf   :  { %6340 = vmatprep.mubr.msk.bf16.mxu0 %vm7030_vm0, %v7028_v0  ;;  %6325 = vmatpush3.bf16.msra.mxu0 %v6759_v38 }
 0x7c0   :  { %6326 = vmatprep.subr.bf16.mxu0 %v7028_v0 }
 0x7c3   :  { %6327 = vmatpush3.bf16.msra.mxu0 %v6760_v42 }
 0x7c4   :  { %6328 = vmatprep.subr.bf16.mxu0 %v7028_v0 }
 0x7c7   :  { %6329 = vmatpush3.bf16.msra.mxu0 %v6761_v44 }
 0x7c8   :  { %6330 = vmatprep.subr.bf16.mxu0 %v7028_v0 }
 0x7cb   :  { %6331 = vmatpush3.bf16.msra.mxu0 %v6762_v48 }
 0x7cc   :  { %6332 = vmatprep.subr.bf16.mxu0 %v7028_v0 }
 0x7cf   :  { %6333 = vmatpush3.bf16.msra.mxu0 %v6763_v51 }
 0x7d0   :  { %6334 = vmatprep.subr.bf16.mxu0 %v7028_v0 }
 0x7d3   :  { %6335 = vmatpush3.bf16.msra.mxu0 %v6764_v37 }
 0x7d4   :  { %6336 = vmatprep.subr.bf16.mxu0 %v7028_v0 }
 0x7d7   :  { %6337 = vmatpush3.bf16.msra.mxu0 %v6765_v5 }
 0x7d8   :  { %6338 = vmatprep.subr.bf16.mxu0 %v7028_v0 }
 0x7db   :  { %6339 = vmatpush3.bf16.msra.mxu0 %v6766_v13 }
 0x7dc   :  { %6344 = vmatprep.subr.bf16.mxu0 %v7028_v0 }
 0x851   :  { %v4151_v19 = vpop.f32.mrb[60].mxu0  ;;  %v4192_v22 = vpop.f32.mrb[60].mxu1 }
 0x852   :  { %v4153_v23 = vpop.f32.mrb[61].mxu0  ;;  %v6282_v27 = vpop.f32.mrb[61].mxu1 }
 0x853   :  { %v4155_v11 = vpop.f32.mrb[62].mxu0  ;;  %v4195_v29 = vpop.f32.mrb[62].mxu1 }
 0x854   :  { %v4156_v40 = vpop.f32.mrb[63].mxu0  ;;  %v6283_v32 = vpop.f32.mrb[63].mxu1  ;;  %v6767_v11 = vld [vmem:[#allocation8 + $0x8] ss:$12 sps:$4 sm:$0xff]  }
 0x855   :  { %v6768_v40 = vld [vmem:[#allocation8 + $0x20] ss:$12 sps:$4 sm:$0xff]  }
 0x871   :  { %v4360_v20 = vpop.f32.mrb[64].mxu0  ;;  %v4401_v46 = vpop.f32.mrb[64].mxu1 }
 0x872   :  { %v4361_v52 = vadd.f32 %v4360_v20, %v4151_v19  ;;  %v4402_v58 = vadd.f32 %v4401_v46, %v4192_v22  ;;  %v4362_v61 = vpop.f32.mrb[65].mxu0  ;;  %v6302_v62 = vpop.f32.mrb[65].mxu1 }
 0x873   :  { %v4363_v2 = vadd.f32 %v4362_v61, %v4153_v23  ;;  %v4364_v26 = vpop.f32.mrb[66].mxu0  ;;  %v4404_v8 = vpop.f32.mrb[66].mxu1 }
 0x874   :  { %v4424_v18 = vadd.f32 %v4412_v9, %v4361_v52  ;;  %v4365_v30 = vpop.f32.mrb[67].mxu0  ;;  %v6303_v55 = vpop.f32.mrb[67].mxu1  ;;  %v4426_v44 = vadd.f32 %v4420_v41, %v4402_v58  ;;  %v5044_v58 = vld [vmem:[%s8042_s4] sm:$0x7]  ;;  %s7031_s4 = smov [#allocation12]  }
 0x875   :  { %v4425_v35 = vadd.f32 %v4416_v53, %v4363_v2  ;;  %v5049_v61 = vrot.slane %v5044_v58, %v7263_v17  ;;  %s5202_s12 = sshll.u32 %s7031_s4, 4  ;;  %s5203_s12 = int_to_ptr.vmem [resolvable:$true] %s5202_s12 }
 0x876   :  { %v5627_v47 = vmul.f32 -1.442695, %v4424_v18  ;;  %s6989_s14 = scalar_lea.vmem %s5203_s12, 1024  ;;  %p6994_p13 = scmp.lt.s32.totalorder %s5203_s12, %s5203_s12 }
 0x877   :  { %v5628_v7 = vmul.f32 -1.442695, %v4425_v35  ;;  %p6990_p12 = scmp.ne.s32.totalorder %s5203_s12, %s6989_s14  ;;  %p6995_p0 = scmp.lt.s32.totalorder %s6989_s14, %s6989_s14 }
 0x878   :  { %6843 = vpow2.f32 %v5627_v47 }
 0x879   :  { %6845 = vpow2.f32 %v5628_v7  ;;  %p6996_p1 = por %p6995_p0, %p6994_p13 }
 0x87b   :  { %p6997_p2 = pnand %p6996_p1, %p6990_p12 }
 0x882   :  { %v6844_v59 = vpop.eup %6843 }
 0x883   :  { %v4541_v10 = vadd.f32 1.0, %v6844_v59  ;;  %v6846_v12 = vpop.eup %6845 }
 0x884   :  { %v4547_v16 = vadd.f32 1.0, %v6846_v12 }
 0x885   :  { %6847 = vrcp.f32 %v4541_v10  ;;  %v5053_v10 = vrot.slane %v5044_v58, %v7269_v25 }
 0x886   :  { %6849 = vrcp.f32 %v4547_v16 }
 0x88f   :  { %v6848_v38 = vpop.eup %6847 }
 0x890   :  { %v6850_v5 = vpop.eup %6849 }
 0x891   :  { %v4532_v21 = vpop.f32.mrb[68].mxu0  ;;  %v4553_v13 = vsub.f32 1.0, %v6850_v5  ;;  %v4555_v23 = vmul.f32 %v6850_v5, %v7853_v3  ;;  %v6769_v3 = vld [vmem:[#allocation8 + $0x38] ss:$12 sps:$4 sm:$0xff]  }
 0x892   :  { %v4533_v34 = vadd.f32 %v7966_v15, %v4532_v21  ;;  %v6322_v36 = vpop.f32.mrb[69].mxu0 }
 0x893   :  { %v4535_v42 = vpop.f32.mrb[70].mxu0 }
 0x894   :  { %v4550_v48 = vmul.f32 %v6848_v38, %v4533_v34  ;;  %v6323_v51 = vpop.f32.mrb[71].mxu0  ;;  %v5057_v34 = vrot.slane %v5044_v58, %v7272_v39 }
 0x896   :  { %v4551_v37 = vadd.f32 %v4550_v48, %v4426_v44 }
 0x898   :  { %6851 = vtanh.f32 %v4551_v37 }
 0x8a2   :  { %v6852_v19 = vpop.eup %6851 }
 0x8a3   :  { %v4554_v22 = vmul.f32 %v6852_v19, %v4553_v13 }
 0x8a5   :  { %v7971_v27 = vadd.f32 %v4555_v23, %v4554_v22 }
 0x8a7   :  { %4558 = vst.msk [vmem:[#allocation12 + $0x30] sm:$0xff] %vm735_vm1, %v7971_v27  ;;  %v7977_v29 = vpack.c.bf16 %v7971_v27, %v7971_v27 }
 0x8a9   :  { %4787 = vmatmul.mubr.bf16.vlgmr.msra.gmra.mrb[68].mxu1 %v7977_v29  ;;  %6341 = vmatmul.mubr.bf16.vlgmr.msra.gmra.mrb[72].mxu0 %v7977_v29 }
 0x8aa   :  { %4964 = vmatpush1.bf16.msra.mxu1 %v7855_v6  ;;  %6345 = vmatpush3.bf16.msra.mxu0 %v6767_v11  ;;  %v6770_v6 = vld [vmem:[#allocation8 + $0x50] ss:$12 sps:$4 sm:$0xff]  }
 0x8ab   :  { %4965 = vmatprep.subr.bf16.mxu1 %v7863_v14  ;;  %6346 = vmatprep.subr.bf16.mxu0 %v7028_v0  ;;  %v6772_v14 = vld [vmem:[#allocation8 + $0x80] ss:$12 sps:$4 sm:$0xff]  }
 0x8ac   :  { %4995 = vmatprep.mubr.bf16.mxu1 %v7029_v1  ;;  %6360 = vmatprep.mubr.msk.bf16.mxu0 %vm7030_vm0, %v7028_v0  ;;  %v6771_v1 = vld [vmem:[#allocation8 + $0x68] ss:$12 sps:$4 sm:$0xff]  }
 0x8ae   :  { %4966 = vmatpush1.bf16.msra.mxu1 %v7868_v33  ;;  %6347 = vmatpush3.bf16.msra.mxu0 %v6768_v40  ;;  %v6773_v33 = vld [vmem:[#allocation8 + $0x98] ss:$12 sps:$4 sm:$0xff]  }
 0x8af   :  { %4967 = vmatprep.subr.bf16.mxu1 %v7872_v24  ;;  %6348 = vmatprep.subr.bf16.mxu0 %v7028_v0  ;;  %v6774_v24 = vld [vmem:[#allocation8 + $0xb0] ss:$12 sps:$4 sm:$0xff]  }
 0x8b2   :  { %4968 = vmatpush1.bf16.msra.mxu1 %v7878_v28  ;;  %6349 = vmatpush3.bf16.msra.mxu0 %v6769_v3  ;;  %v4561_v28 = vld [vmem:[#allocation3 + $0x1c] sm:$0xf] }
 0x8b3   :  { %4969 = vmatprep.subr.bf16.mxu1 %v7882_v31  ;;  %6350 = vmatprep.subr.bf16.mxu0 %v7028_v0  ;;  %v6775_v31 = vld [vmem:[#allocation11] sm:$0xff]  }
 0x8b6   :  { %4970 = vmatpush1.bf16.msra.mxu1 %v7885_v49  ;;  %6351 = vmatpush3.bf16.msra.mxu0 %v6770_v6  ;;  %v6776_v49 = vld [vmem:[#allocation11 + $0x8] sm:$0xff]  }
 0x8b7   :  { %4971 = vmatprep.subr.bf16.mxu1 %v7889_v63  ;;  %6352 = vmatprep.subr.bf16.mxu0 %v7028_v0  ;;  %v6777_v63 = vld [vmem:[#allocation11 + $0x10] sm:$0xff]  }
 0x8ba   :  { %4972 = vmatpush1.bf16.msra.mxu1 %v7892_v45  ;;  %6353 = vmatpush3.bf16.msra.mxu0 %v6771_v1  ;;  %v6778_v45 = vld [vmem:[#allocation11 + $0x18] sm:$0xff]  }
 0x8bb   :  { %4973 = vmatprep.subr.bf16.mxu1 %v7896_v50  ;;  %6354 = vmatprep.subr.bf16.mxu0 %v7028_v0  ;;  %v6779_v50 = vld [vmem:[#allocation11 + $0x20] sm:$0xff]  }
 0x8be   :  { %4974 = vmatpush1.bf16.msra.mxu1 %v7899_v60  ;;  %6355 = vmatpush3.bf16.msra.mxu0 %v6772_v14  ;;  %v6780_v60 = vld [vmem:[#allocation11 + $0x28] sm:$0xff]  }
 0x8bf   :  { %4975 = vmatprep.subr.bf16.mxu1 %v7903_v54  ;;  %6356 = vmatprep.subr.bf16.mxu0 %v7028_v0  ;;  %v6781_v54 = vld [vmem:[#allocation11 + $0x30] sm:$0xff]  }
 0x8c2   :  { %4976 = vmatpush1.bf16.msra.mxu1 %v7906_v57  ;;  %6357 = vmatpush3.bf16.msra.mxu0 %v6773_v33  ;;  %v6782_v57 = vld [vmem:[#allocation11 + $0x38] sm:$0xff]  }
 0x8c3   :  { %4977 = vmatprep.subr.bf16.mxu1 %v7910_v43  ;;  %6358 = vmatprep.subr.bf16.mxu0 %v7028_v0 }
 0x8c6   :  { %4978 = vmatpush1.bf16.msra.mxu1 %v7913_v4  ;;  %6359 = vmatpush3.bf16.msra.mxu0 %v6774_v24 }
 0x8c7   :  { %6364 = vmatprep.subr.bf16.mxu1 %v7028_v0 }
 0x8c9   :  { %4996 = vmatmul.mubr.bf16.vlgmr.msra.gmra.mrb[72].mxu1 %v4561_v28  ;;  %6361 = vmatmul.mubr.bf16.vlgmr.msra.gmra.mrb[76].mxu0 %v4561_v28 }
 0x8ca   :  { %6365 = vmatpush3.bf16.msra.mxu1 %v6775_v31  ;;  %6380 = vmatprep.mubr.msk.bf16.mxu1 %vm7030_vm0, %v7028_v0 }
 0x8cb   :  { %6366 = vmatprep.subr.bf16.mxu1 %v7028_v0 }
 0x8ce   :  { %6367 = vmatpush3.bf16.msra.mxu1 %v6776_v49 }
 0x8cf   :  { %6368 = vmatprep.subr.bf16.mxu1 %v7028_v0 }
 0x8d2   :  { %6369 = vmatpush3.bf16.msra.mxu1 %v6777_v63 }
 0x8d3   :  { %6370 = vmatprep.subr.bf16.mxu1 %v7028_v0 }
 0x8d6   :  { %6371 = vmatpush3.bf16.msra.mxu1 %v6778_v45 }
 0x8d7   :  { %6372 = vmatprep.subr.bf16.mxu1 %v7028_v0 }
 0x8da   :  { %6373 = vmatpush3.bf16.msra.mxu1 %v6779_v50 }
 0x8db   :  { %6374 = vmatprep.subr.bf16.mxu1 %v7028_v0 }
 0x8de   :  { %6375 = vmatpush3.bf16.msra.mxu1 %v6780_v60 }
 0x8df   :  { %6376 = vmatprep.subr.bf16.mxu1 %v7028_v0 }
 0x8e2   :  { %6377 = vmatpush3.bf16.msra.mxu1 %v6781_v54 }
 0x8e3   :  { %6378 = vmatprep.subr.bf16.mxu1 %v7028_v0 }
 0x8e6   :  { %6379 = vmatpush3.bf16.msra.mxu1 %v6782_v57 }
 0x8e9   :  { %6381 = vmatmul.mubr.bf16.vlgmr.msra.gmra.mrb[76].mxu1 %v7977_v29 }
 0x97c   :  { %v4788_v43 = vpop.f32.mrb[68].mxu1  ;;  %v4829_v4 = vpop.f32.mrb[72].mxu0 }
 0x97d   :  { %v4790_v32 = vpop.f32.mrb[69].mxu1  ;;  %v6342_v56 = vpop.f32.mrb[73].mxu0 }
 0x97e   :  { %v4792_v9 = vpop.f32.mrb[70].mxu1  ;;  %v4832_v20 = vpop.f32.mrb[74].mxu0 }
 0x97f   :  { %v4793_v46 = vpop.f32.mrb[71].mxu1  ;;  %v6343_v52 = vpop.f32.mrb[75].mxu0 }
 0x99c   :  { %v4997_v62 = vpop.f32.mrb[72].mxu1  ;;  %v5038_v2 = vpop.f32.mrb[76].mxu0 }
 0x99d   :  { %v4998_v0 = vadd.f32 %v4997_v62, %v4788_v43  ;;  %v5039_v26 = vadd.f32 %v5038_v2, %v4829_v4  ;;  %v4999_v8 = vpop.f32.mrb[73].mxu1  ;;  %v6362_v18 = vpop.f32.mrb[77].mxu0 }
 0x99e   :  { %v5000_v30 = vadd.f32 %v4999_v8, %v4790_v32  ;;  %v5001_v55 = vpop.f32.mrb[74].mxu1  ;;  %v5041_v47 = vpop.f32.mrb[78].mxu0 }
 0x99f   :  { %v5061_v53 = vadd.f32 %v5049_v61, %v4998_v0  ;;  %v5002_v35 = vpop.f32.mrb[75].mxu1  ;;  %v6363_v7 = vpop.f32.mrb[79].mxu0  ;;  %v5063_v37 = vadd.f32 %v5057_v34, %v5039_v26 }
 0x9a0   :  { %v5062_v12 = vadd.f32 %v5053_v10, %v5000_v30 }
 0x9a1   :  { %v5686_v59 = vmul.f32 -1.442695, %v5061_v53 }
 0x9a2   :  { %v5687_v41 = vmul.f32 -1.442695, %v5062_v12 }
 0x9a3   :  { %6853 = vpow2.f32 %v5686_v59 }
 0x9a4   :  { %6855 = vpow2.f32 %v5687_v41 }
 0x9ad   :  { %v6854_v16 = vpop.eup %6853 }
 0x9ae   :  { %v5178_v17 = vadd.f32 1.0, %v6854_v16  ;;  %v6856_v21 = vpop.eup %6855 }
 0x9af   :  { %v5184_v36 = vadd.f32 1.0, %v6856_v21 }
 0x9b0   :  { %6857 = vrcp.f32 %v5178_v17 }
 0x9b1   :  { %6859 = vrcp.f32 %v5184_v36 }
 0x9ba   :  { %v6858_v48 = vpop.eup %6857 }
 0x9bb   :  { %v6860_v19 = vpop.eup %6859 }
 0x9bc   :  { %v5169_v38 = vpop.f32.mrb[76].mxu1  ;;  %v5190_v22 = vsub.f32 1.0, %v6860_v19  ;;  %v5192_v39 = vmul.f32 %v6860_v19, %v7971_v27 }
 0x9bd   :  { %v5170_v42 = vadd.f32 %v7966_v15, %v5169_v38  ;;  %v6382_v44 = vpop.f32.mrb[77].mxu1 }
 0x9be   :  { %v5172_v51 = vpop.f32.mrb[78].mxu1 }
 0x9bf   :  { %v5187_v25 = vmul.f32 %v6858_v48, %v5170_v42  ;;  %v6383_v5 = vpop.f32.mrb[79].mxu1 }
 0x9c1   :  { %v5188_v13 = vadd.f32 %v5187_v25, %v5063_v37 }
 0x9c3   :  { %6861 = vtanh.f32 %v5188_v13 }
 0x9cd   :  { %v6862_v23 = vpop.eup %6861 }
 0x9ce   :  { %v5191_v11 = vmul.f32 %v6862_v23, %v5190_v22 }
 0x9d0   :  { %v5193_v29 = vadd.f32 %v5192_v39, %v5191_v11 }
 0x9d2   :  { %5195 = vst.msk [vmem:[#allocation12 + $0x38] sm:$0xff] %vm735_vm1, %v5193_v29 }
 0x9d3   :  { %7000 = shalt.err (!%p6997_p2)
}
 0x9d4   :  { %s7001_s24 = scalar_lea.hbm %s8045_s7, 1024 }
 0x9d5   :  { %p7002_p3 = scmp.ne.s32.totalorder %s8045_s7, %s7001_s24  ;;  %p7005_p4 = scmp.lt.u32.totalorder %s7001_s24, %s8045_s7 }
 0x9d7   :  { %p7007_p5 = pnand %p7005_p4, %p7002_p3 }
 0x9d9   :  { %7010 = shalt.err (!%p7007_p5)
}
 0x9da   :  { %s7032_s17 = smov 128   ;;  %s7033_s18 = smov 8  }
 0x9db   :  { %5208 = dma.vmem_to_hbm [thread:$0]  %s5203_s12, 1024, %s8045_s7, [#allocation5], %s7032_s17, %s7032_s17, %s7033_s18  }
 0x9dc   :  { %7017 = dma.done.wait [#allocation5], 1024  }
 0x9dd   :  { %7018 = vsyncadd [#allocation5], 4294966272 }
 0x9de   :  { %5212 = vsyncpa [#allocation4], 1 }
 0x9df   :  { %5213 = vsyncpa [#allocation7], 1 }
 0x9e0   :  { %5214 = vsyncpa [#allocation10], 1 }
 0x9e1   :  { %5215 = vsyncpa [#allocation5], 1 }

</bundles_post_ra>
